<compile_context>
chip_gen: v6e
topology: v6e:2x2x1
jax: 0.10.0
libtpu: 0.0.40
codegen_flags: <defaults>
</compile_context>

<pallas_src>
import jax
import jax.numpy as jnp
from jax.experimental import pallas as pl
from jax.experimental.pallas import tpu as pltpu

C_IN, C1, C2, C3 = 6, 64, 128, 1024
C3_CHUNK = 256                      # layer-3 output-channel chunk
BN_EPS = 1e-5


def _mlp_kernel(x_ref, w1_ref, b1_ref, w2_ref, b2_ref, w3_ref, b3_ref, o_ref):
    # x_ref : (1, 6, TN)   f32    (raw input; cast to bf16 here)
    # w1    : (64, 6)      bf16   b1: (64, 1)   f32
    # w2    : (128, 64)    bf16   b2: (128, 1)  f32
    # w3    : (1024, 128)  bf16   b3: (1024, 1) f32
    # o_ref : (1, 1024, TN) out_dtype (bf16 by default)
    x = x_ref[0].astype(jnp.bfloat16)                                   # (6, TN)

    h1 = jnp.dot(w1_ref[...], x, preferred_element_type=jnp.float32)
    h1 = jnp.maximum(h1 + b1_ref[...], 0.0).astype(jnp.bfloat16)        # (64, TN)

    h2 = jnp.dot(w2_ref[...], h1, preferred_element_type=jnp.float32)
    h2 = jnp.maximum(h2 + b2_ref[...], 0.0).astype(jnp.bfloat16)        # (128, TN)

    # Layer 3 chunked over output channels: keeps the live f32 intermediate at
    # (C3_CHUNK, TN) and streams stores straight into the lane-dense output.
    for c in range(C3 // C3_CHUNK):
        lo, hi = c * C3_CHUNK, (c + 1) * C3_CHUNK
        h3 = jnp.dot(w3_ref[lo:hi, :], h2,
                     preferred_element_type=jnp.float32) + b3_ref[lo:hi, :]
        o_ref[0, lo:hi, :] = h3.astype(o_ref.dtype)


def _fold_bn(w, b_conv, gamma, beta, mean, var):
    """Fold conv bias + inference BatchNorm into (w_eff, shift).

    conv: y = x @ w + b_conv ; bn: (y - mean) * gamma/sqrt(var+eps) + beta
    """
    scale = gamma / jnp.sqrt(var + BN_EPS)          # (C_out,)
    w_eff = w * scale[None, :]                      # (C_in, C_out)
    shift = (b_conv - mean) * scale + beta          # (C_out,)
    return w_eff, shift


def _vmem_bytes_estimate(tile_n, out_itemsize):
    """Rough per-step VMEM footprint (double-buffered blocks + live temps)."""
    lane = 128
    b = 2 * 8 * tile_n * 4                              # x block (6 -> 8 sublanes), f32
    b += 2 * C3 * tile_n * out_itemsize                 # output block
    b += 2 * (C1 * lane + C2 * C1 + C3 * C2) * 2        # bf16 weights (w1 lane-padded)
    b += 2 * (C1 + C2 + C3) * lane * 4                  # f32 biases (lane-padded to 128)
    b += tile_n * (C1 + C2) * (4 + 2)                   # h1/h2 f32 + bf16 temporaries
    b += tile_n * C3_CHUNK * 4                          # h3 chunk f32
    return b


def n_views_mlp_forward(x, params, *, tile_n=1024, out_dtype=jnp.bfloat16):
    """x: (B, 6, 1, N) float32 -> (B, 1024, N) out_dtype (bf16 by default)."""
    B, Cin, one, N = x.shape
    assert Cin == C_IN and one == 1
    tile_n = min(tile_n, N)
    assert N % tile_n == 0 and tile_n % 128 == 0, (N, tile_n)

    # squeeze(2) only (free reshape) -- no wrapper-side pad/cast HBM pass.
    x3 = x.reshape(B, C_IN, N)                                          # (B, 6, N) f32

    w1, s1 = _fold_bn(params["w1"], params["cb1"], *params["bn1"])
    w2, s2 = _fold_bn(params["w2"], params["cb2"], *params["bn2"])
    w3, s3 = _fold_bn(params["w3"], params["cb3"], *params["bn3"])

    # channels-major weights (C_out, C_in), bf16 for the MXU.
    w1t = w1.T.astype(jnp.bfloat16)                                     # (64, 6)
    w2t = w2.T.astype(jnp.bfloat16)                                     # (128, 64)
    w3t = w3.T.astype(jnp.bfloat16)                                     # (1024, 128)
    b1c = s1[:, None].astype(jnp.float32)                               # (64, 1)
    b2c = s2[:, None].astype(jnp.float32)                               # (128, 1)
    b3c = s3[:, None].astype(jnp.float32)                               # (1024, 1)

    out_itemsize = jnp.dtype(out_dtype).itemsize
    const = lambda b, n: (0, 0)
    flops = 2 * B * N * (C_IN * C1 + C1 * C2 + C2 * C3)
    bytes_accessed = (x3.size * 4 + B * N * C3 * out_itemsize
                      + (w1t.size + w2t.size + w3t.size) * 2
                      + (b1c.size + b2c.size + b3c.size) * 4)
    vmem_limit = max(32 * 1024 * 1024,
                     min(2 * _vmem_bytes_estimate(tile_n, out_itemsize),
                         64 * 1024 * 1024))

    out = pl.pallas_call(
        _mlp_kernel,
        out_shape=jax.ShapeDtypeStruct((B, C3, N), out_dtype),
        grid_spec=pltpu.PrefetchScalarGridSpec(
            num_scalar_prefetch=0,
            grid=(B, N // tile_n),
            in_specs=[
                pl.BlockSpec((1, C_IN, tile_n), lambda b, n: (b, 0, n)),
                pl.BlockSpec((C1, C_IN), const),
                pl.BlockSpec((C1, 1), const),
                pl.BlockSpec((C2, C1), const),
                pl.BlockSpec((C2, 1), const),
                pl.BlockSpec((C3, C2), const),
                pl.BlockSpec((C3, 1), const),
            ],
            out_specs=pl.BlockSpec((1, C3, tile_n), lambda b, n: (b, 0, n)),
        ),
        compiler_params=pltpu.CompilerParams(
            dimension_semantics=("parallel", "parallel"),
            vmem_limit_bytes=vmem_limit),
        cost_estimate=pl.CostEstimate(flops=flops, transcendentals=0,
                                      bytes_accessed=bytes_accessed),
    )(x3, w1t, b1c, w2t, b2c, w3t, b3c)
    return out


def init_params(key):
    """Deterministic synthetic parameters with the module's shapes."""
    ks = jax.random.split(key, 12)
    p = {}
    # conv weights stored as (C_in, C_out) (i.e. PyTorch (C_out, C_in, 1) transposed)
    p["w1"] = 0.1 * jax.random.normal(ks[0], (C_IN, C1), jnp.float32)
    p["cb1"] = 0.1 * jax.random.normal(ks[1], (C1,), jnp.float32)
    p["w2"] = 0.05 * jax.random.normal(ks[2], (C1, C2), jnp.float32)
    p["cb2"] = 0.1 * jax.random.normal(ks[3], (C2,), jnp.float32)
    p["w3"] = 0.02 * jax.random.normal(ks[4], (C2, C3), jnp.float32)
    p["cb3"] = 0.1 * jax.random.normal(ks[5], (C3,), jnp.float32)

    def bn(kg, kb, km, kv, c):
        return (1.0 + 0.1 * jax.random.normal(kg, (c,), jnp.float32),   # gamma
                0.1 * jax.random.normal(kb, (c,), jnp.float32),         # beta
                0.1 * jax.random.normal(km, (c,), jnp.float32),         # running mean
                1.0 + 0.1 * jax.nn.softplus(jax.random.normal(kv, (c,), jnp.float32)))  # running var
    p["bn1"] = bn(ks[6], ks[7], ks[8], ks[9], C1)
    k2 = jax.random.split(ks[10], 4)
    p["bn2"] = bn(k2[0], k2[1], k2[2], k2[3], C2)
    k3 = jax.random.split(ks[11], 4)
    p["bn3"] = bn(k3[0], k3[1], k3[2], k3[3], C3)
    return p


def _reference(x, params):
    """Plain-JAX f32 reference of the same (inference-mode BN) forward."""
    B, _, _, N = x.shape
    h = jnp.transpose(x[:, :, 0, :], (0, 2, 1)).reshape(B * N, C_IN)
    for wk, bk, bnk, relu in (("w1", "cb1", "bn1", True),
                              ("w2", "cb2", "bn2", True),
                              ("w3", "cb3", "bn3", False)):
        gamma, beta, mean, var = params[bnk]
        y = h @ params[wk] + params[bk][None, :]
        y = (y - mean[None, :]) * (gamma / jnp.sqrt(var + BN_EPS))[None, :] + beta[None, :]
        h = jnp.maximum(y, 0.0) if relu else y
    return jnp.transpose(h.reshape(B, N, C3), (0, 2, 1))


if __name__ == "__main__":
    key = jax.random.PRNGKey(0)
    kx, kp = jax.random.split(key)
    B, N = 2, 384                     # small: N = 12 views x 32 points per view
    x = jax.random.normal(kx, (B, C_IN, 1, N), jnp.float32)
    params = init_params(kp)

    out = n_views_mlp_forward(x, params)          # bf16 output by default
    out = jax.block_until_ready(out)

    ref = _reference(x, params)
    assert out.shape == (B, C3, N), out.shape
    assert out.dtype == jnp.bfloat16, out.dtype
    # bf16 matmul inputs + bf16 output (f32 accumulation) -> compare with a
    # looser tolerance, normalized by the reference magnitude.
    rel_err = float(jnp.max(jnp.abs(out.astype(jnp.float32) - ref))
                    / (jnp.max(jnp.abs(ref)) + 1e-6))
    assert rel_err < 5e-2, f"mismatch vs reference: normalized max err {rel_err}"
    print("KERNEL_OK")
</pallas_src>

<mosaic_0001>
module attributes {stable_mosaic.version = 11 : i64} {
  func.func @_mlp_kernel(%arg0: i32, %arg1: i32, %arg2: memref<1x6x384xf32, #tpu.memory_space<vmem>>, %arg3: memref<64x6xbf16, #tpu.memory_space<vmem>>, %arg4: memref<64x1xf32, #tpu.memory_space<vmem>>, %arg5: memref<128x64xbf16, #tpu.memory_space<vmem>>, %arg6: memref<128x1xf32, #tpu.memory_space<vmem>>, %arg7: memref<1024x128xbf16, #tpu.memory_space<vmem>>, %arg8: memref<1024x1xf32, #tpu.memory_space<vmem>>, %arg9: memref<1x1024x384xbf16, #tpu.memory_space<vmem>>) attributes {dimension_semantics = [#tpu.dimension_semantics<parallel>, #tpu.dimension_semantics<parallel>], iteration_bounds = array<i64: 2, 1>, scalar_prefetch = 0 : i64, scratch_operands = 0 : i64, tpu.core_type = #tpu.core_type<tc>, window_params = [{transform_indices = @transform_0, window_bounds = array<i64: 1, 6, 384>}, {pipeline_mode = #tpu.pipeline_mode<synchronous>, transform_indices = @transform_1, window_bounds = array<i64: 64, 6>}, {pipeline_mode = #tpu.pipeline_mode<synchronous>, transform_indices = @transform_2, window_bounds = array<i64: 64, 1>}, {pipeline_mode = #tpu.pipeline_mode<synchronous>, transform_indices = @transform_3, window_bounds = array<i64: 128, 64>}, {pipeline_mode = #tpu.pipeline_mode<synchronous>, transform_indices = @transform_4, window_bounds = array<i64: 128, 1>}, {pipeline_mode = #tpu.pipeline_mode<synchronous>, transform_indices = @transform_5, window_bounds = array<i64: 1024, 128>}, {pipeline_mode = #tpu.pipeline_mode<synchronous>, transform_indices = @transform_6, window_bounds = array<i64: 1024, 1>}, {transform_indices = @transform_7, window_bounds = array<i64: 1, 1024, 384>}]} {
    %c0 = arith.constant 0 : index
    %c0_0 = arith.constant 0 : index
    %c0_1 = arith.constant 0 : index
    %0 = vector.load %arg2[%c0, %c0_0, %c0_1] : memref<1x6x384xf32, #tpu.memory_space<vmem>>, vector<1x6x384xf32>
    %1 = vector.shape_cast %0 : vector<1x6x384xf32> to vector<6x384xf32>
    %2 = arith.truncf %1 : vector<6x384xf32> to vector<6x384xbf16>
    %c0_2 = arith.constant 0 : index
    %c0_3 = arith.constant 0 : index
    %3 = vector.load %arg3[%c0_2, %c0_3] : memref<64x6xbf16, #tpu.memory_space<vmem>>, vector<64x6xbf16>
    %cst = arith.constant dense<0.000000e+00> : vector<64x384xf32>
    %4 = tpu.matmul %3, %2, %cst {dimension_numbers = #tpu.dot_dimension_numbers<[1], [0], [0], [1], [0, 0, 1, 1], [], []>} : vector<64x6xbf16>, vector<6x384xbf16>, vector<64x384xf32> -> vector<64x384xf32>
    %c0_4 = arith.constant 0 : index
    %c0_5 = arith.constant 0 : index
    %5 = vector.load %arg4[%c0_4, %c0_5] : memref<64x1xf32, #tpu.memory_space<vmem>>, vector<64x1xf32>
    %6 = vector.broadcast %5 : vector<64x1xf32> to vector<64x384xf32>
    %7 = arith.addf %4, %6 : vector<64x384xf32>
    %cst_6 = arith.constant 0.000000e+00 : f32
    %8 = vector.broadcast %cst_6 : f32 to vector<64x384xf32>
    %9 = arith.maximumf %7, %8 : vector<64x384xf32>
    %10 = arith.truncf %9 : vector<64x384xf32> to vector<64x384xbf16>
    %c0_7 = arith.constant 0 : index
    %c0_8 = arith.constant 0 : index
    %11 = vector.load %arg5[%c0_7, %c0_8] : memref<128x64xbf16, #tpu.memory_space<vmem>>, vector<128x64xbf16>
    %cst_9 = arith.constant dense<0.000000e+00> : vector<128x384xf32>
    %12 = tpu.matmul %11, %10, %cst_9 {dimension_numbers = #tpu.dot_dimension_numbers<[1], [0], [0], [1], [0, 0, 1, 1], [], []>} : vector<128x64xbf16>, vector<64x384xbf16>, vector<128x384xf32> -> vector<128x384xf32>
    %c0_10 = arith.constant 0 : index
    %c0_11 = arith.constant 0 : index
    %13 = vector.load %arg6[%c0_10, %c0_11] : memref<128x1xf32, #tpu.memory_space<vmem>>, vector<128x1xf32>
    %14 = vector.broadcast %13 : vector<128x1xf32> to vector<128x384xf32>
    %15 = arith.addf %12, %14 : vector<128x384xf32>
    %cst_12 = arith.constant 0.000000e+00 : f32
    %16 = vector.broadcast %cst_12 : f32 to vector<128x384xf32>
    %17 = arith.maximumf %15, %16 : vector<128x384xf32>
    %18 = arith.truncf %17 : vector<128x384xf32> to vector<128x384xbf16>
    %c0_13 = arith.constant 0 : index
    %c0_14 = arith.constant 0 : index
    %19 = vector.load %arg7[%c0_13, %c0_14] : memref<1024x128xbf16, #tpu.memory_space<vmem>>, vector<256x128xbf16>
    %cst_15 = arith.constant dense<0.000000e+00> : vector<256x384xf32>
    %20 = tpu.matmul %19, %18, %cst_15 {dimension_numbers = #tpu.dot_dimension_numbers<[1], [0], [0], [1], [0, 0, 1, 1], [], []>} : vector<256x128xbf16>, vector<128x384xbf16>, vector<256x384xf32> -> vector<256x384xf32>
    %c0_16 = arith.constant 0 : index
    %c0_17 = arith.constant 0 : index
    %21 = vector.load %arg8[%c0_16, %c0_17] : memref<1024x1xf32, #tpu.memory_space<vmem>>, vector<256x1xf32>
    %22 = vector.broadcast %21 : vector<256x1xf32> to vector<256x384xf32>
    %23 = arith.addf %20, %22 : vector<256x384xf32>
    %24 = arith.truncf %23 : vector<256x384xf32> to vector<256x384xbf16>
    %c0_18 = arith.constant 0 : index
    %c0_19 = arith.constant 0 : index
    %c0_20 = arith.constant 0 : index
    %25 = vector.load %arg9[%c0_18, %c0_19, %c0_20] : memref<1x1024x384xbf16, #tpu.memory_space<vmem>>, vector<1x256x384xbf16>
    %26 = vector.shape_cast %25 : vector<1x256x384xbf16> to vector<256x384xbf16>
    %27 = vector.shape_cast %24 : vector<256x384xbf16> to vector<1x256x384xbf16>
    tpu.vector_store %arg9[%c0_18, %c0_19, %c0_20], %27 {strides = array<i32>} : memref<1x1024x384xbf16, #tpu.memory_space<vmem>>, vector<1x256x384xbf16>,
    %c256 = arith.constant 256 : index
    %c0_21 = arith.constant 0 : index
    %28 = vector.load %arg7[%c256, %c0_21] : memref<1024x128xbf16, #tpu.memory_space<vmem>>, vector<256x128xbf16>
    %cst_22 = arith.constant dense<0.000000e+00> : vector<256x384xf32>
    %29 = tpu.matmul %28, %18, %cst_22 {dimension_numbers = #tpu.dot_dimension_numbers<[1], [0], [0], [1], [0, 0, 1, 1], [], []>} : vector<256x128xbf16>, vector<128x384xbf16>, vector<256x384xf32> -> vector<256x384xf32>
    %c256_23 = arith.constant 256 : index
    %c0_24 = arith.constant 0 : index
    %30 = vector.load %arg8[%c256_23, %c0_24] : memref<1024x1xf32, #tpu.memory_space<vmem>>, vector<256x1xf32>
    %31 = vector.broadcast %30 : vector<256x1xf32> to vector<256x384xf32>
    %32 = arith.addf %29, %31 : vector<256x384xf32>
    %33 = arith.truncf %32 : vector<256x384xf32> to vector<256x384xbf16>
    %c0_25 = arith.constant 0 : index
    %c256_26 = arith.constant 256 : index
    %c0_27 = arith.constant 0 : index
    %34 = vector.load %arg9[%c0_25, %c256_26, %c0_27] : memref<1x1024x384xbf16, #tpu.memory_space<vmem>>, vector<1x256x384xbf16>
    %35 = vector.shape_cast %34 : vector<1x256x384xbf16> to vector<256x384xbf16>
    %36 = vector.shape_cast %33 : vector<256x384xbf16> to vector<1x256x384xbf16>
    tpu.vector_store %arg9[%c0_25, %c256_26, %c0_27], %36 {strides = array<i32>} : memref<1x1024x384xbf16, #tpu.memory_space<vmem>>, vector<1x256x384xbf16>,
    %c512 = arith.constant 512 : index
    %c0_28 = arith.constant 0 : index
    %37 = vector.load %arg7[%c512, %c0_28] : memref<1024x128xbf16, #tpu.memory_space<vmem>>, vector<256x128xbf16>
    %cst_29 = arith.constant dense<0.000000e+00> : vector<256x384xf32>
    %38 = tpu.matmul %37, %18, %cst_29 {dimension_numbers = #tpu.dot_dimension_numbers<[1], [0], [0], [1], [0, 0, 1, 1], [], []>} : vector<256x128xbf16>, vector<128x384xbf16>, vector<256x384xf32> -> vector<256x384xf32>
    %c512_30 = arith.constant 512 : index
    %c0_31 = arith.constant 0 : index
    %39 = vector.load %arg8[%c512_30, %c0_31] : memref<1024x1xf32, #tpu.memory_space<vmem>>, vector<256x1xf32>
    %40 = vector.broadcast %39 : vector<256x1xf32> to vector<256x384xf32>
    %41 = arith.addf %38, %40 : vector<256x384xf32>
    %42 = arith.truncf %41 : vector<256x384xf32> to vector<256x384xbf16>
    %c0_32 = arith.constant 0 : index
    %c512_33 = arith.constant 512 : index
    %c0_34 = arith.constant 0 : index
    %43 = vector.load %arg9[%c0_32, %c512_33, %c0_34] : memref<1x1024x384xbf16, #tpu.memory_space<vmem>>, vector<1x256x384xbf16>
    %44 = vector.shape_cast %43 : vector<1x256x384xbf16> to vector<256x384xbf16>
    %45 = vector.shape_cast %42 : vector<256x384xbf16> to vector<1x256x384xbf16>
    tpu.vector_store %arg9[%c0_32, %c512_33, %c0_34], %45 {strides = array<i32>} : memref<1x1024x384xbf16, #tpu.memory_space<vmem>>, vector<1x256x384xbf16>,
    %c768 = arith.constant 768 : index
    %c0_35 = arith.constant 0 : index
    %46 = vector.load %arg7[%c768, %c0_35] : memref<1024x128xbf16, #tpu.memory_space<vmem>>, vector<256x128xbf16>
    %cst_36 = arith.constant dense<0.000000e+00> : vector<256x384xf32>
    %47 = tpu.matmul %46, %18, %cst_36 {dimension_numbers = #tpu.dot_dimension_numbers<[1], [0], [0], [1], [0, 0, 1, 1], [], []>} : vector<256x128xbf16>, vector<128x384xbf16>, vector<256x384xf32> -> vector<256x384xf32>
    %c768_37 = arith.constant 768 : index
    %c0_38 = arith.constant 0 : index
    %48 = vector.load %arg8[%c768_37, %c0_38] : memref<1024x1xf32, #tpu.memory_space<vmem>>, vector<256x1xf32>
    %49 = vector.broadcast %48 : vector<256x1xf32> to vector<256x384xf32>
    %50 = arith.addf %47, %49 : vector<256x384xf32>
    %51 = arith.truncf %50 : vector<256x384xf32> to vector<256x384xbf16>
    %c0_39 = arith.constant 0 : index
    %c768_40 = arith.constant 768 : index
    %c0_41 = arith.constant 0 : index
    %52 = vector.load %arg9[%c0_39, %c768_40, %c0_41] : memref<1x1024x384xbf16, #tpu.memory_space<vmem>>, vector<1x256x384xbf16>
    %53 = vector.shape_cast %52 : vector<1x256x384xbf16> to vector<256x384xbf16>
    %54 = vector.shape_cast %51 : vector<256x384xbf16> to vector<1x256x384xbf16>
    tpu.vector_store %arg9[%c0_39, %c768_40, %c0_41], %54 {strides = array<i32>} : memref<1x1024x384xbf16, #tpu.memory_space<vmem>>, vector<1x256x384xbf16>,
    return
  }
  func.func @transform_0(%arg0: i32, %arg1: i32) -> (i32, i32, i32) {
    %c0_i32 = arith.constant 0 : i32
    %c0_i32_0 = arith.constant 0 : i32
    return %arg0, %c0_i32, %arg1 : i32, i32, i32
  }
  func.func @transform_1(%arg0: i32, %arg1: i32) -> (i32, i32) {
    %c0_i32 = arith.constant 0 : i32
    %c0_i32_0 = arith.constant 0 : i32
    %c0_i32_1 = arith.constant 0 : i32
    return %c0_i32, %c0_i32_0 : i32, i32
  }
  func.func @transform_2(%arg0: i32, %arg1: i32) -> (i32, i32) {
    %c0_i32 = arith.constant 0 : i32
    %c0_i32_0 = arith.constant 0 : i32
    %c0_i32_1 = arith.constant 0 : i32
    return %c0_i32, %c0_i32_0 : i32, i32
  }
  func.func @transform_3(%arg0: i32, %arg1: i32) -> (i32, i32) {
    %c0_i32 = arith.constant 0 : i32
    %c0_i32_0 = arith.constant 0 : i32
    %c0_i32_1 = arith.constant 0 : i32
    return %c0_i32, %c0_i32_0 : i32, i32
  }
  func.func @transform_4(%arg0: i32, %arg1: i32) -> (i32, i32) {
    %c0_i32 = arith.constant 0 : i32
    %c0_i32_0 = arith.constant 0 : i32
    %c0_i32_1 = arith.constant 0 : i32
    return %c0_i32, %c0_i32_0 : i32, i32
  }
  func.func @transform_5(%arg0: i32, %arg1: i32) -> (i32, i32) {
    %c0_i32 = arith.constant 0 : i32
    %c0_i32_0 = arith.constant 0 : i32
    %c0_i32_1 = arith.constant 0 : i32
    return %c0_i32, %c0_i32_0 : i32, i32
  }
  func.func @transform_6(%arg0: i32, %arg1: i32) -> (i32, i32) {
    %c0_i32 = arith.constant 0 : i32
    %c0_i32_0 = arith.constant 0 : i32
    %c0_i32_1 = arith.constant 0 : i32
    return %c0_i32, %c0_i32_0 : i32, i32
  }
  func.func @transform_7(%arg0: i32, %arg1: i32) -> (i32, i32, i32) {
    %c0_i32 = arith.constant 0 : i32
    %c0_i32_0 = arith.constant 0 : i32
    return %arg0, %c0_i32, %arg1 : i32, i32, i32
  }
}

</mosaic_0001>

<bundles_post_ra>
// kernel: tpu_custom_call.1
= control target key start
LH: loop header
LB: loop body
LE: loop exit
PB: predicated region body
PF: predicated region fallthrough
CT: control target
= control target key end

     0   :  { %12 = vsyncpa [#allocation3], 0  ;;  %s8975_s0 = inlined_call_operand.vmem [shape: f32[2,6,384], index: 0, kind: input, shape index: {}]   ;;  %s8976_s1 = inlined_call_operand.vmem [shape: bf16[64,6], index: 1, kind: input, shape index: {}]   ;;  %s8977_s2 = inlined_call_operand.vmem [shape: f32[64,1], index: 2, kind: input, shape index: {}]   ;;  %s8978_s3 = inlined_call_operand.vmem [shape: bf16[128,64], index: 3, kind: input, shape index: {}]   ;;  %s8979_s4 = inlined_call_operand.vmem [shape: f32[128,1], index: 4, kind: input, shape index: {}]   ;;  %s8980_s5 = inlined_call_operand.hbm [shape: bf16[1024,128], index: 5, kind: input, shape index: {}]   ;;  %s8981_s6 = inlined_call_operand.vmem [shape: f32[1024,1], index: 6, kind: input, shape index: {}]   ;;  %s8982_s7 = inlined_call_operand.hbm [shape: bf16[2,1024,384], index: 7, kind: output, shape index: {}]  }
   0x1   :  { %13 = vsyncpa [#allocation4], 0 }
   0x2   :  { %15 = vsyncpa [#allocation4 + $0x1], 0  ;;  %s6672_s24 = smov 0   ;;  %s6674_s25 = smov 0  }
   0x3   :  { %s6676_s26 = smov 0   ;;  %s6678_s27 = smov 0  }
   0x4   :  { %s6680_s28 = smov 0   ;;  %s6682_s29 = smov 0  }
   0x5 LB: > { %s5401_s30 = sadd.s32 4294967295, %s6623_s29   ;;  %s5402_s8 = sadd.s32 4294967294, %s6623_s29   ;;  %s6623_s29 = sphi %s6682_s29, %s21_s29   ;;  %s6619_s28 = sphi %s6680_s28, %s9140_s28   ;;  %s6615_s27 = sphi %s6678_s27, %s9139_s27   ;;  %s6611_s26 = sphi %s6676_s26, %s9138_s26   ;;  %s6607_s25 = sphi %s6674_s25, %s9137_s25   ;;  %s6603_s24 = sphi %s6672_s24, %s9136_s24  }
   0x6   : > { %s33_s9 = sadd.s32 1, %s6619_s28  ;;  %s196_s10 = sadd.s32 1, %s6611_s26 }
   0x7   : > { %p35_p0 = scmp.ge.s32.totalorder %s33_s9, 2  ;;  %p206_p1 = scmp.ne.s32.totalorder %s6611_s26, %s6607_s25 }
   0x8   : > { %p207_p2 = scmp.eq.s32.totalorder %s5401_s30, 1  ;;  %p212_p3 = scmp.ne.s32.totalorder %s6607_s25, %s6603_s24 }
   0x9   : > { %s9142_s9 = smov (%p35_p0, %s33_s9), 0  ;;  %p213_p5 = scmp.eq.s32.totalorder %s5402_s8, 1 }
   0xa   : > { %p6712_p4 = por %p207_p2, %p206_p1  ;;  %s191_s12 = ssub.s32 %s6619_s28, %s9142_s9 }
   0xb   : > { %p5403_p6 = scmp.ge.s32.totalorder %s6623_s29, 1  ;;  %p194_p7 = scmp.eq.s32.totalorder %s191_s12, 0 }
   0xc   : > { %p6719_p8 = por %p213_p5, %p212_p3  ;;  %p220_p9 = scmp.lt.s32.totalorder %s6623_s29, 3 }
   0xd   : > { %s6725_s14 = scalar_select %p194_p7, %s6611_s26, %s196_s10  }
   0xe   : > { %p6727_p10 = pnand %p5403_p6, %p220_p9  ;;  %p6731_p11 = scmp.eq.s32.totalorder %s5401_s30, 0 }
   0xf   : > { %s6625_s17 = smov [#allocation2]  }
  0x10   : > { %p6374_p12 = pneg %p6727_p10  ;;  %s244_s18 = sshll.u32 %s6625_s17, 4  ;;  %s245_s18 = int_to_ptr.vmem [resolvable:$true] %s244_s18 }
  0x11   : > { %s6528_s19 = scalar_lea.vmem %s245_s18, 8192  ;;  %p6536_p5 = scmp.lt.s32.totalorder %s245_s18, %s245_s18 }
  0x12   : > { %p6375_p13 = pnand %p6731_p11, %p6374_p12  ;;  %p6529_p1 = scmp.ne.s32.totalorder %s245_s18, %s6528_s19 }
  0x13   : > { %p6537_p6 = scmp.lt.s32.totalorder %s6528_s19, %s6528_s19 }
  0x14   : > { %p6519_p0 = pneg %p6375_p13 }
  0x15   : > { %p6538_p7 = por %p6537_p6, %p6536_p5 }
  0x16   : > { %p6531_p2 = pnand %p6529_p1, %p6519_p0 }
  0x18   : > { %p6532_p3 = pneg %p6531_p2 }
  0x1a   : > { %p6539_p9 = pnand %p6538_p7, %p6532_p3 }
  0x1c   : > { %6542 = shalt.err (!%p6539_p9)
}
  0x1d   : > { %s6626_s20 = smov 64   ;;  %s6627_s21 = smov 4  }
  0x1e   : > { %6377 = dma.hbm_to_vmem [thread:$0]  (!%p6375_p13), %s8980_s5, 8192, %s245_s18, [#allocation3], %s6626_s20, %s6626_s20, %s6627_s21  }
  0x1f   : > { %276 = sbr.rel (%p6727_p10) target bundleno = 1182 (0x49e), region = 48 }
  0x24   : > { %6594 = dma.done.wait (%p6731_p11), [#allocation3], 8192  }
  0x25   : > { %6596 = vsyncadd (%p6731_p11), [#allocation3], 4294959104  ;;  %p313_p12 = scmp.lt.s32.totalorder %s6615_s27, 1  ;;  %v8983_v0 = vmov 0   ;;  %v344_v1 = vld [vmem:[%s8977_s2 + $0x30] sm:$0xff]  ;;  %v342_v2 = vld [vmem:[%s8977_s2 + $0x20] sm:$0xff] }
  0x26   : > { %6440 = vset.pattern.permute.xlu1 %v8983_v0  ;;  %6439 = vset.pattern.permute.xlu0 %v8983_v0  ;;  %vm419_vm0 = vcmask 1042432   ;;  %v345_v7 = vld [vmem:[%s8977_s2 + $0x38] sm:$0xff]  ;;  %v343_v10 = vld [vmem:[%s8977_s2 + $0x28] sm:$0xff]  ;;  %v6441_v11 = vld [vmem:[%s8976_s1] sm:$0xff]   ;;  %vm406_vm1 = vcmask 48128   ;;  %vm755_vm2 = vcmask 523264  }
  0x27   : > { %s314_s30 = scalar_select %p313_p12, %s6615_s27, 1  ;;  %461 = vmatprep.mubr.bf16.mxu0 %v8983_v0  ;;  %378 = vperm.xlu0 %6439, %v344_v1   ;;  %v6442_v14 = vld [vmem:[%s8976_s1 + $0x8] sm:$0xff]   ;;  %v6443_v15 = vld [vmem:[%s8976_s1 + $0x10] sm:$0xff]   ;;  %v341_v16 = vld [vmem:[%s8977_s2 + $0x18] sm:$0xff] }
  0x28   : > { %368 = vperm.xlu1 %6440, %v342_v2   ;;  %6140 = vmatprep.mubr.msk.bf16.mxu1 %vm406_vm1, %v6441_v11  ;;  %v340_v17 = vld [vmem:[%s8977_s2 + $0x10] sm:$0xff]  ;;  %v339_v18 = vld [vmem:[%s8977_s2 + $0x8] sm:$0xff]  ;;  %v338_v19 = vld [vmem:[%s8977_s2] sm:$0xff]  ;;  %s309_s19 = sand.u32 1, %s6607_s25   ;;  %s6367_s22 = smul.u32 24576, %s6615_s27 }
  0x29   : > { %s6366_s8 = smul.u32 24, %s314_s30  ;;  %v6444_v20 = vld [vmem:[%s8976_s1 + $0x18] sm:$0xff]   ;;  %v633_v22 = vld [vmem:[%s8979_s4 + $0x70] sm:$0xff]  ;;  %v632_v23 = vld [vmem:[%s8979_s4 + $0x68] sm:$0xff]  ;;  %s8930_s27 = scalar_lea.sflag [#allocation4], %s309_s19 }
  0x2a   : > { %v634_v21 = vld [vmem:[%s8979_s4 + $0x78] sm:$0xff]  ;;  %v631_v24 = vld [vmem:[%s8979_s4 + $0x60] sm:$0xff]  ;;  %v629_v26 = vld [vmem:[%s8979_s4 + $0x50] sm:$0xff]  ;;  %s6365_s20 = smul.u32 1536, %s309_s19  ;;  %s8922_s10 = scalar_lea.hbm %s8982_s7, %s6367_s22 }
  0x2b   : > { %s320_s15 = scalar_lea.vmem %s8975_s0, %s6366_s8  ;;  %383 = vperm.xlu0 %6439, %v345_v7   ;;  %v630_v25 = vld [vmem:[%s8979_s4 + $0x58] sm:$0xff]  ;;  %v628_v27 = vld [vmem:[%s8979_s4 + $0x48] sm:$0xff]  ;;  %v627_v28 = vld [vmem:[%s8979_s4 + $0x40] sm:$0xff] }
  0x2c   : > { %v325_v3 = vld [vmem:[%s320_s15 + $0x8] sm:$0x3f]  ;;  %v326_v5 = vld [vmem:[%s320_s15 + $0x10] sm:$0x3f]  ;;  %v324_v6 = vld [vmem:[%s320_s15] sm:$0x3f]  ;;  %373 = vperm.xlu1 %6440, %v343_v10  }
  0x2d   : > { %v328_v4 = vpack.c.bf16 %v325_v3, %v325_v3  ;;  %v329_v8 = vpack.c.bf16 %v326_v5, %v326_v5  ;;  %v327_v9 = vpack.c.bf16 %v324_v6, %v324_v6  ;;  %v626_v29 = vld [vmem:[%s8979_s4 + $0x38] sm:$0xff]  ;;  %v625_v30 = vld [vmem:[%s8979_s4 + $0x30] sm:$0xff]  ;;  %v624_v31 = vld [vmem:[%s8979_s4 + $0x28] sm:$0xff]  ;;  %s7887_s21 = scalar_lea.vmem [#allocation5], %s6365_s20  ;;  %s6629_s15 = smov [#allocation5]  }
  0x2e   : > { %v623_v32 = vld [vmem:[%s8979_s4 + $0x20] sm:$0xff]  ;;  %v622_v33 = vld [vmem:[%s8979_s4 + $0x18] sm:$0xff]  ;;  %v621_v34 = vld [vmem:[%s8979_s4 + $0x10] sm:$0xff]  ;;  %s5310_s23 = sshll.u32 %s7887_s21, 4  ;;  %s6547_s17 = sshll.u32 %s6629_s15, 4  ;;  %s8924_s23 = int_to_ptr.vmem [resolvable:$true] %s5310_s23  ;;  %s6548_s17 = int_to_ptr.vmem [resolvable:$false] %s6547_s17 }
  0x2f   : > { %5413 = vmatprep.subr.msk.bf16.mxu0 %vm419_vm0, %v328_v4  ;;  %6364 = vmatprep.subr.msk.bf16.mxu1 %vm419_vm0, %v329_v8  ;;  %v421_v12 = vsel %vm419_vm0, %v327_v9, 0  ;;  %v427_v13 = vsel %vm419_vm0, %v329_v8, 0  ;;  %v620_v35 = vld [vmem:[%s8979_s4 + $0x8] sm:$0xff]  ;;  %v619_v36 = vld [vmem:[%s8979_s4] sm:$0xff]  ;;  %v1097_v39 = vld [vmem:[%s8981_s6 + $0x18] sm:$0xff]  ;;  %s6543_s12 = scalar_lea.vmem %s8924_s23, 24576  ;;  %p6550_p0 = scmp.lt.s32.totalorder %s8924_s23, %s6548_s17 }
  0x30   : > { %444 = vmatpush1.bf16.msra.mxu0 %v421_v12  ;;  %6139 = vmatpush3.bf16.msra.mxu1 %v427_v13  ;;  %v1095_v37 = vld [vmem:[%s8981_s6 + $0x8] sm:$0xff]  ;;  %v1094_v38 = vld [vmem:[%s8981_s6] sm:$0xff]  ;;  %v1096_v40 = vld [vmem:[%s8981_s6 + $0x10] sm:$0xff]  ;;  %p6544_p10 = scmp.ne.s32.totalorder %s8924_s23, %s6543_s12  ;;  %s6549_s18 = scalar_lea.vmem %s6548_s17, 49152 }
  0x31   : > { %363 = vperm.xlu1 %6440, %v341_v16   ;;  %358 = vperm.xlu0 %6439, %v340_v17   ;;  %v1099_v41 = vld [vmem:[%s8981_s6 + $0x28] sm:$0xff]  ;;  %v1098_v42 = vld [vmem:[%s8981_s6 + $0x20] sm:$0xff]  ;;  %v1101_v43 = vld [vmem:[%s8981_s6 + $0x38] sm:$0xff]  ;;  %p6551_p1 = scmp.lt.s32.totalorder %s6549_s18, %s6543_s12 }
  0x32   : > { %v1100_v44 = vld [vmem:[%s8981_s6 + $0x30] sm:$0xff]  ;;  %v1103_v45 = vld [vmem:[%s8981_s6 + $0x48] sm:$0xff]  ;;  %v1102_v46 = vld [vmem:[%s8981_s6 + $0x40] sm:$0xff]  ;;  %p6545_p11 = pnand %p6544_p10, %p6712_p4 }
  0x33   : > { %5414 = vmatmul.mubr.msk.bf16.vlgmr.msra.gmra.mxu0 %vm406_vm1, %v6441_v11  ;;  %6141 = vmatmul.mubr.msk.bf16.vlgmr.msra.gmra.mxu1 %vm406_vm1, %v6442_v14  ;;  %v1105_v47 = vld [vmem:[%s8981_s6 + $0x58] sm:$0xff]  ;;  %v1104_v48 = vld [vmem:[%s8981_s6 + $0x50] sm:$0xff]  ;;  %v1107_v49 = vld [vmem:[%s8981_s6 + $0x68] sm:$0xff]  ;;  %p6552_p2 = por %p6551_p1, %p6550_p0 }
  0x34   : > { %471 = vmatprep.mubr.bf16.mxu0 %v8983_v0  ;;  %6144 = vmatprep.mubr.msk.bf16.mxu1 %vm406_vm1, %v6443_v15  ;;  %v1106_v50 = vld [vmem:[%s8981_s6 + $0x60] sm:$0xff]  ;;  %v1109_v51 = vld [vmem:[%s8981_s6 + $0x78] sm:$0xff]  ;;  %v1108_v52 = vld [vmem:[%s8981_s6 + $0x70] sm:$0xff]  ;;  %p6546_p13 = pneg %p6545_p11 }
  0x35   : > { %353 = vperm.xlu1 %6440, %v339_v18   ;;  %348 = vperm.xlu0 %6439, %v338_v19   ;;  %v1111_v53 = vld [vmem:[%s8981_s6 + $0x88] sm:$0xff]  ;;  %v1110_v54 = vld [vmem:[%s8981_s6 + $0x80] sm:$0xff]  ;;  %v1113_v55 = vld [vmem:[%s8981_s6 + $0x98] sm:$0xff] }
  0x36   : > { %v1112_v56 = vld [vmem:[%s8981_s6 + $0x90] sm:$0xff]  ;;  %v1115_v57 = vld [vmem:[%s8981_s6 + $0xa8] sm:$0xff]  ;;  %v1114_v58 = vld [vmem:[%s8981_s6 + $0xa0] sm:$0xff]  ;;  %p6553_p3 = pnand %p6552_p2, %p6546_p13 }
  0x37   : > { %v1117_v59 = vld [vmem:[%s8981_s6 + $0xb8] sm:$0xff]  ;;  %v1116_v60 = vld [vmem:[%s8981_s6 + $0xb0] sm:$0xff]  ;;  %v1119_v61 = vld [vmem:[%s8981_s6 + $0xc8] sm:$0xff] }
  0x38   : > { %v1118_v62 = vld [vmem:[%s8981_s6 + $0xc0] sm:$0xff]  ;;  %v1121_v63 = vld [vmem:[%s8981_s6 + $0xd8] sm:$0xff]  ;;  %v1120_v1 = vld [vmem:[%s8981_s6 + $0xd0] sm:$0xff] }
  0x39   : > { %712 = vperm.xlu1 %6440, %v634_v21   ;;  %707 = vperm.xlu0 %6439, %v633_v22   ;;  %v1123_v2 = vld [vmem:[%s8981_s6 + $0xe8] sm:$0xff]  ;;  %v1122_v3 = vld [vmem:[%s8981_s6 + $0xe0] sm:$0xff]  ;;  %v1125_v5 = vld [vmem:[%s8981_s6 + $0xf8] sm:$0xff] }
  0x3a   : > { %v6945_v4 = vld [vmem:[%s8978_s3] sm:$0xff]   ;;  %v1124_v6 = vld [vmem:[%s8981_s6 + $0xf0] sm:$0xff]  ;;  %v2153_v7 = vld [vmem:[%s8981_s6 + $0x108] sm:$0xff] }
  0x3b   : > { %5415 = vmatmul.mubr.msk.bf16.gmra.mxu0 %vm406_vm1, %v6442_v14  ;;  %6145 = vmatmul.mubr.msk.bf16.gmra.mxu1 %vm406_vm1, %v6444_v20  ;;  %v2152_v8 = vld [vmem:[%s8981_s6 + $0x100] sm:$0xff]  ;;  %v2155_v9 = vld [vmem:[%s8981_s6 + $0x118] sm:$0xff]  ;;  %v2154_v10 = vld [vmem:[%s8981_s6 + $0x110] sm:$0xff] }
  0x3c   : > { %481 = vmatprep.mubr.bf16.mxu0 %v8983_v0  ;;  %812 = vmatprep.mubr.bf16.mxu1 %v8983_v0  ;;  %v2157_v11 = vld [vmem:[%s8981_s6 + $0x128] sm:$0xff]  ;;  %v2156_v12 = vld [vmem:[%s8981_s6 + $0x120] sm:$0xff]  ;;  %v2159_v13 = vld [vmem:[%s8981_s6 + $0x138] sm:$0xff] }
  0x3d   : > { %702 = vperm.xlu1 %6440, %v632_v23   ;;  %697 = vperm.xlu0 %6439, %v631_v24   ;;  %v2158_v14 = vld [vmem:[%s8981_s6 + $0x130] sm:$0xff]  ;;  %v2160_v16 = vld [vmem:[%s8981_s6 + $0x140] sm:$0xff]  ;;  %v2163_v17 = vld [vmem:[%s8981_s6 + $0x158] sm:$0xff] }
  0x3e   : > { %v2162_v18 = vld [vmem:[%s8981_s6 + $0x150] sm:$0xff]  ;;  %v2165_v19 = vld [vmem:[%s8981_s6 + $0x168] sm:$0xff]  ;;  %v2167_v21 = vld [vmem:[%s8981_s6 + $0x178] sm:$0xff] }
  0x3f   : > { %v2166_v22 = vld [vmem:[%s8981_s6 + $0x170] sm:$0xff]  ;;  %v2169_v23 = vld [vmem:[%s8981_s6 + $0x188] sm:$0xff]  ;;  %v2168_v24 = vld [vmem:[%s8981_s6 + $0x180] sm:$0xff] }
  0x41   : > { %692 = vperm.xlu1 %6440, %v630_v25   ;;  %687 = vperm.xlu0 %6439, %v629_v26  }
  0x43   : > { %5416 = vmatmul.mubr.msk.bf16.gmra.mxu0 %vm406_vm1, %v6443_v15  ;;  %v2161_v15 = vld [vmem:[%s8981_s6 + $0x148] sm:$0xff] }
  0x44   : > { %491 = vmatprep.mubr.bf16.mxu0 %v8983_v0 }
  0x45   : > { %682 = vperm.xlu1 %6440, %v628_v27   ;;  %677 = vperm.xlu0 %6439, %v627_v28   ;;  %v2171_v27 = vld [vmem:[%s8981_s6 + $0x198] sm:$0xff]  ;;  %v2170_v28 = vld [vmem:[%s8981_s6 + $0x190] sm:$0xff] }
  0x49   : > { %672 = vperm.xlu1 %6440, %v626_v29   ;;  %667 = vperm.xlu0 %6439, %v625_v30   ;;  %v2173_v30 = vld [vmem:[%s8981_s6 + $0x1a8] sm:$0xff] }
  0x4b   : > { %5417 = vmatmul.mubr.msk.bf16.gmra.mxu0 %vm406_vm1, %v6444_v20  ;;  %v2164_v20 = vld [vmem:[%s8981_s6 + $0x160] sm:$0xff] }
  0x4c   : > { %6156 = vmatprep.mubr.msk.bf16.mxu0 %vm755_vm2, %v6945_v4 }
  0x4d   : > { %662 = vperm.xlu1 %6440, %v624_v31   ;;  %657 = vperm.xlu0 %6439, %v623_v32   ;;  %v2172_v31 = vld [vmem:[%s8981_s6 + $0x1a0] sm:$0xff] }
  0x51   : > { %652 = vperm.xlu1 %6440, %v622_v33   ;;  %647 = vperm.xlu0 %6439, %v621_v34   ;;  %v2175_v33 = vld [vmem:[%s8981_s6 + $0x1b8] sm:$0xff]  ;;  %v2174_v34 = vld [vmem:[%s8981_s6 + $0x1b0] sm:$0xff] }
  0x55   : > { %642 = vperm.xlu1 %6440, %v620_v35   ;;  %637 = vperm.xlu0 %6439, %v619_v36  }
  0x59   : > { %1133 = vperm.xlu1 %6440, %v1095_v37   ;;  %1128 = vperm.xlu0 %6439, %v1094_v38   ;;  %v2177_v37 = vld [vmem:[%s8981_s6 + $0x1c8] sm:$0xff]  ;;  %v2176_v38 = vld [vmem:[%s8981_s6 + $0x1c0] sm:$0xff] }
  0x5d   : > { %1143 = vperm.xlu1 %6440, %v1097_v39   ;;  %1138 = vperm.xlu0 %6439, %v1096_v40   ;;  %v2179_v40 = vld [vmem:[%s8981_s6 + $0x1d8] sm:$0xff] }
  0x61   : > { %1153 = vperm.xlu1 %6440, %v1099_v41   ;;  %1148 = vperm.xlu0 %6439, %v1098_v42   ;;  %v2178_v41 = vld [vmem:[%s8981_s6 + $0x1d0] sm:$0xff] }
  0x65   : > { %1163 = vperm.xlu1 %6440, %v1101_v43   ;;  %1158 = vperm.xlu0 %6439, %v1100_v44   ;;  %v2181_v43 = vld [vmem:[%s8981_s6 + $0x1e8] sm:$0xff]  ;;  %v2180_v44 = vld [vmem:[%s8981_s6 + $0x1e0] sm:$0xff] }
  0x69   : > { %1173 = vperm.xlu1 %6440, %v1103_v45   ;;  %1168 = vperm.xlu0 %6439, %v1102_v46  }
  0x6d   : > { %1183 = vperm.xlu1 %6440, %v1105_v47   ;;  %1178 = vperm.xlu0 %6439, %v1104_v48   ;;  %v2183_v47 = vld [vmem:[%s8981_s6 + $0x1f8] sm:$0xff]  ;;  %v2182_v48 = vld [vmem:[%s8981_s6 + $0x1f0] sm:$0xff] }
  0x71   : > { %1193 = vperm.xlu1 %6440, %v1107_v49   ;;  %1188 = vperm.xlu0 %6439, %v1106_v50   ;;  %v3211_v50 = vld [vmem:[%s8981_s6 + $0x208] sm:$0xff] }
  0x75   : > { %1203 = vperm.xlu1 %6440, %v1109_v51   ;;  %1198 = vperm.xlu0 %6439, %v1108_v52   ;;  %v3210_v51 = vld [vmem:[%s8981_s6 + $0x200] sm:$0xff] }
  0x79   : > { %1213 = vperm.xlu1 %6440, %v1111_v53   ;;  %1208 = vperm.xlu0 %6439, %v1110_v54   ;;  %v3213_v53 = vld [vmem:[%s8981_s6 + $0x218] sm:$0xff]  ;;  %v3212_v54 = vld [vmem:[%s8981_s6 + $0x210] sm:$0xff] }
  0x7d   : > { %1223 = vperm.xlu1 %6440, %v1113_v55   ;;  %1218 = vperm.xlu0 %6439, %v1112_v56  }
  0x81   : > { %1233 = vperm.xlu1 %6440, %v1115_v57   ;;  %1228 = vperm.xlu0 %6439, %v1114_v58   ;;  %v3215_v57 = vld [vmem:[%s8981_s6 + $0x228] sm:$0xff]  ;;  %v3214_v58 = vld [vmem:[%s8981_s6 + $0x220] sm:$0xff] }
  0x85   : > { %1243 = vperm.xlu1 %6440, %v1117_v59   ;;  %1238 = vperm.xlu0 %6439, %v1116_v60   ;;  %v3217_v60 = vld [vmem:[%s8981_s6 + $0x238] sm:$0xff] }
  0x89   : > { %1253 = vperm.xlu1 %6440, %v1119_v61   ;;  %1248 = vperm.xlu0 %6439, %v1118_v62   ;;  %v3216_v61 = vld [vmem:[%s8981_s6 + $0x230] sm:$0xff] }
  0x8d   : > { %1263 = vperm.xlu1 %6440, %v1121_v63   ;;  %1258 = vperm.xlu0 %6439, %v1120_v1   ;;  %v3219_v63 = vld [vmem:[%s8981_s6 + $0x248] sm:$0xff]  ;;  %v3218_v1 = vld [vmem:[%s8981_s6 + $0x240] sm:$0xff] }
  0x91   : > { %1273 = vperm.xlu1 %6440, %v1123_v2   ;;  %1268 = vperm.xlu0 %6439, %v1122_v3  }
  0x95   : > { %1283 = vperm.xlu1 %6440, %v1125_v5   ;;  %1278 = vperm.xlu0 %6439, %v1124_v6   ;;  %v3221_v5 = vld [vmem:[%s8981_s6 + $0x258] sm:$0xff]  ;;  %v3220_v6 = vld [vmem:[%s8981_s6 + $0x250] sm:$0xff] }
  0x99   : > { %2191 = vperm.xlu1 %6440, %v2153_v7   ;;  %2186 = vperm.xlu0 %6439, %v2152_v8   ;;  %v3223_v8 = vld [vmem:[%s8981_s6 + $0x268] sm:$0xff] }
  0x9d   : > { %2201 = vperm.xlu1 %6440, %v2155_v9   ;;  %2196 = vperm.xlu0 %6439, %v2154_v10   ;;  %v3222_v9 = vld [vmem:[%s8981_s6 + $0x260] sm:$0xff] }
  0xa1   : > { %2211 = vperm.xlu1 %6440, %v2157_v11   ;;  %2206 = vperm.xlu0 %6439, %v2156_v12  }
  0xa2   : > { %v7011_v26 = vpop.permute.xlu0 %378 }
  0xa3   : > { %v7009_v25 = vpop.permute.xlu1 %368 }
  0xa5   : > { %2221 = vperm.xlu1 %6440, %v2159_v13   ;;  %2216 = vperm.xlu0 %6439, %v2158_v14  }
  0xa6   : > { %v7027_v32 = vpop.permute.xlu0 %383 }
  0xa7   : > { %v7019_v29 = vpop.permute.xlu1 %373 }
  0xa9   : > { %2231 = vperm.xlu1 %6440, %v2161_v15   ;;  %2226 = vperm.xlu0 %6439, %v2160_v16   ;;  %v3225_v15 = vld [vmem:[%s8981_s6 + $0x278] sm:$0xff]  ;;  %v3224_v16 = vld [vmem:[%s8981_s6 + $0x270] sm:$0xff] }
  0xac   : > { %v7035_v35 = vpop.permute.xlu1 %363  ;;  %v7037_v36 = vpop.permute.xlu0 %358 }
  0xad   : > { %2241 = vperm.xlu1 %6440, %v2163_v17   ;;  %2236 = vperm.xlu0 %6439, %v2162_v18  }
  0xb0   : > { %v7045_v39 = vpop.permute.xlu1 %353  ;;  %v7053_v42 = vpop.permute.xlu0 %348 }
  0xb1   : > { %2251 = vperm.xlu1 %6440, %v2165_v19   ;;  %2246 = vperm.xlu0 %6439, %v2164_v20  }
  0xb4   : > { %v7061_v45 = vpop.permute.xlu1 %712  ;;  %v7063_v46 = vpop.permute.xlu0 %707 }
  0xb5   : > { %2261 = vperm.xlu1 %6440, %v2167_v21   ;;  %2256 = vperm.xlu0 %6439, %v2166_v22  }
  0xb8   : > { %v7071_v49 = vpop.permute.xlu1 %702  ;;  %v7079_v52 = vpop.permute.xlu0 %697 }
  0xb9   : > { %2271 = vperm.xlu1 %6440, %v2169_v23   ;;  %2266 = vperm.xlu0 %6439, %v2168_v24   ;;  %v3227_v23 = vld [vmem:[%s8981_s6 + $0x288] sm:$0xff]  ;;  %v3226_v24 = vld [vmem:[%s8981_s6 + $0x280] sm:$0xff] }
  0xbc   : > { %v7087_v55 = vpop.permute.xlu1 %692  ;;  %v7089_v56 = vpop.permute.xlu0 %687 }
  0xbd   : > { %2281 = vperm.xlu1 %6440, %v2171_v27   ;;  %2276 = vperm.xlu0 %6439, %v2170_v28  }
  0xc0   : > { %v7097_v59 = vpop.permute.xlu1 %682  ;;  %v7105_v62 = vpop.permute.xlu0 %677 }
  0xc1   : > { %2291 = vperm.xlu1 %6440, %v2173_v30   ;;  %2286 = vperm.xlu0 %6439, %v2172_v31  }
  0xc4   : > { %v7113_v2 = vpop.permute.xlu1 %672  ;;  %v7115_v3 = vpop.permute.xlu0 %667 }
  0xc5   : > { %2301 = vperm.xlu1 %6440, %v2175_v33   ;;  %2296 = vperm.xlu0 %6439, %v2174_v34  }
  0xc8   : > { %v7123_v7 = vpop.permute.xlu1 %662  ;;  %v7133_v12 = vpop.permute.xlu0 %657 }
  0xc9   : > { %2311 = vperm.xlu1 %6440, %v2177_v37   ;;  %2306 = vperm.xlu0 %6439, %v2176_v38   ;;  %v3229_v37 = vld [vmem:[%s8981_s6 + $0x298] sm:$0xff]  ;;  %v3228_v38 = vld [vmem:[%s8981_s6 + $0x290] sm:$0xff] }
  0xcc   : > { %v7145_v19 = vpop.permute.xlu1 %652  ;;  %v7149_v22 = vpop.permute.xlu0 %647 }
  0xcd   : > { %2321 = vperm.xlu1 %6440, %v2179_v40   ;;  %2316 = vperm.xlu0 %6439, %v2178_v41  }
  0xd0   : > { %v7162_v34 = vpop.permute.xlu1 %642 }
  0xd1   : > { %2331 = vperm.xlu1 %6440, %v2181_v43   ;;  %2326 = vperm.xlu0 %6439, %v2180_v44  }
  0xd5   : > { %2341 = vperm.xlu1 %6440, %v2183_v47   ;;  %2336 = vperm.xlu0 %6439, %v2182_v48   ;;  %v7174_v47 = vpop.permute.xlu0 %637 }
  0xd9   : > { %3249 = vperm.xlu1 %6440, %v3211_v50   ;;  %3244 = vperm.xlu0 %6439, %v3210_v51  }
  0xdd   : > { %3259 = vperm.xlu1 %6440, %v3213_v53   ;;  %3254 = vperm.xlu0 %6439, %v3212_v54  }
  0xe1   : > { %3269 = vperm.xlu1 %6440, %v3215_v57   ;;  %3264 = vperm.xlu0 %6439, %v3214_v58  }
  0xe5   : > { %3279 = vperm.xlu1 %6440, %v3217_v60   ;;  %3274 = vperm.xlu0 %6439, %v3216_v61   ;;  %v3231_v60 = vld [vmem:[%s8981_s6 + $0x2a8] sm:$0xff]  ;;  %v3230_v61 = vld [vmem:[%s8981_s6 + $0x2a0] sm:$0xff] }
  0xe9   : > { %3289 = vperm.xlu1 %6440, %v3219_v63   ;;  %3284 = vperm.xlu0 %6439, %v3218_v1  }
  0xed   : > { %3299 = vperm.xlu1 %6440, %v3221_v5   ;;  %3294 = vperm.xlu0 %6439, %v3220_v6  }
  0xf1   : > { %3309 = vperm.xlu1 %6440, %v3223_v8   ;;  %3304 = vperm.xlu0 %6439, %v3222_v9  }
  0xf3   : > { %v7131_v10 = vpop.f32.mrf.mxu0  ;;  %v6142_v11 = vpop.f32.mrf.mxu1 }
  0xf4   : > { %v545_v40 = vadd.f32 %v6142_v11, %v7037_v36 }
  0xf5   : > { %v7135_v13 = vpop.f32.mrf.mxu0  ;;  %v536_v14 = vpop.f32.mrf.mxu1  ;;  %3319 = vperm.xlu1 %6440, %v3225_v15   ;;  %3314 = vperm.xlu0 %6439, %v3224_v16  }
  0xf6   : > { %v575_v63 = vmax.f32 %v545_v40, 0.0  ;;  %v537_v6 = vadd.f32 %v536_v14, %v7053_v42  ;;  %v7191_v15 = vpop.permute.xlu1 %1133  ;;  %v3232_v14 = vld [vmem:[%s8981_s6 + $0x2b0] sm:$0xff]  ;;  %v3235_v40 = vld [vmem:[%s8981_s6 + $0x2c8] sm:$0xff] }
  0xf7   : > { %v7143_v17 = vpop.f32.mrf.mxu0  ;;  %v6143_v18 = vpop.f32.mrf.mxu1  ;;  %9041 = vst [vmem:[#allocation8_spill] sm:$0xff] %v7191_v15 }
  0xf8   : > { %v548_v48 = vadd.f32 %v6143_v18, %v7035_v35 }
  0xf9   : > { %v7147_v20 = vpop.f32.mrf.mxu0  ;;  %v539_v21 = vpop.f32.mrf.mxu1  ;;  %3329 = vperm.xlu1 %6440, %v3227_v23   ;;  %3324 = vperm.xlu0 %6439, %v3226_v24   ;;  %v3233_v24 = vld [vmem:[%s8981_s6 + $0x2b8] sm:$0xff] }
  0xfa   : > { %v578_v8 = vmax.f32 %v548_v48, 0.0  ;;  %v540_v9 = vadd.f32 %v539_v21, %v7045_v39  ;;  %v7193_v23 = vpop.permute.xlu0 %1128 }
  0xfb   : > { %v7157_v27 = vpop.f32.mrf.mxu0  ;;  %v6146_v28 = vpop.f32.mrf.mxu1  ;;  %9042 = vst [vmem:[#allocation9_spill] sm:$0xff] %v7193_v23  ;;  %v7596_v23 = vld [vmem:[#allocation2 + $0x30] sm:$0xff]  }
  0xfc   : > { %v561_v30 = vadd.f32 %v6146_v28, %v7011_v26 }
  0xfd   : > { %v7160_v31 = vpop.f32.mrf.mxu0  ;;  %v552_v33 = vpop.f32.mrf.mxu1  ;;  %3339 = vperm.xlu1 %6440, %v3229_v37   ;;  %3334 = vperm.xlu0 %6439, %v3228_v38   ;;  %v572_v37 = vmax.f32 %v540_v9, 0.0 }
  0xfe   : > { %v553_v41 = vadd.f32 %v552_v33, %v7009_v25  ;;  %v587_v50 = vmax.f32 %v561_v30, 0.0  ;;  %v569_v30 = vmax.f32 %v537_v6, 0.0  ;;  %v596_v33 = vpack.c.bf16 %v578_v8, %v575_v63 }
  0xff   : > { %v7172_v43 = vpop.f32.mrf.mxu0  ;;  %v6147_v44 = vpop.f32.mrf.mxu1 }
 0x100   : > { %v564_v51 = vadd.f32 %v6147_v44, %v7027_v32  ;;  %v581_v1 = vmax.f32 %v553_v41, 0.0  ;;  %v3234_v41 = vld [vmem:[%s8981_s6 + $0x2c0] sm:$0xff]  ;;  %v7207_v44 = vpop.permute.xlu1 %1143 }
 0x101   : > { %v7178_v53 = vpop.f32.mrf.mxu0  ;;  %v555_v54 = vpop.f32.mrf.mxu1  ;;  %3349 = vperm.xlu1 %6440, %v3231_v60   ;;  %3344 = vperm.xlu0 %6439, %v3230_v61   ;;  %9043 = vst [vmem:[#allocation10_spill] sm:$0xff] %v7207_v44 }
 0x102   : > { %v590_v57 = vmax.f32 %v564_v51, 0.0  ;;  %v556_v58 = vadd.f32 %v555_v54, %v7019_v29  ;;  %v593_v51 = vpack.c.bf16 %v572_v37, %v569_v30 }
 0x103   : > { %v7187_v5 = vpop.f32.mrf.mxu0 }
 0x104   : > { %v602_v11 = vpack.c.bf16 %v590_v57, %v587_v50  ;;  %v584_v16 = vmax.f32 %v556_v58, 0.0  ;;  %v7209_v50 = vpop.permute.xlu0 %1138  ;;  %v3237_v57 = vld [vmem:[%s8981_s6 + $0x2d8] sm:$0xff]  ;;  %v3236_v58 = vld [vmem:[%s8981_s6 + $0x2d0] sm:$0xff] }
 0x105   : > { %v485_v18 = vpop.f32.mrf.mxu0  ;;  %3359 = vperm.xlu1 %6440, %v3233_v24   ;;  %3354 = vperm.xlu0 %6439, %v3232_v14   ;;  %9044 = vst [vmem:[#allocation11_spill] sm:$0xff] %v7209_v50  ;;  %v3239_v24 = vld [vmem:[%s8981_s6 + $0x2e8] sm:$0xff]  ;;  %v3238_v14 = vld [vmem:[%s8981_s6 + $0x2e0] sm:$0xff] }
 0x106   : > { %6148 = vmatprep.subr.bf16.mxu0 %v602_v11  ;;  %v599_v21 = vpack.c.bf16 %v584_v16, %v581_v1  ;;  %v7219_v1 = vpop.permute.xlu1 %1153  ;;  %v486_v30 = vadd.f32 %v485_v18, %v7009_v25  ;;  %v484_v18 = vadd.f32 %v7187_v5, %v7009_v25  ;;  %v478_v5 = vadd.f32 %v7172_v43, %v7035_v35 }
 0x107   : > { %v487_v28 = vpop.f32.mrf.mxu0  ;;  %6149 = vmatpush3.bf16.msra.mxu0 %v602_v11  ;;  %9045 = vst [vmem:[#allocation12_spill] sm:$0xff] %v7219_v1  ;;  %v466_v43 = vadd.f32 %v7135_v13, %v7053_v42  ;;  %v464_v13 = vadd.f32 %v7131_v10, %v7053_v42 }
 0x108   : > { %6150 = vmatprep.subr.bf16.mxu0 %v599_v21  ;;  %v7222_v9 = vpop.permute.xlu0 %1148 }
 0x109   : > { %v489_v38 = vpop.f32.mrf.mxu0  ;;  %3369 = vperm.xlu1 %6440, %v3235_v40   ;;  %3364 = vperm.xlu0 %6439, %v3234_v41   ;;  %9046 = vst [vmem:[#allocation13_spill] sm:$0xff] %v7222_v9  ;;  %v480_v40 = vadd.f32 %v7178_v53, %v7035_v35  ;;  %v4268_v35 = vld [vmem:[%s8981_s6 + $0x300] sm:$0xff]  ;;  %v7591_v9 = vld [vmem:[#allocation2 + $0x28] sm:$0xff]  }
 0x10a   : > { %v490_v6 = vadd.f32 %v489_v38, %v7019_v29  ;;  %v7256_v53 = vpop.permute.xlu1 %1163 }
 0x10b   : > { %v493_v48 = vpop.f32.mrf.mxu0  ;;  %6151 = vmatpush3.bf16.msra.mxu0 %v599_v21  ;;  %v7235_v21 = vld [vmem:[%s8978_s3 + $0x8] sm:$0xff]   ;;  %9047 = vst [vmem:[#allocation14_spill] sm:$0xff] %v7256_v53 }
 0x10c   : > { %6152 = vmatprep.subr.bf16.mxu0 %v596_v33  ;;  %v494_v11 = vadd.f32 %v493_v48, %v7011_v26  ;;  %v583_v41 = vmax.f32 %v490_v6, 0.0  ;;  %v7262_v25 = vpop.permute.xlu0 %1158 }
 0x10d   : > { %v495_v54 = vpop.f32.mrf.mxu0  ;;  %3379 = vperm.xlu1 %6440, %v3237_v57   ;;  %3374 = vperm.xlu0 %6439, %v3236_v58   ;;  %v580_v57 = vmax.f32 %v486_v30, 0.0  ;;  %9048 = vst [vmem:[#allocation15_spill] sm:$0xff] %v7262_v25 }
 0x10e   : > { %v496_v61 = vadd.f32 %v495_v54, %v7011_v26  ;;  %v7241_v26 = vld [vmem:[%s8978_s3 + $0x10] sm:$0xff]   ;;  %v585_v48 = vmax.f32 %v494_v11, 0.0  ;;  %v476_v54 = vadd.f32 %v7160_v31, %v7037_v36  ;;  %v474_v31 = vadd.f32 %v7157_v27, %v7037_v36  ;;  %v4269_v11 = vld [vmem:[%s8981_s6 + $0x308] sm:$0xff]  ;;  %v7286_v36 = vld [vmem:[%s8978_s3 + $0x20] sm:$0xff]   ;;  %v7290_v30 = vpop.permute.xlu1 %1173 }
 0x10f   : > { %v497_v60 = vpop.f32.mrf.mxu0  ;;  %6153 = vmatpush3.bf16.msra.mxu0 %v596_v33  ;;  %v598_v6 = vpack.c.bf16 %v583_v41, %v580_v57  ;;  %v468_v27 = vadd.f32 %v7143_v17, %v7045_v39  ;;  %9049 = vst [vmem:[#allocation16_spill] sm:$0xff] %v7290_v30  ;;  %v4270_v17 = vld [vmem:[%s8981_s6 + $0x310] sm:$0xff]  ;;  %v7585_v30 = vld [vmem:[#allocation2 + $0x18] sm:$0xff]  }
 0x110   : > { %v498_v63 = vadd.f32 %v497_v60, %v7027_v32  ;;  %6154 = vmatprep.subr.bf16.mxu0 %v593_v51  ;;  %v586_v33 = vmax.f32 %v496_v61, 0.0  ;;  %v470_v61 = vadd.f32 %v7147_v20, %v7045_v39  ;;  %v7279_v20 = vld [vmem:[%s8978_s3 + $0x18] sm:$0xff]   ;;  %9077 = vst [vmem:[#allocation44_spill] sm:$0xff] %v7585_v30 }
 0x111   : > { %v499_v8 = vpop.f32.mrf.mxu0  ;;  %3389 = vperm.xlu1 %6440, %v3239_v24   ;;  %3384 = vperm.xlu0 %6439, %v3238_v14   ;;  %v576_v24 = vmax.f32 %v478_v5, 0.0  ;;  %v4271_v39 = vld [vmem:[%s8981_s6 + $0x318] sm:$0xff]  ;;  %v570_v41 = vmax.f32 %v468_v27, 0.0  ;;  %v4280_v27 = vld [vmem:[%s8981_s6 + $0x360] sm:$0xff] }
 0x112   : > { %v500_v16 = vadd.f32 %v499_v8, %v7027_v32  ;;  %v488_v32 = vadd.f32 %v487_v28, %v7019_v29  ;;  %v588_v37 = vmax.f32 %v498_v63, 0.0  ;;  %v3241_v29 = vld [vmem:[%s8981_s6 + $0x2f8] sm:$0xff]  ;;  %v3240_v28 = vld [vmem:[%s8981_s6 + $0x2f0] sm:$0xff]  ;;  %v577_v63 = vmax.f32 %v480_v40, 0.0 }
 0x113   : > { %6155 = vmatpush3.bf16.msra.mxu0 %v593_v51  ;;  %v579_v8 = vmax.f32 %v484_v18, 0.0  ;;  %v568_v40 = vmax.f32 %v466_v43, 0.0  ;;  %v567_v18 = vmax.f32 %v464_v13, 0.0 }
 0x114   : > { %v589_v38 = vmax.f32 %v500_v16, 0.0  ;;  %v582_v58 = vmax.f32 %v488_v32, 0.0  ;;  %v600_v60 = vpack.c.bf16 %v588_v37, %v585_v48  ;;  %v574_v16 = vmax.f32 %v476_v54, 0.0  ;;  %v7292_v37 = vpop.permute.xlu0 %1168  ;;  %v4273_v48 = vld [vmem:[%s8981_s6 + $0x328] sm:$0xff]  ;;  %v7322_v54 = vld [vmem:[%s8978_s3 + $0x30] sm:$0xff]  }
 0x115   : > { %3399 = vperm.xlu1 %6440, %v3241_v29   ;;  %3394 = vperm.xlu0 %6439, %v3240_v28   ;;  %v571_v32 = vmax.f32 %v470_v61, 0.0  ;;  %9050 = vst [vmem:[#allocation17_spill] sm:$0xff] %v7292_v37  ;;  %v7315_v29 = vld [vmem:[%s8978_s3 + $0x28] sm:$0xff]   ;;  %v7317_v28 = vpop.permute.xlu1 %1183  ;;  %v591_v5 = vpack.c.bf16 %v570_v41, %v567_v18 }
 0x116   : > { %6157 = vmatmul.mubr.msk.bf16.vlgmr.msra.gmra.mxu0 %vm755_vm2, %v7235_v21  ;;  %v601_v51 = vpack.c.bf16 %v589_v38, %v586_v33  ;;  %v597_v14 = vpack.c.bf16 %v582_v58, %v579_v8  ;;  %v595_v33 = vpack.c.bf16 %v577_v63, %v574_v16  ;;  %v573_v38 = vmax.f32 %v474_v31, 0.0  ;;  %9051 = vst [vmem:[#allocation18_spill] sm:$0xff] %v7317_v28  ;;  %v4275_v58 = vld [vmem:[%s8981_s6 + $0x338] sm:$0xff]  ;;  %v4276_v8 = vld [vmem:[%s8981_s6 + $0x340] sm:$0xff]  ;;  %v4281_v16 = vld [vmem:[%s8981_s6 + $0x368] sm:$0xff] }
 0x117   : > { %6160 = vmatprep.mubr.msk.bf16.mxu0 %vm755_vm2, %v7241_v26  ;;  %v592_v10 = vpack.c.bf16 %v571_v32, %v568_v40  ;;  %v7348_v31 = vld [vmem:[%s8978_s3 + $0x38] sm:$0xff]   ;;  %v4282_v32 = vld [vmem:[%s8981_s6 + $0x370] sm:$0xff]  ;;  %v7587_v28 = vld [vmem:[#allocation2 + $0x20] sm:$0xff]  }
 0x118   : > { %788 = vmatprep.subr.bf16.mxu1 %v601_v51  ;;  %v594_v42 = vpack.c.bf16 %v576_v24, %v573_v38  ;;  %v4272_v51 = vld [vmem:[%s8981_s6 + $0x320] sm:$0xff]  ;;  %v7324_v57 = vpop.permute.xlu0 %1178  ;;  %9078 = vst [vmem:[#allocation45_spill] sm:$0xff] %v7587_v28 }
 0x119   : > { %789 = vmatpush1.bf16.msra.mxu1 %v600_v60  ;;  %4307 = vperm.xlu1 %6440, %v4269_v11   ;;  %9052 = vst [vmem:[#allocation19_spill] sm:$0xff] %v7324_v57  ;;  %v4274_v60 = vld [vmem:[%s8981_s6 + $0x330] sm:$0xff]  ;;  %v7336_v61 = vpop.permute.xlu1 %1193  ;;  %v4284_v38 = vld [vmem:[%s8981_s6 + $0x380] sm:$0xff] }
 0x11a   : > { %790 = vmatprep.subr.bf16.mxu1 %v598_v6  ;;  %4302 = vperm.xlu0 %6439, %v4268_v35   ;;  %9053 = vst [vmem:[#allocation20_spill] sm:$0xff] %v7336_v61  ;;  %v4277_v6 = vld [vmem:[%s8981_s6 + $0x348] sm:$0xff]  ;;  %v4278_v35 = vld [vmem:[%s8981_s6 + $0x350] sm:$0xff] }
 0x11c   : > { %v7340_v63 = vpop.permute.xlu0 %1188 }
 0x11d   : > { %791 = vmatpush1.bf16.msra.mxu1 %v597_v14  ;;  %4317 = vperm.xlu1 %6440, %v4271_v39   ;;  %9054 = vst [vmem:[#allocation21_spill] sm:$0xff] %v7340_v63  ;;  %v7359_v11 = vpop.permute.xlu1 %1203 }
 0x11e   : > { %6161 = vmatmul.mubr.msk.bf16.gmra.mxu0 %vm755_vm2, %v7279_v20  ;;  %792 = vmatprep.subr.bf16.mxu1 %v595_v33  ;;  %9055 = vst [vmem:[#allocation22_spill] sm:$0xff] %v7359_v11  ;;  %v4285_v33 = vld [vmem:[%s8981_s6 + $0x388] sm:$0xff] }
 0x11f   : > { %6164 = vmatprep.mubr.msk.bf16.mxu0 %vm755_vm2, %v7286_v36  ;;  %4312 = vperm.xlu0 %6439, %v4270_v17   ;;  %v4286_v17 = vld [vmem:[%s8981_s6 + $0x390] sm:$0xff] }
 0x120   : > { %v7365_v43 = vpop.permute.xlu0 %1198 }
 0x121   : > { %793 = vmatpush1.bf16.msra.mxu1 %v594_v42  ;;  %4327 = vperm.xlu1 %6440, %v4273_v48   ;;  %9056 = vst [vmem:[#allocation23_spill] sm:$0xff] %v7365_v43  ;;  %v7376_v24 = vpop.permute.xlu1 %1213  ;;  %v4289_v42 = vld [vmem:[%s8981_s6 + $0x3a8] sm:$0xff]  ;;  %v4290_v48 = vld [vmem:[%s8981_s6 + $0x3b0] sm:$0xff] }
 0x122   : > { %794 = vmatprep.subr.bf16.mxu1 %v592_v10  ;;  %9057 = vst [vmem:[#allocation24_spill] sm:$0xff] %v7376_v24  ;;  %v4288_v10 = vld [vmem:[%s8981_s6 + $0x3a0] sm:$0xff] }
 0x123   : > { %4322 = vperm.xlu0 %6439, %v4272_v51  }
 0x124   : > { %v7378_v14 = vpop.permute.xlu0 %1208 }
 0x125   : > { %795 = vmatpush1.bf16.msra.mxu1 %v591_v5  ;;  %4337 = vperm.xlu1 %6440, %v4275_v58   ;;  %9058 = vst [vmem:[#allocation25_spill] sm:$0xff] %v7378_v14  ;;  %v7392_v13 = vpop.permute.xlu1 %1223  ;;  %v4293_v5 = vld [vmem:[%s8981_s6 + $0x3c8] sm:$0xff]  ;;  %v4292_v58 = vld [vmem:[%s8981_s6 + $0x3c0] sm:$0xff] }
 0x126   : > { %6165 = vmatmul.mubr.msk.bf16.gmra.mxu0 %vm755_vm2, %v7315_v29  ;;  %9059 = vst [vmem:[#allocation26_spill] sm:$0xff] %v7392_v13 }
 0x127   : > { %6168 = vmatprep.mubr.msk.bf16.mxu0 %vm755_vm2, %v7322_v54  ;;  %4332 = vperm.xlu0 %6439, %v4274_v60  }
 0x128   : > { %5430 = vmatmul.mubr.msk.bf16.vlgmr.msra.gmra.mxu1 %vm755_vm2, %v6945_v4  ;;  %v4279_v4 = vld [vmem:[%s8981_s6 + $0x358] sm:$0xff]  ;;  %v7397_v39 = vpop.permute.xlu0 %1218 }
 0x129   : > { %822 = vmatprep.mubr.bf16.mxu1 %v8983_v0  ;;  %4347 = vperm.xlu1 %6440, %v4277_v6   ;;  %9060 = vst [vmem:[#allocation27_spill] sm:$0xff] %v7397_v39  ;;  %v7405_v40 = vpop.permute.xlu1 %1233 }
 0x12a   : > { %9061 = vst [vmem:[#allocation28_spill] sm:$0xff] %v7405_v40 }
 0x12b   : > { %4342 = vperm.xlu0 %6439, %v4276_v8   ;;  %v4294_v8 = vld [vmem:[%s8981_s6 + $0x3d0] sm:$0xff] }
 0x12c   : > { %v7409_v41 = vpop.permute.xlu0 %1228 }
 0x12d   : > { %4357 = vperm.xlu1 %6440, %v4279_v4   ;;  %9062 = vst [vmem:[#allocation29_spill] sm:$0xff] %v7409_v41  ;;  %v7421_v18 = vpop.permute.xlu1 %1243  ;;  %v4297_v4 = vld [vmem:[%s8981_s6 + $0x3e8] sm:$0xff] }
 0x12e   : > { %6169 = vmatmul.mubr.msk.bf16.gmra.mxu0 %vm755_vm2, %v7348_v31  ;;  %9063 = vst [vmem:[#allocation30_spill] sm:$0xff] %v7421_v18 }
 0x12f   : > { %1414 = vmatprep.mubr.bf16.mxu0 %v8983_v0  ;;  %4352 = vperm.xlu0 %6439, %v4278_v35  }
 0x130   : > { %5431 = vmatmul.mubr.msk.bf16.gmra.mxu1 %vm755_vm2, %v7235_v21  ;;  %v4283_v21 = vld [vmem:[%s8981_s6 + $0x378] sm:$0xff]  ;;  %v7426_v51 = vpop.permute.xlu0 %1238 }
 0x131   : > { %832 = vmatprep.mubr.bf16.mxu1 %v8983_v0  ;;  %4367 = vperm.xlu1 %6440, %v4281_v16   ;;  %9064 = vst [vmem:[#allocation31_spill] sm:$0xff] %v7426_v51  ;;  %v7437_v60 = vpop.permute.xlu1 %1253  ;;  %v4296_v16 = vld [vmem:[%s8981_s6 + $0x3e0] sm:$0xff] }
 0x132   : > { %9065 = vst [vmem:[#allocation32_spill] sm:$0xff] %v7437_v60 }
 0x133   : > { %4362 = vperm.xlu0 %6439, %v4280_v27  }
 0x134   : > { %v7439_v6 = vpop.permute.xlu0 %1248 }
 0x135   : > { %4377 = vperm.xlu1 %6440, %v4283_v21   ;;  %9066 = vst [vmem:[#allocation33_spill] sm:$0xff] %v7439_v6  ;;  %v7453_v35 = vpop.permute.xlu1 %1263  ;;  %v4298_v21 = vld [vmem:[%s8981_s6 + $0x3f0] sm:$0xff] }
 0x136   : > { %9067 = vst [vmem:[#allocation34_spill] sm:$0xff] %v7453_v35 }
 0x137   : > { %4372 = vperm.xlu0 %6439, %v4282_v32  }
 0x138   : > { %5432 = vmatmul.mubr.msk.bf16.gmra.mxu1 %vm755_vm2, %v7241_v26  ;;  %v4287_v26 = vld [vmem:[%s8981_s6 + $0x398] sm:$0xff]  ;;  %v7458_v27 = vpop.permute.xlu0 %1258 }
 0x139   : > { %842 = vmatprep.mubr.bf16.mxu1 %v8983_v0  ;;  %4387 = vperm.xlu1 %6440, %v4285_v33   ;;  %9068 = vst [vmem:[#allocation35_spill] sm:$0xff] %v7458_v27  ;;  %v7466_v32 = vpop.permute.xlu1 %1273 }
 0x13a   : > { %9069 = vst [vmem:[#allocation36_spill] sm:$0xff] %v7466_v32 }
 0x13b   : > { %4382 = vperm.xlu0 %6439, %v4284_v38   ;;  %v7475_v38 = vld [vmem:[#allocation2] sm:$0xff]  }
 0x13c   : > { %v7470_v33 = vpop.permute.xlu0 %1268 }
 0x13d   : > { %4397 = vperm.xlu1 %6440, %v4287_v26   ;;  %9070 = vst [vmem:[#allocation37_spill] sm:$0xff] %v7470_v33 }
 0x13f   : > { %4392 = vperm.xlu0 %6439, %v4286_v17  }
 0x140   : > { %5433 = vmatmul.mubr.msk.bf16.gmra.mxu1 %vm755_vm2, %v7279_v20  ;;  %v4291_v20 = vld [vmem:[%s8981_s6 + $0x3b8] sm:$0xff] }
 0x141   : > { %852 = vmatprep.mubr.bf16.mxu1 %v8983_v0  ;;  %4407 = vperm.xlu1 %6440, %v4289_v42  }
 0x143   : > { %4402 = vperm.xlu0 %6439, %v4288_v10  }
 0x145   : > { %4417 = vperm.xlu1 %6440, %v4291_v20  }
 0x147   : > { %4412 = vperm.xlu0 %6439, %v4290_v48  }
 0x148   : > { %5434 = vmatmul.mubr.msk.bf16.gmra.mxu1 %vm755_vm2, %v7286_v36  ;;  %v4295_v36 = vld [vmem:[%s8981_s6 + $0x3d8] sm:$0xff] }
 0x149   : > { %862 = vmatprep.mubr.bf16.mxu1 %v8983_v0  ;;  %4427 = vperm.xlu1 %6440, %v4293_v5  }
 0x14b   : > { %4422 = vperm.xlu0 %6439, %v4292_v58  }
 0x14d   : > { %4437 = vperm.xlu1 %6440, %v4295_v36  }
 0x14f   : > { %4432 = vperm.xlu0 %6439, %v4294_v8  }
 0x150   : > { %5435 = vmatmul.mubr.msk.bf16.gmra.mxu1 %vm755_vm2, %v7315_v29  ;;  %v4299_v29 = vld [vmem:[%s8981_s6 + $0x3f8] sm:$0xff] }
 0x151   : > { %872 = vmatprep.mubr.bf16.mxu1 %v8983_v0  ;;  %4447 = vperm.xlu1 %6440, %v4297_v4  }
 0x153   : > { %4442 = vperm.xlu0 %6439, %v4296_v16  }
 0x155   : > { %4457 = vperm.xlu1 %6440, %v4299_v29  }
 0x157   : > { %4452 = vperm.xlu0 %6439, %v4298_v21  }
 0x158   : > { %5436 = vmatmul.mubr.msk.bf16.gmra.mxu1 %vm755_vm2, %v7322_v54 }
 0x159   : > { %882 = vmatprep.mubr.bf16.mxu1 %v8983_v0 }
 0x160   : > { %5437 = vmatmul.mubr.msk.bf16.gmra.mxu1 %vm755_vm2, %v7348_v31 }
 0x161   : > { %6188 = vmatprep.mubr.bf16.mxu1 %v7475_v38 }
 0x1d6   : > { %v7478_v26 = vpop.f32.mrf.mxu0 }
 0x1d8   : > { %v7480_v17 = vpop.f32.mrf.mxu0 }
 0x1da   : > { %v7482_v42 = vpop.f32.mrf.mxu0 }
 0x1dc   : > { %v7484_v54 = vpop.f32.mrf.mxu0 }
 0x1de   : > { %v6162_v10 = vpop.f32.mrf.mxu0 }
 0x1e0   : > { %v7486_v20 = vpop.f32.mrf.mxu0 }
 0x1e2   : > { %v6163_v48 = vpop.f32.mrf.mxu0 }
 0x1e4   : > { %v946_v5 = vpop.f32.mrf.mxu0 }
 0x1e6   : > { %v6166_v58 = vpop.f32.mrf.mxu0 }
 0x1e8   : > { %v959_v36 = vpop.f32.mrf.mxu0  ;;  %v814_v31 = vpop.f32.mrf.mxu1 }
 0x1e9   : > { %v815_v16 = vadd.f32 %v814_v31, %v7174_v47 }
 0x1ea   : > { %v6167_v8 = vpop.f32.mrf.mxu0  ;;  %v7488_v4 = vpop.f32.mrf.mxu1 }
 0x1eb   : > { %v990_v60 = vmax.f32 %v815_v16, 0.0  ;;  %v971_v14 = vadd.f32 %v6167_v8, %v7087_v55 }
 0x1ec   : > { %v962_v29 = vpop.f32.mrf.mxu0  ;;  %v818_v21 = vpop.f32.mrf.mxu1 }
 0x1ed   : > { %v819_v0 = vadd.f32 %v818_v21, %v7162_v34  ;;  %v1025_v43 = vmax.f32 %v971_v14, 0.0  ;;  %v963_v8 = vadd.f32 %v962_v29, %v7097_v59  ;;  %v955_v14 = vadd.f32 %v6163_v48, %v7113_v2 }
 0x1ee   : > { %v6170_v32 = vpop.f32.mrf.mxu0  ;;  %v7492_v33 = vpop.f32.mrf.mxu1 }
 0x1ef   : > { %v993_v35 = vmax.f32 %v819_v0, 0.0  ;;  %v984_v27 = vadd.f32 %v6170_v32, %v7063_v46 }
 0x1f0   : > { %v975_v6 = vpop.f32.mrf.mxu0  ;;  %v824_v40 = vpop.f32.mrf.mxu1 }
 0x1f1   : > { %v7495_v18 = vpack.c.bf16 %v993_v35, %v990_v60  ;;  %v976_v51 = vadd.f32 %v975_v6, %v7079_v52  ;;  %v825_v21 = vadd.f32 %v824_v40, %v7149_v22  ;;  %v1034_v16 = vmax.f32 %v984_v27, 0.0 }
 0x1f2   : > { %v6171_v41 = vpop.f32.mrf.mxu0  ;;  %v7498_v24 = vpop.f32.mrf.mxu1  ;;  %v968_v35 = vadd.f32 %v6166_v58, %v7089_v56 }
 0x1f3   : > { %v987_v31 = vadd.f32 %v6171_v41, %v7061_v45  ;;  %v1028_v61 = vmax.f32 %v976_v51, 0.0  ;;  %v996_v41 = vmax.f32 %v825_v21, 0.0  ;;  %v960_v51 = vadd.f32 %v959_v36, %v7105_v62 }
 0x1f4   : > { %v978_v13 = vpop.f32.mrf.mxu0  ;;  %v828_v39 = vpop.f32.mrf.mxu1  ;;  %v952_v21 = vadd.f32 %v6162_v10, %v7115_v3  ;;  %v1013_v36 = vmax.f32 %v955_v14, 0.0  ;;  %v939_v10 = vadd.f32 %v7482_v42, %v7145_v19 }
 0x1f5   : > { %v1037_v0 = vmax.f32 %v987_v31, 0.0  ;;  %v979_v32 = vadd.f32 %v978_v13, %v7071_v49  ;;  %v829_v60 = vadd.f32 %v828_v39, %v7145_v19  ;;  %v1022_v39 = vmax.f32 %v968_v35, 0.0 }
 0x1f6   : > { %v7508_v63 = vpop.f32.mrf.mxu1  ;;  %v944_v35 = vadd.f32 %v7486_v20, %v7133_v12  ;;  %v1001_v20 = vmax.f32 %v939_v10, 0.0 }
 0x1f7   : > { %v7506_v6 = vpack.c.bf16 %v1037_v0, %v1034_v16  ;;  %v1031_v11 = vmax.f32 %v979_v32, 0.0  ;;  %v999_v40 = vmax.f32 %v829_v60, 0.0  ;;  %v7524_v29 = vpack.c.bf16 %v1025_v43, %v1022_v39 }
 0x1f8   : > { %v7513_v31 = vpop.f32.mrf.mxu1  ;;  %v1016_v16 = vmax.f32 %v960_v51, 0.0  ;;  %v947_v32 = vadd.f32 %v946_v5, %v7123_v7  ;;  %v1010_v43 = vmax.f32 %v952_v21, 0.0  ;;  %v936_v39 = vadd.f32 %v7478_v26, %v7149_v22 }
 0x1f9   : > { %v7511_v27 = vpack.c.bf16 %v1031_v11, %v1028_v61  ;;  %6172 = vmatprep.subr.bf16.mxu1 %v7506_v6  ;;  %v7516_v13 = vpack.c.bf16 %v999_v40, %v996_v41  ;;  %v1019_v61 = vmax.f32 %v963_v8, 0.0  ;;  %v1004_v51 = vmax.f32 %v944_v35, 0.0 }
 0x1fa   : > { %6173 = vmatpush3.bf16.msra.mxu1 %v7506_v6  ;;  %v7520_v58 = vpop.f32.mrf.mxu1  ;;  %v7546_v40 = vpack.c.bf16 %v1013_v36, %v1010_v43  ;;  %v1007_v5 = vmax.f32 %v947_v32, 0.0  ;;  %v928_v36 = vadd.f32 %v7480_v17, %v7174_v47 }
 0x1fb   : > { %6174 = vmatprep.subr.bf16.mxu1 %v7511_v27  ;;  %v7534_v60 = vpack.c.bf16 %v1019_v61, %v1016_v16  ;;  %v931_v61 = vadd.f32 %v7484_v54, %v7162_v34  ;;  %v998_v16 = vmax.f32 %v936_v39, 0.0 }
 0x1fc   : > { %v7526_v11 = vpop.f32.mrf.mxu1  ;;  %9072 = vst [vmem:[#allocation39_spill] sm:$0xff] %v7546_v40  ;;  %v7558_v42 = vpack.c.bf16 %v1007_v5, %v1004_v51  ;;  %v992_v54 = vmax.f32 %v928_v36, 0.0 }
 0x1fd   : > { %9071 = vst [vmem:[#allocation38_spill] sm:$0xff] %v7534_v60  ;;  %v7568_v32 = vpack.c.bf16 %v1001_v20, %v998_v16  ;;  %v995_v43 = vmax.f32 %v931_v61, 0.0  ;;  %v7578_v20 = vld [vmem:[#allocation2 + $0x8] sm:$0xff]   ;;  %v7581_v61 = vld [vmem:[#allocation2 + $0x10] sm:$0xff]  }
 0x1fe   : > { %6175 = vmatpush3.bf16.msra.mxu1 %v7511_v27  ;;  %v7530_v0 = vpop.f32.mrf.mxu1  ;;  %9073 = vst [vmem:[#allocation40_spill] sm:$0xff] %v7558_v42  ;;  %9076 = vst [vmem:[#allocation43_spill] sm:$0xff] %v7581_v61 }
 0x1ff   : > { %6176 = vmatprep.subr.bf16.mxu1 %v7524_v29  ;;  %9074 = vst [vmem:[#allocation41_spill] sm:$0xff] %v7568_v32  ;;  %v7574_v5 = vpack.c.bf16 %v995_v43, %v992_v54 }
 0x200   : > { %v7536_v48 = vpop.f32.mrf.mxu1 }
 0x201   : > { %9075 = vst [vmem:[#allocation42_spill] sm:$0xff] %v7574_v5 }
 0x202   : > { %6177 = vmatpush3.bf16.msra.mxu1 %v7524_v29  ;;  %v7541_v41 = vpop.f32.mrf.mxu1 }
 0x203   : > { %6178 = vmatprep.subr.bf16.mxu1 %v7534_v60 }
 0x204   : > { %v7548_v8 = vpop.f32.mrf.mxu1 }
 0x206   : > { %6179 = vmatpush3.bf16.msra.mxu1 %v7534_v60  ;;  %v7553_v14 = vpop.f32.mrf.mxu1 }
 0x207   : > { %6180 = vmatprep.subr.bf16.mxu1 %v7546_v40 }
 0x208   : > { %v7560_v21 = vpop.f32.mrf.mxu1 }
 0x20a   : > { %6181 = vmatpush3.bf16.msra.mxu1 %v7546_v40  ;;  %v7565_v26 = vpop.f32.mrf.mxu1 }
 0x20b   : > { %6182 = vmatprep.subr.bf16.mxu1 %v7558_v42 }
 0x20c   : > { %v7570_v35 = vpop.f32.mrf.mxu1 }
 0x20e   : > { %6183 = vmatpush3.bf16.msra.mxu1 %v7558_v42  ;;  %v860_v10 = vpop.f32.mrf.mxu1 }
 0x20f   : > { %6184 = vmatprep.subr.bf16.mxu1 %v7568_v32 }
 0x210   : > { %v864_v39 = vpop.f32.mrf.mxu1 }
 0x212   : > { %6185 = vmatpush3.bf16.msra.mxu1 %v7568_v32  ;;  %v866_v17 = vpop.f32.mrf.mxu1 }
 0x213   : > { %6186 = vmatprep.subr.bf16.mxu1 %v7574_v5 }
 0x214   : > { %v868_v51 = vpop.f32.mrf.mxu1 }
 0x216   : > { %6187 = vmatpush3.bf16.msra.mxu1 %v7574_v5  ;;  %v870_v16 = vpop.f32.mrf.mxu1 }
 0x218   : > { %v874_v36 = vpop.f32.mrf.mxu1 }
 0x219   : > { %6189 = vmatmul.mubr.bf16.vlgmr.msra.gmra.mxu1 %v7578_v20 }
 0x21a   : > { %6192 = vmatprep.mubr.bf16.mxu1 %v7581_v61  ;;  %v876_v43 = vpop.f32.mrf.mxu1 }
 0x21b   : > { %v877_v32 = vadd.f32 %v876_v43, %v7079_v52 }
 0x21c   : > { %v878_v54 = vpop.f32.mrf.mxu1 }
 0x21d   : > { %v1027_v43 = vmax.f32 %v877_v32, 0.0 }
 0x21e   : > { %v880_v37 = vpop.f32.mrf.mxu1 }
 0x21f   : > { %v881_v25 = vadd.f32 %v880_v37, %v7071_v49  ;;  %v871_v37 = vadd.f32 %v870_v16, %v7087_v55 }
 0x220   : > { %v884_v57 = vpop.f32.mrf.mxu1 }
 0x221   : > { %6193 = vmatmul.mubr.bf16.gmra.mxu1 %v7585_v30  ;;  %v885_v50 = vadd.f32 %v884_v57, %v7063_v46  ;;  %v1030_v61 = vmax.f32 %v881_v25, 0.0  ;;  %v867_v57 = vadd.f32 %v866_v17, %v7089_v56  ;;  %v1024_v25 = vmax.f32 %v871_v37, 0.0 }
 0x222   : > { %6196 = vmatprep.mubr.bf16.mxu1 %v7587_v28  ;;  %v886_v1 = vpop.f32.mrf.mxu1  ;;  %v879_v28 = vadd.f32 %v878_v54, %v7071_v49  ;;  %v845_v37 = vadd.f32 %v7536_v48, %v7115_v3 }
 0x223   : > { %v887_v15 = vadd.f32 %v886_v1, %v7063_v46  ;;  %v1032_v46 = vmax.f32 %v885_v50, 0.0  ;;  %v865_v50 = vadd.f32 %v864_v39, %v7089_v56  ;;  %v851_v56 = vadd.f32 %v7553_v14, %v7113_v2 }
 0x224   : > { %v888_v53 = vpop.f32.mrf.mxu1  ;;  %v1029_v49 = vmax.f32 %v879_v28, 0.0  ;;  %v1021_v28 = vmax.f32 %v867_v57, 0.0  ;;  %v849_v14 = vadd.f32 %v7548_v8, %v7113_v2  ;;  %v837_v2 = vadd.f32 %v7520_v58, %v7133_v12 }
 0x225   : > { %v889_v44 = vadd.f32 %v888_v53, %v7061_v45  ;;  %v1033_v1 = vmax.f32 %v887_v15, 0.0  ;;  %v875_v53 = vadd.f32 %v874_v36, %v7079_v52  ;;  %v861_v15 = vadd.f32 %v860_v10, %v7097_v59  ;;  %v7619_v52 = vld [vmem:[#allocation2 + $0x40] sm:$0xff]  }
 0x226   : > { %v890_v5 = vpop.f32.mrf.mxu1  ;;  %v7635_v17 = vpack.c.bf16 %v1024_v25, %v1021_v28  ;;  %v1012_v36 = vmax.f32 %v851_v56, 0.0  ;;  %v835_v58 = vadd.f32 %v7513_v31, %v7133_v12  ;;  %v821_v12 = vadd.f32 %v7492_v33, %v7162_v34  ;;  %v7726_v28 = vld [vmem:[#allocation2 + $0x78] sm:$0xff]  }
 0x227   : > { %v891_v30 = vadd.f32 %v890_v5, %v7061_v45  ;;  %v1035_v42 = vmax.f32 %v889_v44, 0.0  ;;  %v869_v45 = vadd.f32 %v868_v51, %v7087_v55  ;;  %v7612_v5 = vld [vmem:[#allocation2 + $0x38] sm:$0xff]   ;;  %v857_v55 = vadd.f32 %v7565_v26, %v7105_v62 }
 0x228   : > { %v1018_v39 = vmax.f32 %v861_v15, 0.0  ;;  %v855_v26 = vadd.f32 %v7560_v21, %v7105_v62  ;;  %v1020_v51 = vmax.f32 %v865_v50, 0.0  ;;  %v7650_v62 = vld [vmem:[#allocation2 + $0x48] sm:$0xff]   ;;  %v841_v21 = vadd.f32 %v7530_v0, %v7123_v7  ;;  %v7692_v15 = vld [vmem:[#allocation2 + $0x60] sm:$0xff]   ;;  %v9081_v56 = vld [vmem:[#allocation39_spill] sm:$0xff] }
 0x229   : > { %6197 = vmatmul.mubr.bf16.gmra.mxu1 %v7591_v9  ;;  %v1036_v40 = vmax.f32 %v891_v30, 0.0  ;;  %v7610_v44 = vpack.c.bf16 %v1035_v42, %v1032_v46  ;;  %v7615_v30 = vpack.c.bf16 %v1030_v61, %v1027_v43  ;;  %v859_v42 = vadd.f32 %v7570_v35, %v7097_v59 }
 0x22a   : > { %6200 = vmatprep.mubr.bf16.mxu1 %v7596_v23  ;;  %v1023_v32 = vmax.f32 %v869_v45, 0.0  ;;  %v847_v59 = vadd.f32 %v7541_v41, %v7115_v3  ;;  %v1015_v35 = vmax.f32 %v857_v55, 0.0  ;;  %v7656_v41 = vld [vmem:[#allocation2 + $0x50] sm:$0xff]   ;;  %v839_v0 = vadd.f32 %v7526_v11, %v7123_v7  ;;  %v7686_v45 = vld [vmem:[#allocation2 + $0x58] sm:$0xff]  }
 0x22b   : > { %v7607_v60 = vpack.c.bf16 %v1036_v40, %v1033_v1  ;;  %v1026_v40 = vmax.f32 %v875_v53, 0.0  ;;  %v1017_v61 = vmax.f32 %v859_v42, 0.0  ;;  %v1014_v1 = vmax.f32 %v855_v26, 0.0  ;;  %v7714_v55 = vld [vmem:[#allocation2 + $0x70] sm:$0xff]   ;;  %v9083_v26 = vld [vmem:[#allocation40_spill] sm:$0xff] }
 0x22c   : > { %v7648_v16 = vpack.c.bf16 %v1023_v32, %v1020_v51  ;;  %v7654_v54 = vpack.c.bf16 %v1018_v39, %v1015_v35  ;;  %v1009_v8 = vmax.f32 %v847_v59, 0.0  ;;  %v1011_v53 = vmax.f32 %v849_v14, 0.0  ;;  %v7736_v32 = vld [vmem:[#allocation2 + $0x80] sm:$0xff]   ;;  %v7748_v39 = vld [vmem:[#allocation2 + $0x88] sm:$0xff]   ;;  %v7762_v59 = vld [vmem:[#allocation2 + $0x90] sm:$0xff]  }
 0x22d   : > { %1382 = vmatprep.subr.bf16.mxu0 %v7607_v60  ;;  %2440 = vmatprep.subr.bf16.mxu1 %v7607_v60  ;;  %v7630_v10 = vpack.c.bf16 %v1029_v49, %v1026_v40  ;;  %v7668_v46 = vpack.c.bf16 %v1017_v61, %v1014_v1  ;;  %v831_v3 = vadd.f32 %v7508_v63, %v7145_v19  ;;  %v1006_v48 = vmax.f32 %v841_v21, 0.0  ;;  %v9084_v51 = vld [vmem:[#allocation41_spill] sm:$0xff]  ;;  %v9085_v35 = vld [vmem:[#allocation44_spill] sm:$0xff]  ;;  %v9086_v14 = vld [vmem:[#allocation42_spill] sm:$0xff] }
 0x22e   : > { %1383 = vmatpush1.bf16.msra.mxu0 %v7610_v44  ;;  %2441 = vmatpush1.bf16.msra.mxu1 %v7610_v44  ;;  %v7673_v57 = vpack.c.bf16 %v1012_v36, %v1009_v8  ;;  %v1008_v43 = vmax.f32 %v845_v37, 0.0  ;;  %v827_v7 = vadd.f32 %v7498_v24, %v7149_v22  ;;  %v1003_v11 = vmax.f32 %v837_v2, 0.0  ;;  %v7776_v61 = vld [vmem:[#allocation2 + $0x98] sm:$0xff]   ;;  %v9087_v21 = vld [vmem:[#allocation45_spill] sm:$0xff]  ;;  %v7786_v36 = vld [vmem:[#allocation2 + $0xa0] sm:$0xff]  }
 0x22f   : > { %1384 = vmatprep.subr.bf16.mxu0 %v7615_v30  ;;  %2442 = vmatprep.subr.bf16.mxu1 %v7615_v30  ;;  %v1005_v19 = vmax.f32 %v839_v0, 0.0  ;;  %v1000_v31 = vmax.f32 %v831_v3, 0.0  ;;  %v1002_v25 = vmax.f32 %v835_v58, 0.0  ;;  %v817_v22 = vadd.f32 %v7488_v4, %v7174_v47  ;;  %v7710_v47 = vld [vmem:[#allocation2 + $0x68] sm:$0xff]   ;;  %v7848_v2 = vld [vmem:[#allocation2 + $0xf0] sm:$0xff]   ;;  %v7854_v8 = vld [vmem:[#allocation2 + $0xf8] sm:$0xff]  }
 0x230   : > { %v7684_v63 = vpack.c.bf16 %v1011_v53, %v1008_v43  ;;  %v7690_v49 = vpack.c.bf16 %v1006_v48, %v1003_v11  ;;  %v997_v24 = vmax.f32 %v827_v7, 0.0  ;;  %v994_v34 = vmax.f32 %v821_v12, 0.0  ;;  %v7794_v37 = vld [vmem:[#allocation2 + $0xa8] sm:$0xff]   ;;  %v7857_v0 = vld [vmem:[#allocation2 + $0x100] sm:$0xff]   ;;  %v7870_v3 = vld [vmem:[#allocation2 + $0x110] sm:$0xff]  }
 0x231   : > { %6201 = vmatmul.mubr.bf16.gmra.mxu1 %v7612_v5  ;;  %v7700_v50 = vpack.c.bf16 %v1005_v19, %v1002_v25  ;;  %v991_v40 = vmax.f32 %v817_v22, 0.0  ;;  %v9079_v42 = vmov 0   ;;  %v7842_v1 = vld [vmem:[#allocation2 + $0xe8] sm:$0xff]   ;;  %v9088_v58 = vld [vmem:[#allocation11_spill] sm:$0xff] }
 0x232   : > { %6204 = vmatprep.mubr.bf16.mxu1 %v7619_v52  ;;  %1385 = vmatpush1.bf16.msra.mxu0 %v7630_v10  ;;  %v7703_v33 = vpack.c.bf16 %v1000_v31, %v997_v24  ;;  %v7867_v53 = vld [vmem:[#allocation2 + $0x108] sm:$0xff]   ;;  %v7885_v31 = vld [vmem:[#allocation2 + $0x118] sm:$0xff]  }
 0x233   : > { %2443 = vmatpush1.bf16.msra.mxu1 %v7630_v10  ;;  %1386 = vmatprep.subr.bf16.mxu0 %v7635_v17  ;;  %v7712_v4 = vpack.c.bf16 %v994_v34, %v991_v40  ;;  %v9089_v19 = vld [vmem:[#allocation9_spill] sm:$0xff]  ;;  %v9091_v34 = vld [vmem:[#allocation8_spill] sm:$0xff] }
 0x234   : > { %2444 = vmatprep.subr.bf16.mxu1 %v7635_v17 }
 0x236   : > { %1387 = vmatpush1.bf16.msra.mxu0 %v7648_v16 }
 0x237   : > { %2445 = vmatpush1.bf16.msra.mxu1 %v7648_v16  ;;  %1388 = vmatprep.subr.bf16.mxu0 %v7654_v54 }
 0x238   : > { %2446 = vmatprep.subr.bf16.mxu1 %v7654_v54 }
 0x239   : > { %6205 = vmatmul.mubr.bf16.gmra.mxu1 %v7650_v62 }
 0x23a   : > { %6208 = vmatprep.mubr.bf16.mxu1 %v7656_v41  ;;  %1389 = vmatpush1.bf16.msra.mxu0 %v7668_v46 }
 0x23b   : > { %2447 = vmatpush1.bf16.msra.mxu1 %v7668_v46  ;;  %1390 = vmatprep.subr.bf16.mxu0 %v7673_v57 }
 0x23c   : > { %2448 = vmatprep.subr.bf16.mxu1 %v7673_v57 }
 0x23e   : > { %1391 = vmatpush1.bf16.msra.mxu0 %v7684_v63 }
 0x23f   : > { %2449 = vmatpush1.bf16.msra.mxu1 %v7684_v63  ;;  %1392 = vmatprep.subr.bf16.mxu0 %v7690_v49 }
 0x240   : > { %2450 = vmatprep.subr.bf16.mxu1 %v7690_v49 }
 0x241   : > { %6209 = vmatmul.mubr.bf16.gmra.mxu1 %v7686_v45 }
 0x242   : > { %6212 = vmatprep.mubr.bf16.mxu1 %v7692_v15  ;;  %1393 = vmatpush1.bf16.msra.mxu0 %v7700_v50 }
 0x243   : > { %2451 = vmatpush1.bf16.msra.mxu1 %v7700_v50  ;;  %1394 = vmatprep.subr.bf16.mxu0 %v7703_v33 }
 0x244   : > { %2452 = vmatprep.subr.bf16.mxu1 %v7703_v33 }
 0x246   : > { %1395 = vmatpush1.bf16.msra.mxu0 %v7516_v13 }
 0x247   : > { %2453 = vmatpush1.bf16.msra.mxu1 %v7516_v13  ;;  %1396 = vmatprep.subr.bf16.mxu0 %v7712_v4 }
 0x248   : > { %2454 = vmatprep.subr.bf16.mxu1 %v7712_v4 }
 0x249   : > { %6213 = vmatmul.mubr.bf16.gmra.mxu1 %v7710_v47 }
 0x24a   : > { %6216 = vmatprep.mubr.bf16.mxu1 %v7714_v55  ;;  %1397 = vmatpush1.bf16.msra.mxu0 %v7495_v18 }
 0x24b   : > { %2455 = vmatpush1.bf16.msra.mxu1 %v7495_v18  ;;  %6220 = vmatprep.subr.bf16.mxu0 %v7506_v6 }
 0x24c   : > { %6268 = vmatprep.subr.bf16.mxu1 %v7506_v6 }
 0x24d   : > { %1415 = vmatmul.mubr.bf16.vlgmr.msra.gmra.mxu0 %v7475_v38  ;;  %v9080_v38 = vld [vmem:[#allocation38_spill] sm:$0xff] }
 0x24e   : > { %6221 = vmatpush3.bf16.msra.mxu0 %v7506_v6  ;;  %1424 = vmatprep.mubr.bf16.mxu0 %v9079_v42 }
 0x24f   : > { %6222 = vmatprep.subr.bf16.mxu0 %v7511_v27 }
 0x251   : > { %6217 = vmatmul.mubr.bf16.gmra.mxu1 %v7726_v28 }
 0x252   : > { %2472 = vmatprep.mubr.bf16.mxu1 %v9079_v42  ;;  %6223 = vmatpush3.bf16.msra.mxu0 %v7511_v27 }
 0x253   : > { %6224 = vmatprep.subr.bf16.mxu0 %v7524_v29 }
 0x255   : > { %1425 = vmatmul.mubr.bf16.gmra.mxu0 %v7578_v20  ;;  %v9082_v20 = vld [vmem:[#allocation43_spill] sm:$0xff] }
 0x256   : > { %6225 = vmatpush3.bf16.msra.mxu0 %v7524_v29  ;;  %1434 = vmatprep.mubr.bf16.mxu0 %v9079_v42 }
 0x257   : > { %6226 = vmatprep.subr.bf16.mxu0 %v9080_v38 }
 0x259   : > { %2473 = vmatmul.mubr.bf16.vlgmr.msra.gmra.mxu1 %v7736_v32 }
 0x25a   : > { %6269 = vmatpush3.bf16.msra.mxu1 %v7506_v6  ;;  %2482 = vmatprep.mubr.bf16.mxu1 %v9079_v42 }
 0x25b   : > { %6227 = vmatpush3.bf16.msra.mxu0 %v9080_v38  ;;  %6270 = vmatprep.subr.bf16.mxu1 %v7511_v27 }
 0x25c   : > { %6228 = vmatprep.subr.bf16.mxu0 %v9081_v56 }
 0x25d   : > { %1435 = vmatmul.mubr.bf16.gmra.mxu0 %v9082_v20 }
 0x25e   : > { %6271 = vmatpush3.bf16.msra.mxu1 %v7511_v27  ;;  %1444 = vmatprep.mubr.bf16.mxu0 %v9079_v42 }
 0x25f   : > { %6229 = vmatpush3.bf16.msra.mxu0 %v9081_v56  ;;  %6272 = vmatprep.subr.bf16.mxu1 %v7524_v29 }
 0x260   : > { %6230 = vmatprep.subr.bf16.mxu0 %v9083_v26 }
 0x261   : > { %2483 = vmatmul.mubr.bf16.gmra.mxu1 %v7748_v39 }
 0x262   : > { %6273 = vmatpush3.bf16.msra.mxu1 %v7524_v29  ;;  %2492 = vmatprep.mubr.bf16.mxu1 %v9079_v42 }
 0x263   : > { %6231 = vmatpush3.bf16.msra.mxu0 %v9083_v26  ;;  %6274 = vmatprep.subr.bf16.mxu1 %v9080_v38 }
 0x264   : > { %6232 = vmatprep.subr.bf16.mxu0 %v9084_v51 }
 0x265   : > { %1445 = vmatmul.mubr.bf16.gmra.mxu0 %v9085_v35  ;;  %v7911_v35 = vld [vmem:[#allocation2 + $0x128] sm:$0xff]  }
 0x266   : > { %6275 = vmatpush3.bf16.msra.mxu1 %v9080_v38  ;;  %1454 = vmatprep.mubr.bf16.mxu0 %v9079_v42 }
 0x267   : > { %6233 = vmatpush3.bf16.msra.mxu0 %v9084_v51  ;;  %6276 = vmatprep.subr.bf16.mxu1 %v9081_v56 }
 0x268   : > { %6234 = vmatprep.subr.bf16.mxu0 %v9086_v14 }
 0x269   : > { %2493 = vmatmul.mubr.bf16.gmra.mxu1 %v7762_v59 }
 0x26a   : > { %6277 = vmatpush3.bf16.msra.mxu1 %v9081_v56  ;;  %2502 = vmatprep.mubr.bf16.mxu1 %v9079_v42 }
 0x26b   : > { %6235 = vmatpush3.bf16.msra.mxu0 %v9086_v14  ;;  %6278 = vmatprep.subr.bf16.mxu1 %v9083_v26 }
 0x26c   : > { %3498 = vmatprep.subr.bf16.mxu0 %v7607_v60 }
 0x26d   : > { %1455 = vmatmul.mubr.bf16.gmra.mxu0 %v9087_v21 }
 0x26e   : > { %6279 = vmatpush3.bf16.msra.mxu1 %v9083_v26  ;;  %1464 = vmatprep.mubr.bf16.mxu0 %v9079_v42 }
 0x26f   : > { %6280 = vmatprep.subr.bf16.mxu1 %v9084_v51 }
 0x271   : > { %2503 = vmatmul.mubr.bf16.gmra.mxu1 %v7776_v61 }
 0x272   : > { %6281 = vmatpush3.bf16.msra.mxu1 %v9084_v51  ;;  %2512 = vmatprep.mubr.bf16.mxu1 %v9079_v42 }
 0x273   : > { %6282 = vmatprep.subr.bf16.mxu1 %v9086_v14 }
 0x275   : > { %1465 = vmatmul.mubr.bf16.gmra.mxu0 %v7591_v9  ;;  %v7800_v9 = vld [vmem:[#allocation2 + $0xb0] sm:$0xff]  }
 0x276   : > { %6283 = vmatpush3.bf16.msra.mxu1 %v9086_v14  ;;  %1474 = vmatprep.mubr.bf16.mxu0 %v9079_v42 }
 0x277   : > { %4556 = vmatprep.subr.bf16.mxu1 %v7607_v60  ;;  %v7806_v60 = vld [vmem:[#allocation2 + $0xb8] sm:$0xff]  }
 0x279   : > { %2513 = vmatmul.mubr.bf16.gmra.mxu1 %v7786_v36 }
 0x27a   : > { %2522 = vmatprep.mubr.bf16.mxu1 %v9079_v42 }
 0x27d   : > { %1475 = vmatmul.mubr.bf16.gmra.mxu0 %v7596_v23  ;;  %v7812_v23 = vld [vmem:[#allocation2 + $0xc0] sm:$0xff]  }
 0x27e   : > { %1484 = vmatprep.mubr.bf16.mxu0 %v9079_v42 }
 0x281   : > { %2523 = vmatmul.mubr.bf16.gmra.mxu1 %v7794_v37 }
 0x282   : > { %2532 = vmatprep.mubr.bf16.mxu1 %v9079_v42 }
 0x285   : > { %1485 = vmatmul.mubr.bf16.gmra.mxu0 %v7612_v5  ;;  %v7818_v5 = vld [vmem:[#allocation2 + $0xc8] sm:$0xff]  }
 0x286   : > { %1494 = vmatprep.mubr.bf16.mxu0 %v9079_v42 }
 0x289   : > { %2533 = vmatmul.mubr.bf16.gmra.mxu1 %v7800_v9 }
 0x28a   : > { %2542 = vmatprep.mubr.bf16.mxu1 %v9079_v42 }
 0x28d   : > { %1495 = vmatmul.mubr.bf16.gmra.mxu0 %v7619_v52  ;;  %v7824_v52 = vld [vmem:[#allocation2 + $0xd0] sm:$0xff]  }
 0x28e   : > { %1504 = vmatprep.mubr.bf16.mxu0 %v9079_v42 }
 0x291   : > { %2543 = vmatmul.mubr.bf16.gmra.mxu1 %v7806_v60 }
 0x292   : > { %2552 = vmatprep.mubr.bf16.mxu1 %v9079_v42 }
 0x295   : > { %1505 = vmatmul.mubr.bf16.gmra.mxu0 %v7650_v62  ;;  %v7830_v62 = vld [vmem:[#allocation2 + $0xd8] sm:$0xff]  }
 0x296   : > { %1514 = vmatprep.mubr.bf16.mxu0 %v9079_v42 }
 0x299   : > { %2553 = vmatmul.mubr.bf16.gmra.mxu1 %v7812_v23 }
 0x29a   : > { %2562 = vmatprep.mubr.bf16.mxu1 %v9079_v42 }
 0x29d   : > { %1515 = vmatmul.mubr.bf16.gmra.mxu0 %v7656_v41  ;;  %v7836_v41 = vld [vmem:[#allocation2 + $0xe0] sm:$0xff]  }
 0x29e   : > { %1524 = vmatprep.mubr.bf16.mxu0 %v9079_v42 }
 0x2a1   : > { %2563 = vmatmul.mubr.bf16.gmra.mxu1 %v7818_v5 }
 0x2a2   : > { %2572 = vmatprep.mubr.bf16.mxu1 %v9079_v42 }
 0x2a5   : > { %1525 = vmatmul.mubr.bf16.gmra.mxu0 %v7686_v45 }
 0x2a6   : > { %1534 = vmatprep.mubr.bf16.mxu0 %v9079_v42 }
 0x2a9   : > { %2573 = vmatmul.mubr.bf16.gmra.mxu1 %v7824_v52 }
 0x2aa   : > { %2582 = vmatprep.mubr.bf16.mxu1 %v9079_v42 }
 0x2ad   : > { %1535 = vmatmul.mubr.bf16.gmra.mxu0 %v7692_v15  ;;  %v9090_v15 = vld [vmem:[#allocation10_spill] sm:$0xff] }
 0x2ae   : > { %1544 = vmatprep.mubr.bf16.mxu0 %v9079_v42 }
 0x2b1   : > { %2583 = vmatmul.mubr.bf16.gmra.mxu1 %v7830_v62 }
 0x2b2   : > { %2592 = vmatprep.mubr.bf16.mxu1 %v9079_v42 }
 0x2b5   : > { %1545 = vmatmul.mubr.bf16.gmra.mxu0 %v7710_v47 }
 0x2b6   : > { %1554 = vmatprep.mubr.bf16.mxu0 %v9079_v42 }
 0x2b9   : > { %2593 = vmatmul.mubr.bf16.gmra.mxu1 %v7836_v41 }
 0x2ba   : > { %2602 = vmatprep.mubr.bf16.mxu1 %v9079_v42 }
 0x2bd   : > { %1555 = vmatmul.mubr.bf16.gmra.mxu0 %v7714_v55  ;;  %v9092_v55 = vld [vmem:[#allocation15_spill] sm:$0xff] }
 0x2be   : > { %1564 = vmatprep.mubr.bf16.mxu0 %v9079_v42 }
 0x2c1   : > { %2603 = vmatmul.mubr.bf16.gmra.mxu1 %v7842_v1 }
 0x2c2   : > { %2612 = vmatprep.mubr.bf16.mxu1 %v9079_v42 }
 0x2c5   : > { %1565 = vmatmul.mubr.bf16.gmra.mxu0 %v7726_v28 }
 0x2c6   : > { %6236 = vmatprep.mubr.bf16.mxu0 %v7736_v32 }
 0x2c9   : > { %2613 = vmatmul.mubr.bf16.gmra.mxu1 %v7848_v2 }
 0x2ca   : > { %2622 = vmatprep.mubr.bf16.mxu1 %v9079_v42 }
 0x2cd   : > { %6237 = vmatmul.mubr.bf16.vlgmr.msra.gmra.mxu0 %v7748_v39  ;;  %v9093_v39 = vld [vmem:[#allocation13_spill] sm:$0xff] }
 0x2ce   : > { %3499 = vmatpush1.bf16.msra.mxu0 %v7610_v44  ;;  %6240 = vmatprep.mubr.bf16.mxu0 %v7762_v59 }
 0x2cf   : > { %3500 = vmatprep.subr.bf16.mxu0 %v7615_v30 }
 0x2d1   : > { %2623 = vmatmul.mubr.bf16.gmra.mxu1 %v7854_v8 }
 0x2d2   : > { %6284 = vmatprep.mubr.bf16.mxu1 %v7857_v0  ;;  %3501 = vmatpush1.bf16.msra.mxu0 %v7630_v10 }
 0x2d3   : > { %3502 = vmatprep.subr.bf16.mxu0 %v7635_v17 }
 0x2d5   : > { %6241 = vmatmul.mubr.bf16.gmra.mxu0 %v7776_v61  ;;  %v9094_v61 = vld [vmem:[#allocation14_spill] sm:$0xff] }
 0x2d6   : > { %3503 = vmatpush1.bf16.msra.mxu0 %v7648_v16  ;;  %6244 = vmatprep.mubr.bf16.mxu0 %v7786_v36 }
 0x2d7   : > { %3504 = vmatprep.subr.bf16.mxu0 %v7654_v54 }
 0x2d9   : > { %v6190_v48 = vpop.f32.mrf.mxu1  ;;  %6285 = vmatmul.mubr.bf16.vlgmr.msra.gmra.mxu1 %v7867_v53 }
 0x2da   : > { %v1618_v43 = vadd.f32 %v6190_v48, %v9088_v58  ;;  %4557 = vmatpush1.bf16.msra.mxu1 %v7610_v44  ;;  %6288 = vmatprep.mubr.bf16.mxu1 %v7870_v3 }
 0x2db   : > { %3505 = vmatpush1.bf16.msra.mxu0 %v7668_v46  ;;  %4558 = vmatprep.subr.bf16.mxu1 %v7615_v30  ;;  %v1609_v7 = vpop.f32.mrf.mxu1  ;;  %v7893_v30 = vld [vmem:[#allocation2 + $0x120] sm:$0xff]  }
 0x2dc   : > { %v5774_v11 = vpack.c.bf16 %v1618_v43, %v1618_v43  ;;  %3506 = vmatprep.subr.bf16.mxu0 %v7673_v57  ;;  %v1610_v45 = vadd.f32 %v1609_v7, %v9089_v19 }
 0x2dd   : > { %v6191_v12 = vpop.f32.mrf.mxu1  ;;  %6245 = vmatmul.mubr.bf16.gmra.mxu0 %v7794_v37 }
 0x2de   : > { %2061 = vst [vmem:[%s7887_s21 + $0x20] sm:$0xf] %v5774_v11  ;;  %v5770_v44 = vpack.c.bf16 %v1610_v45, %v1610_v45  ;;  %v1621_v25 = vadd.f32 %v6191_v12, %v9090_v15  ;;  %4559 = vmatpush1.bf16.msra.mxu1 %v7630_v10  ;;  %6248 = vmatprep.mubr.bf16.mxu0 %v7800_v9  ;;  %v9095_v9 = vld [vmem:[#allocation12_spill] sm:$0xff]  ;;  %v9097_v11 = vld [vmem:[#allocation17_spill] sm:$0xff] }
 0x2df   : > { %3507 = vmatpush1.bf16.msra.mxu0 %v7684_v63  ;;  %4560 = vmatprep.subr.bf16.mxu1 %v7635_v17  ;;  %v1612_v22 = vpop.f32.mrf.mxu1 }
 0x2e0   : > { %2057 = vst [vmem:[%s7887_s21 + $0x8] sm:$0xf] %v5770_v44  ;;  %v5776_v24 = vpack.c.bf16 %v1621_v25, %v1621_v25  ;;  %3508 = vmatprep.subr.bf16.mxu0 %v7690_v49  ;;  %v1613_v40 = vadd.f32 %v1612_v22, %v9091_v34  ;;  %v7935_v44 = vld [vmem:[#allocation2 + $0x138] sm:$0xff]   ;;  %v9098_v25 = vld [vmem:[#allocation18_spill] sm:$0xff] }
 0x2e1   : > { %v6194_v47 = vpop.f32.mrf.mxu1  ;;  %6289 = vmatmul.mubr.bf16.gmra.mxu1 %v7885_v31 }
 0x2e2   : > { %2063 = vst [vmem:[%s7887_s21 + $0x2c] sm:$0xf] %v5776_v24  ;;  %v5772_v10 = vpack.c.bf16 %v1613_v40, %v1613_v40  ;;  %v1634_v28 = vadd.f32 %v6194_v47, %v9092_v55  ;;  %4561 = vmatpush1.bf16.msra.mxu1 %v7648_v16  ;;  %6292 = vmatprep.mubr.bf16.mxu1 %v7893_v30  ;;  %v9099_v47 = vld [vmem:[#allocation16_spill] sm:$0xff] }
 0x2e3   : > { %3509 = vmatpush1.bf16.msra.mxu0 %v7700_v50  ;;  %4562 = vmatprep.subr.bf16.mxu1 %v7654_v54  ;;  %v1625_v17 = vpop.f32.mrf.mxu1  ;;  %v7917_v54 = vld [vmem:[#allocation2 + $0x130] sm:$0xff]  }
 0x2e4   : > { %2059 = vst [vmem:[%s7887_s21 + $0x14] sm:$0xf] %v5772_v10  ;;  %v5782_v32 = vpack.c.bf16 %v1634_v28, %v1634_v28  ;;  %3510 = vmatprep.subr.bf16.mxu0 %v7703_v33  ;;  %v1626_v20 = vadd.f32 %v1625_v17, %v9093_v39  ;;  %v9100_v17 = vld [vmem:[#allocation23_spill] sm:$0xff] }
 0x2e5   : > { %v6195_v59 = vpop.f32.mrf.mxu1  ;;  %6249 = vmatmul.mubr.bf16.gmra.mxu0 %v7806_v60  ;;  %v9096_v60 = vld [vmem:[#allocation19_spill] sm:$0xff] }
 0x2e6   : > { %2069 = vst [vmem:[%s7887_s21 + $0x50] sm:$0xf] %v5782_v32  ;;  %v5778_v16 = vpack.c.bf16 %v1626_v20, %v1626_v20  ;;  %v1637_v21 = vadd.f32 %v6195_v59, %v9094_v61  ;;  %4563 = vmatpush1.bf16.msra.mxu1 %v7668_v46  ;;  %6252 = vmatprep.mubr.bf16.mxu0 %v7812_v23  ;;  %v9101_v32 = vld [vmem:[#allocation21_spill] sm:$0xff] }
 0x2e7   : > { %3511 = vmatpush1.bf16.msra.mxu0 %v7516_v13  ;;  %4564 = vmatprep.subr.bf16.mxu1 %v7673_v57  ;;  %v1628_v36 = vpop.f32.mrf.mxu1 }
 0x2e8   : > { %2065 = vst [vmem:[%s7887_s21 + $0x38] sm:$0xf] %v5778_v16  ;;  %v5784_v37 = vpack.c.bf16 %v1637_v21, %v1637_v21  ;;  %3512 = vmatprep.subr.bf16.mxu0 %v7712_v4  ;;  %v1629_v48 = vadd.f32 %v1628_v36, %v9095_v9  ;;  %v7955_v16 = vld [vmem:[#allocation2 + $0x148] sm:$0xff]   ;;  %v9102_v36 = vld [vmem:[#allocation22_spill] sm:$0xff] }
 0x2e9   : > { %v6198_v43 = vpop.f32.mrf.mxu1  ;;  %6293 = vmatmul.mubr.bf16.gmra.mxu1 %v7911_v35 }
 0x2ea   : > { %2071 = vst [vmem:[%s7887_s21 + $0x5c] sm:$0xf] %v5784_v37  ;;  %v5780_v46 = vpack.c.bf16 %v1629_v48, %v1629_v48  ;;  %v1650_v7 = vadd.f32 %v6198_v43, %v9096_v60  ;;  %4565 = vmatpush1.bf16.msra.mxu1 %v7684_v63  ;;  %6296 = vmatprep.mubr.bf16.mxu1 %v7917_v54  ;;  %v9103_v43 = vld [vmem:[#allocation20_spill] sm:$0xff] }
 0x2eb   : > { %3513 = vmatpush1.bf16.msra.mxu0 %v7495_v18  ;;  %4566 = vmatprep.subr.bf16.mxu1 %v7690_v49  ;;  %v1641_v57 = vpop.f32.mrf.mxu1  ;;  %v7941_v49 = vld [vmem:[#allocation2 + $0x140] sm:$0xff]  }
 0x2ec   : > { %2067 = vst [vmem:[%s7887_s21 + $0x44] sm:$0xf] %v5780_v46  ;;  %v5790_v23 = vpack.c.bf16 %v1650_v7, %v1650_v7  ;;  %6316 = vmatprep.subr.bf16.mxu0 %v7506_v6  ;;  %v1642_v45 = vadd.f32 %v1641_v57, %v9097_v11 }
 0x2ed   : > { %v6199_v12 = vpop.f32.mrf.mxu1  ;;  %6253 = vmatmul.mubr.bf16.gmra.mxu0 %v7818_v5 }
 0x2ee   : > { %2077 = vst [vmem:[%s7887_s21 + $0x80] sm:$0xf] %v5790_v23  ;;  %v5786_v63 = vpack.c.bf16 %v1642_v45, %v1642_v45  ;;  %v1653_v22 = vadd.f32 %v6199_v12, %v9098_v25  ;;  %4567 = vmatpush1.bf16.msra.mxu1 %v7700_v50  ;;  %6256 = vmatprep.mubr.bf16.mxu0 %v7824_v52  ;;  %v9104_v23 = vld [vmem:[#allocation27_spill] sm:$0xff]  ;;  %v9105_v12 = vld [vmem:[#allocation25_spill] sm:$0xff] }
 0x2ef   : > { %4568 = vmatprep.subr.bf16.mxu1 %v7703_v33  ;;  %v1644_v24 = vpop.f32.mrf.mxu1 }
 0x2f0   : > { %2073 = vst [vmem:[%s7887_s21 + $0x68] sm:$0xf] %v5786_v63  ;;  %v5792_v40 = vpack.c.bf16 %v1653_v22, %v1653_v22  ;;  %v1645_v10 = vadd.f32 %v1644_v24, %v9099_v47  ;;  %v7972_v22 = vld [vmem:[#allocation2 + $0x158] sm:$0xff]  }
 0x2f1   : > { %v6202_v28 = vpop.f32.mrf.mxu1  ;;  %6297 = vmatmul.mubr.bf16.gmra.mxu1 %v7935_v44 }
 0x2f2   : > { %2079 = vst [vmem:[%s7887_s21 + $0x8c] sm:$0xf] %v5792_v40  ;;  %v5788_v5 = vpack.c.bf16 %v1645_v10, %v1645_v10  ;;  %v1666_v50 = vadd.f32 %v6202_v28, %v9100_v17  ;;  %4569 = vmatpush1.bf16.msra.mxu1 %v7516_v13  ;;  %6300 = vmatprep.mubr.bf16.mxu1 %v7941_v49  ;;  %v7961_v13 = vld [vmem:[#allocation2 + $0x150] sm:$0xff]   ;;  %v7977_v28 = vld [vmem:[#allocation2 + $0x160] sm:$0xff]  }
 0x2f3   : > { %4570 = vmatprep.subr.bf16.mxu1 %v7712_v4  ;;  %v1657_v33 = vpop.f32.mrf.mxu1  ;;  %v9106_v40 = vld [vmem:[#allocation26_spill] sm:$0xff] }
 0x2f4   : > { %2075 = vst [vmem:[%s7887_s21 + $0x74] sm:$0xf] %v5788_v5  ;;  %v5798_v52 = vpack.c.bf16 %v1666_v50, %v1666_v50  ;;  %v1658_v20 = vadd.f32 %v1657_v33, %v9101_v32  ;;  %v9107_v33 = vld [vmem:[#allocation24_spill] sm:$0xff] }
 0x2f5   : > { %v6203_v59 = vpop.f32.mrf.mxu1  ;;  %6257 = vmatmul.mubr.bf16.gmra.mxu0 %v7830_v62 }
 0x2f6   : > { %2085 = vst [vmem:[%s7887_s21 + $0xb0] sm:$0xf] %v5798_v52  ;;  %v5794_v21 = vpack.c.bf16 %v1658_v20, %v1658_v20  ;;  %v1669_v37 = vadd.f32 %v6203_v59, %v9102_v36  ;;  %4571 = vmatpush1.bf16.msra.mxu1 %v7495_v18  ;;  %6260 = vmatprep.mubr.bf16.mxu0 %v7836_v41 }
 0x2f7   : > { %v1660_v4 = vpop.f32.mrf.mxu1 }
 0x2f8   : > { %2081 = vst [vmem:[%s7887_s21 + $0x98] sm:$0xf] %v5794_v21  ;;  %v5800_v48 = vpack.c.bf16 %v1669_v37, %v1669_v37  ;;  %v1661_v46 = vadd.f32 %v1660_v4, %v9103_v43  ;;  %v9108_v21 = vld [vmem:[#allocation31_spill] sm:$0xff] }
 0x2f9   : > { %v6206_v7 = vpop.f32.mrf.mxu1  ;;  %6301 = vmatmul.mubr.bf16.gmra.mxu1 %v7955_v16 }
 0x2fa   : > { %2087 = vst [vmem:[%s7887_s21 + $0xbc] sm:$0xf] %v5800_v48  ;;  %v5796_v57 = vpack.c.bf16 %v1661_v46, %v1661_v46  ;;  %v1682_v62 = vadd.f32 %v6206_v7, %v9104_v23  ;;  %6304 = vmatprep.mubr.bf16.mxu1 %v7961_v13  ;;  %v9109_v48 = vld [vmem:[#allocation29_spill] sm:$0xff] }
 0x2fb   : > { %v1673_v18 = vpop.f32.mrf.mxu1  ;;  %v7988_v7 = vld [vmem:[#allocation2 + $0x168] sm:$0xff]  }
 0x2fc   : > { %2083 = vst [vmem:[%s7887_s21 + $0xa4] sm:$0xf] %v5796_v57  ;;  %v5806_v45 = vpack.c.bf16 %v1682_v62, %v1682_v62  ;;  %v1674_v41 = vadd.f32 %v1673_v18, %v9105_v12  ;;  %v9110_v62 = vld [vmem:[#allocation30_spill] sm:$0xff] }
 0x2fd   : > { %v6207_v63 = vpop.f32.mrf.mxu1  ;;  %6261 = vmatmul.mubr.bf16.gmra.mxu0 %v7842_v1 }
 0x2fe   : > { %2093 = vst [vmem:[%s7887_s21 + $0xe0] sm:$0xf] %v5806_v45  ;;  %v5802_v24 = vpack.c.bf16 %v1674_v41, %v1674_v41  ;;  %v1685_v10 = vadd.f32 %v6207_v63, %v9106_v40  ;;  %6264 = vmatprep.mubr.bf16.mxu0 %v7848_v2  ;;  %v7993_v45 = vld [vmem:[#allocation2 + $0x170] sm:$0xff]  }
 0x2ff   : > { %v1676_v5 = vpop.f32.mrf.mxu1  ;;  %9111 = vst [vmem:[#allocation38_spill] sm:$0xff] %v7993_v45 }
 0x300   : > { %2089 = vst [vmem:[%s7887_s21 + $0xc8] sm:$0xf] %v5802_v24  ;;  %v5808_v50 = vpack.c.bf16 %v1685_v10, %v1685_v10  ;;  %v1677_v52 = vadd.f32 %v1676_v5, %v9107_v33  ;;  %v9112_v24 = vld [vmem:[#allocation28_spill] sm:$0xff] }
 0x301   : > { %v6210_v20 = vpop.f32.mrf.mxu1  ;;  %6305 = vmatmul.mubr.bf16.gmra.mxu1 %v7972_v22 }
 0x302   : > { %2095 = vst [vmem:[%s7887_s21 + $0xec] sm:$0xf] %v5808_v50  ;;  %v5804_v59 = vpack.c.bf16 %v1677_v52, %v1677_v52  ;;  %v1698_v37 = vadd.f32 %v6210_v20, %v9108_v21  ;;  %6308 = vmatprep.mubr.bf16.mxu1 %v7977_v28  ;;  %v9113_v52 = vld [vmem:[#allocation35_spill] sm:$0xff] }
 0x303   : > { %v1689_v1 = vpop.f32.mrf.mxu1 }
 0x304   : > { %2091 = vst [vmem:[%s7887_s21 + $0xd4] sm:$0xf] %v5804_v59  ;;  %v5814_v4 = vpack.c.bf16 %v1698_v37, %v1698_v37  ;;  %v1690_v2 = vadd.f32 %v1689_v1, %v9109_v48  ;;  %v9114_v37 = vld [vmem:[#allocation33_spill] sm:$0xff] }
 0x305   : > { %v6211_v46 = vpop.f32.mrf.mxu1  ;;  %6265 = vmatmul.mubr.bf16.gmra.mxu0 %v7854_v8 }
 0x306   : > { %2101 = vst [vmem:[%s7887_s21 + $0x110] sm:$0xf] %v5814_v4  ;;  %v5810_v57 = vpack.c.bf16 %v1690_v2, %v1690_v2  ;;  %v1701_v18 = vadd.f32 %v6211_v46, %v9110_v62  ;;  %3530 = vmatprep.mubr.bf16.mxu0 %v9079_v42  ;;  %v8004_v2 = vld [vmem:[#allocation2 + $0x178] sm:$0xff]  }
 0x307   : > { %v1692_v41 = vpop.f32.mrf.mxu1  ;;  %9115 = vst [vmem:[#allocation39_spill] sm:$0xff] %v8004_v2 }
 0x308   : > { %2097 = vst [vmem:[%s7887_s21 + $0xf8] sm:$0xf] %v5810_v57  ;;  %v5816_v63 = vpack.c.bf16 %v1701_v18, %v1701_v18  ;;  %v1693_v10 = vadd.f32 %v1692_v41, %v9112_v24  ;;  %v9116_v18 = vld [vmem:[#allocation34_spill] sm:$0xff] }
 0x309   : > { %v6214_v5 = vpop.f32.mrf.mxu1  ;;  %6309 = vmatmul.mubr.bf16.gmra.mxu1 %v7988_v7 }
 0x30a   : > { %2103 = vst [vmem:[%s7887_s21 + $0x11c] sm:$0xf] %v5816_v63  ;;  %v5812_v50 = vpack.c.bf16 %v1693_v10, %v1693_v10  ;;  %v1714_v20 = vadd.f32 %v6214_v5, %v9113_v52  ;;  %6312 = vmatprep.mubr.bf16.mxu1 %v7993_v45 }
 0x30b   : > { %v1705_v8 = vpop.f32.mrf.mxu1 }
 0x30c   : > { %2099 = vst [vmem:[%s7887_s21 + $0x104] sm:$0xf] %v5812_v50  ;;  %v5822_v59 = vpack.c.bf16 %v1714_v20, %v1714_v20  ;;  %v1706_v1 = vadd.f32 %v1705_v8, %v9114_v37  ;;  %v9117_v50 = vld [vmem:[#allocation32_spill] sm:$0xff]  ;;  %v8014_v8 = vpop.permute.xlu0 %1278 }
 0x30d   : > { %v6215_v4 = vpop.f32.mrf.mxu1  ;;  %v1416_v57 = vpop.f32.mrf.mxu0  ;;  %3531 = vmatmul.mubr.bf16.vlgmr.msra.gmra.mxu0 %v7857_v0 }
 0x30e   : > { %2109 = vst [vmem:[%s7887_s21 + $0x140] sm:$0xf] %v5822_v59  ;;  %v5818_v46 = vpack.c.bf16 %v1706_v1, %v1706_v1  ;;  %v1717_v41 = vadd.f32 %v6215_v4, %v9116_v18  ;;  %6317 = vmatpush3.bf16.msra.mxu0 %v7506_v6  ;;  %3540 = vmatprep.mubr.bf16.mxu0 %v9079_v42 }
 0x30f   : > { %v1708_v63 = vpop.f32.mrf.mxu1  ;;  %6318 = vmatprep.subr.bf16.mxu0 %v7511_v27  ;;  %v1418_v5 = vpop.f32.mrf.mxu0  ;;  %v1417_v59 = vadd.f32 %v1416_v57, %v9089_v19 }
 0x310   : > { %2105 = vst [vmem:[%s7887_s21 + $0x128] sm:$0xf] %v5818_v46  ;;  %v5824_v10 = vpack.c.bf16 %v1717_v41, %v1717_v41  ;;  %v1709_v20 = vadd.f32 %v1708_v63, %v9117_v50  ;;  %v1419_v1 = vadd.f32 %v1418_v5, %v9089_v19  ;;  %v9118_v5 = vld [vmem:[#allocation37_spill] sm:$0xff] }
 0x311   : > { %v6218_v0 = vpop.f32.mrf.mxu1  ;;  %6313 = vmatmul.mubr.bf16.gmra.mxu1 %v8004_v2  ;;  %v1420_v4 = vpop.f32.mrf.mxu0 }
 0x312   : > { %2111 = vst [vmem:[%s7887_s21 + $0x14c] sm:$0xf] %v5824_v10  ;;  %v5820_v6 = vpack.c.bf16 %v1709_v20, %v1709_v20  ;;  %v1730_v46 = vadd.f32 %v6218_v0, %v8014_v8  ;;  %4588 = vmatprep.mubr.bf16.mxu1 %v9079_v42  ;;  %v5769_v41 = vpack.c.bf16 %v1419_v1, %v1417_v59  ;;  %v8026_v2 = vpop.permute.xlu1 %1283  ;;  %v8031_v59 = vld [vmem:[#allocation2 + $0x180] sm:$0xff]  }
 0x313   : > { %6319 = vmatpush3.bf16.msra.mxu0 %v7511_v27  ;;  %v1721_v63 = vpop.f32.mrf.mxu1  ;;  %v1422_v19 = vpop.f32.mrf.mxu0  ;;  %v1421_v10 = vadd.f32 %v1420_v4, %v9091_v34 }
 0x314   : > { %2107 = vst [vmem:[%s7887_s21 + $0x134] sm:$0xf] %v5820_v6  ;;  %v5830_v57 = vpack.c.bf16 %v1730_v46, %v1730_v46  ;;  %6320 = vmatprep.subr.bf16.mxu0 %v7524_v29  ;;  %v1722_v45 = vadd.f32 %v1721_v63, %v9118_v5  ;;  %2056 = vst [vmem:[%s7887_s21] sm:$0xff] %v5769_v41  ;;  %v1423_v20 = vadd.f32 %v1422_v19, %v9091_v34  ;;  %v8036_v46 = vpop.permute.xlu0 %2186  ;;  %v9119_v41 = vld [vmem:[#allocation36_spill] sm:$0xff] }
 0x315   : > { %v6219_v0 = vpop.f32.mrf.mxu1  ;;  %v1426_v1 = vpop.f32.mrf.mxu0  ;;  %3541 = vmatmul.mubr.bf16.gmra.mxu0 %v7867_v53 }
 0x316   : > { %2117 = vst [vmem:[%s7887_s21 + $0x170] sm:$0xf] %v5830_v57  ;;  %v5826_v27 = vpack.c.bf16 %v1722_v45, %v1722_v45  ;;  %v1733_v6 = vadd.f32 %v6219_v0, %v8026_v2  ;;  %v5771_v63 = vpack.c.bf16 %v1423_v20, %v1421_v10  ;;  %3550 = vmatprep.mubr.bf16.mxu0 %v9079_v42  ;;  %v8049_v20 = vpop.permute.xlu1 %2191 }
 0x317   : > { %6321 = vmatpush3.bf16.msra.mxu0 %v7524_v29  ;;  %v1724_v4 = vpop.f32.mrf.mxu1  ;;  %v1428_v45 = vpop.f32.mrf.mxu0  ;;  %v1427_v53 = vadd.f32 %v1426_v1, %v9088_v58 }
 0x318   : > { %2113 = vst [vmem:[%s7887_s21 + $0x158] sm:$0xf] %v5826_v27  ;;  %v5832_v34 = vpack.c.bf16 %v1733_v6, %v1733_v6  ;;  %6322 = vmatprep.subr.bf16.mxu0 %v9080_v38  ;;  %v1725_v57 = vadd.f32 %v1724_v4, %v9119_v41  ;;  %2058 = vst [vmem:[%s7887_s21 + $0xc] sm:$0xff] %v5771_v63  ;;  %v1429_v19 = vadd.f32 %v1428_v45, %v9088_v58  ;;  %v8056_v4 = vpop.permute.xlu0 %2196 }
 0x319   : > { %v2474_v0 = vpop.f32.mrf.mxu1  ;;  %4589 = vmatmul.mubr.bf16.vlgmr.msra.gmra.mxu1 %v8031_v59  ;;  %v1430_v10 = vpop.f32.mrf.mxu0 }
 0x31a   : > { %2119 = vst [vmem:[%s7887_s21 + $0x17c] sm:$0xf] %v5832_v34  ;;  %v5828_v29 = vpack.c.bf16 %v1725_v57, %v1725_v57  ;;  %4598 = vmatprep.mubr.bf16.mxu1 %v9079_v42  ;;  %v5773_v27 = vpack.c.bf16 %v1429_v19, %v1427_v53  ;;  %v2475_v1 = vadd.f32 %v2474_v0, %v8036_v46 }
 0x31b   : > { %6323 = vmatpush3.bf16.msra.mxu0 %v9080_v38  ;;  %v2476_v6 = vpop.f32.mrf.mxu1  ;;  %v1432_v58 = vpop.f32.mrf.mxu0  ;;  %v1431_v34 = vadd.f32 %v1430_v10, %v9090_v15  ;;  %v8061_v38 = vld [vmem:[#allocation2 + $0x188] sm:$0xff]  }
 0x31c   : > { %2115 = vst [vmem:[%s7887_s21 + $0x164] sm:$0xf] %v5828_v29  ;;  %6324 = vmatprep.subr.bf16.mxu0 %v9081_v56  ;;  %v2477_v63 = vadd.f32 %v2476_v6, %v8036_v46  ;;  %2060 = vst [vmem:[%s7887_s21 + $0x18] sm:$0xff] %v5773_v27  ;;  %v1433_v45 = vadd.f32 %v1432_v58, %v9090_v15  ;;  %v8070_v6 = vpop.permute.xlu1 %2201 }
 0x31d   : > { %v2478_v57 = vpop.f32.mrf.mxu1  ;;  %v1436_v19 = vpop.f32.mrf.mxu0  ;;  %3551 = vmatmul.mubr.bf16.gmra.mxu0 %v7870_v3 }
 0x31e   : > { %v5833_v53 = vpack.c.bf16 %v2477_v63, %v2475_v1  ;;  %v5775_v0 = vpack.c.bf16 %v1433_v45, %v1431_v34  ;;  %3560 = vmatprep.mubr.bf16.mxu0 %v9079_v42  ;;  %v2479_v27 = vadd.f32 %v2478_v57, %v8049_v20  ;;  %v1437_v3 = vadd.f32 %v1436_v19, %v9093_v39  ;;  %v8077_v34 = vpop.permute.xlu0 %2206 }
 0x31f   : > { %6325 = vmatpush3.bf16.msra.mxu0 %v9081_v56  ;;  %v2480_v29 = vpop.f32.mrf.mxu1  ;;  %v1438_v15 = vpop.f32.mrf.mxu0 }
 0x320   : > { %3114 = vst [vmem:[%s7887_s21 + $0x180] sm:$0xff] %v5833_v53  ;;  %6326 = vmatprep.subr.bf16.mxu0 %v9083_v26  ;;  %v2481_v10 = vadd.f32 %v2480_v29, %v8049_v20  ;;  %2062 = vst [vmem:[%s7887_s21 + $0x24] sm:$0xff] %v5775_v0  ;;  %v1439_v56 = vadd.f32 %v1438_v15, %v9093_v39  ;;  %v8087_v15 = vld [vmem:[#allocation2 + $0x190] sm:$0xff]  }
 0x321   : > { %v2484_v1 = vpop.f32.mrf.mxu1  ;;  %4599 = vmatmul.mubr.bf16.gmra.mxu1 %v8061_v38  ;;  %v1440_v63 = vpop.f32.mrf.mxu0 }
 0x322   : > { %v5835_v58 = vpack.c.bf16 %v2481_v10, %v2479_v27  ;;  %4608 = vmatprep.mubr.bf16.mxu1 %v9079_v42  ;;  %v5777_v45 = vpack.c.bf16 %v1439_v56, %v1437_v3  ;;  %v2485_v53 = vadd.f32 %v2484_v1, %v8056_v4  ;;  %v1441_v0 = vadd.f32 %v1440_v63, %v9095_v9  ;;  %v8090_v3 = vpop.permute.xlu1 %2211 }
 0x323   : > { %6327 = vmatpush3.bf16.msra.mxu0 %v9083_v26  ;;  %v2486_v57 = vpop.f32.mrf.mxu1  ;;  %v1442_v39 = vpop.f32.mrf.mxu0 }
 0x324   : > { %3116 = vst [vmem:[%s7887_s21 + $0x18c] sm:$0xff] %v5835_v58  ;;  %6328 = vmatprep.subr.bf16.mxu0 %v9084_v51  ;;  %v2487_v19 = vadd.f32 %v2486_v57, %v8056_v4  ;;  %2064 = vst [vmem:[%s7887_s21 + $0x30] sm:$0xff] %v5777_v45  ;;  %v1443_v29 = vadd.f32 %v1442_v39, %v9095_v9  ;;  %v8098_v45 = vpop.permute.xlu0 %2216 }
 0x325   : > { %v2488_v27 = vpop.f32.mrf.mxu1  ;;  %v1446_v10 = vpop.f32.mrf.mxu0  ;;  %3561 = vmatmul.mubr.bf16.gmra.mxu0 %v7885_v31 }
 0x326   : > { %v5837_v26 = vpack.c.bf16 %v2487_v19, %v2485_v53  ;;  %v5779_v56 = vpack.c.bf16 %v1443_v29, %v1441_v0  ;;  %3570 = vmatprep.mubr.bf16.mxu0 %v9079_v42  ;;  %v2489_v58 = vadd.f32 %v2488_v27, %v8070_v6  ;;  %v1447_v31 = vadd.f32 %v1446_v10, %v9092_v55  ;;  %v8109_v10 = vpop.permute.xlu1 %2221 }
 0x327   : > { %6329 = vmatpush3.bf16.msra.mxu0 %v9084_v51  ;;  %v2490_v1 = vpop.f32.mrf.mxu1  ;;  %v1448_v9 = vpop.f32.mrf.mxu0 }
 0x328   : > { %3118 = vst [vmem:[%s7887_s21 + $0x198] sm:$0xff] %v5837_v26  ;;  %6330 = vmatprep.subr.bf16.mxu0 %v9086_v14  ;;  %v2491_v63 = vadd.f32 %v2490_v1, %v8070_v6  ;;  %2066 = vst [vmem:[%s7887_s21 + $0x3c] sm:$0xff] %v5779_v56  ;;  %v1449_v51 = vadd.f32 %v1448_v9, %v9092_v55 }
 0x329   : > { %v2494_v57 = vpop.f32.mrf.mxu1  ;;  %4609 = vmatmul.mubr.bf16.gmra.mxu1 %v8087_v15  ;;  %v1450_v39 = vpop.f32.mrf.mxu0 }
 0x32a   : > { %v5839_v53 = vpack.c.bf16 %v2491_v63, %v2489_v58  ;;  %4618 = vmatprep.mubr.bf16.mxu1 %v9079_v42  ;;  %v5781_v19 = vpack.c.bf16 %v1449_v51, %v1447_v31  ;;  %v2495_v29 = vadd.f32 %v2494_v57, %v8077_v34  ;;  %v1451_v55 = vadd.f32 %v1450_v39, %v9094_v61  ;;  %v8114_v58 = vld [vmem:[#allocation2 + $0x198] sm:$0xff]   ;;  %v8117_v63 = vpop.permute.xlu0 %2226 }
 0x32b   : > { %6331 = vmatpush3.bf16.msra.mxu0 %v9086_v14  ;;  %v2496_v0 = vpop.f32.mrf.mxu1  ;;  %v1452_v27 = vpop.f32.mrf.mxu0 }
 0x32c   : > { %3120 = vst [vmem:[%s7887_s21 + $0x1a4] sm:$0xff] %v5839_v53  ;;  %v2497_v26 = vadd.f32 %v2496_v0, %v8077_v34  ;;  %2068 = vst [vmem:[%s7887_s21 + $0x48] sm:$0xff] %v5781_v19  ;;  %v1453_v56 = vadd.f32 %v1452_v27, %v9094_v61  ;;  %v8128_v27 = vpop.permute.xlu1 %2231 }
 0x32d   : > { %v2498_v1 = vpop.f32.mrf.mxu1  ;;  %v1456_v9 = vpop.f32.mrf.mxu0  ;;  %3571 = vmatmul.mubr.bf16.gmra.mxu0 %v7893_v30 }
 0x32e   : > { %v5841_v14 = vpack.c.bf16 %v2497_v26, %v2495_v29  ;;  %v5783_v31 = vpack.c.bf16 %v1453_v56, %v1451_v55  ;;  %3580 = vmatprep.mubr.bf16.mxu0 %v9079_v42  ;;  %v2499_v57 = vadd.f32 %v2498_v1, %v8090_v3  ;;  %v1457_v39 = vadd.f32 %v1456_v9, %v9097_v11  ;;  %v8133_v9 = vpop.permute.xlu0 %2236 }
 0x32f   : > { %v2500_v51 = vpop.f32.mrf.mxu1  ;;  %v1458_v53 = vpop.f32.mrf.mxu0 }
 0x330   : > { %3122 = vst [vmem:[%s7887_s21 + $0x1b0] sm:$0xff] %v5841_v14  ;;  %v2501_v61 = vadd.f32 %v2500_v51, %v8090_v3  ;;  %2070 = vst [vmem:[%s7887_s21 + $0x54] sm:$0xff] %v5783_v31  ;;  %v1459_v19 = vadd.f32 %v1458_v53, %v9097_v11 }
 0x331   : > { %v2504_v30 = vpop.f32.mrf.mxu1  ;;  %4619 = vmatmul.mubr.bf16.gmra.mxu1 %v8114_v58  ;;  %v1460_v29 = vpop.f32.mrf.mxu0 }
 0x332   : > { %v5843_v0 = vpack.c.bf16 %v2501_v61, %v2499_v57  ;;  %4628 = vmatprep.mubr.bf16.mxu1 %v9079_v42  ;;  %v5785_v26 = vpack.c.bf16 %v1459_v19, %v1457_v39  ;;  %v2505_v56 = vadd.f32 %v2504_v30, %v8098_v45  ;;  %v1461_v11 = vadd.f32 %v1460_v29, %v9099_v47  ;;  %v8138_v57 = vld [vmem:[#allocation2 + $0x1a0] sm:$0xff]  }
 0x333   : > { %v2506_v55 = vpop.f32.mrf.mxu1  ;;  %v1462_v1 = vpop.f32.mrf.mxu0 }
 0x334   : > { %3124 = vst [vmem:[%s7887_s21 + $0x1bc] sm:$0xff] %v5843_v0  ;;  %v2507_v14 = vadd.f32 %v2506_v55, %v8098_v45  ;;  %2072 = vst [vmem:[%s7887_s21 + $0x60] sm:$0xff] %v5785_v26  ;;  %v1463_v31 = vadd.f32 %v1462_v1, %v9099_v47  ;;  %v8145_v26 = vpop.permute.xlu1 %2241 }
 0x335   : > { %v2508_v51 = vpop.f32.mrf.mxu1  ;;  %v1466_v61 = vpop.f32.mrf.mxu0  ;;  %3581 = vmatmul.mubr.bf16.gmra.mxu0 %v7911_v35 }
 0x336   : > { %v5845_v53 = vpack.c.bf16 %v2507_v14, %v2505_v56  ;;  %v5787_v39 = vpack.c.bf16 %v1463_v31, %v1461_v11  ;;  %3590 = vmatprep.mubr.bf16.mxu0 %v9079_v42  ;;  %v2509_v30 = vadd.f32 %v2508_v51, %v8109_v10  ;;  %v1467_v47 = vadd.f32 %v1466_v61, %v9096_v60  ;;  %v8152_v14 = vpop.permute.xlu0 %2246 }
 0x337   : > { %v2510_v19 = vpop.f32.mrf.mxu1  ;;  %v1468_v0 = vpop.f32.mrf.mxu0  ;;  %9120 = vst [vmem:[#allocation43_spill] sm:$0xff] %v8152_v14 }
 0x338   : > { %3126 = vst [vmem:[%s7887_s21 + $0x1c8] sm:$0xff] %v5845_v53  ;;  %v2511_v29 = vadd.f32 %v2510_v19, %v8109_v10  ;;  %2074 = vst [vmem:[%s7887_s21 + $0x6c] sm:$0xff] %v5787_v39  ;;  %v1469_v55 = vadd.f32 %v1468_v0, %v9096_v60 }
 0x339   : > { %v2514_v35 = vpop.f32.mrf.mxu1  ;;  %4629 = vmatmul.mubr.bf16.gmra.mxu1 %v8138_v57  ;;  %v1470_v1 = vpop.f32.mrf.mxu0 }
 0x33a   : > { %v5847_v56 = vpack.c.bf16 %v2511_v29, %v2509_v30  ;;  %4638 = vmatprep.mubr.bf16.mxu1 %v9079_v42  ;;  %v5789_v11 = vpack.c.bf16 %v1469_v55, %v1467_v47  ;;  %v2515_v51 = vadd.f32 %v2514_v35, %v8117_v63  ;;  %v1471_v60 = vadd.f32 %v1470_v1, %v9098_v25  ;;  %v8160_v30 = vld [vmem:[#allocation2 + $0x1a8] sm:$0xff]   ;;  %v8163_v47 = vpop.permute.xlu1 %2251 }
 0x33b   : > { %v2516_v31 = vpop.f32.mrf.mxu1  ;;  %v1472_v53 = vpop.f32.mrf.mxu0  ;;  %9121 = vst [vmem:[#allocation40_spill] sm:$0xff] %v8163_v47 }
 0x33c   : > { %3128 = vst [vmem:[%s7887_s21 + $0x1d4] sm:$0xff] %v5847_v56  ;;  %v2517_v61 = vadd.f32 %v2516_v31, %v8117_v63  ;;  %2076 = vst [vmem:[%s7887_s21 + $0x78] sm:$0xff] %v5789_v11  ;;  %v1473_v39 = vadd.f32 %v1472_v53, %v9098_v25  ;;  %v8169_v11 = vpop.permute.xlu0 %2256 }
 0x33d   : > { %v2518_v19 = vpop.f32.mrf.mxu1  ;;  %v1476_v29 = vpop.f32.mrf.mxu0  ;;  %3591 = vmatmul.mubr.bf16.gmra.mxu0 %v7917_v54 }
 0x33e   : > { %v5849_v0 = vpack.c.bf16 %v2517_v61, %v2515_v51  ;;  %v5791_v55 = vpack.c.bf16 %v1473_v39, %v1471_v60  ;;  %3600 = vmatprep.mubr.bf16.mxu0 %v9079_v42  ;;  %v2519_v56 = vadd.f32 %v2518_v19, %v8128_v27  ;;  %v1477_v31 = vadd.f32 %v1476_v29, %v9101_v32 }
 0x33f   : > { %v2520_v35 = vpop.f32.mrf.mxu1  ;;  %v1478_v1 = vpop.f32.mrf.mxu0 }
 0x340   : > { %3130 = vst [vmem:[%s7887_s21 + $0x1e0] sm:$0xff] %v5849_v0  ;;  %v2521_v25 = vadd.f32 %v2520_v35, %v8128_v27  ;;  %2078 = vst [vmem:[%s7887_s21 + $0x84] sm:$0xff] %v5791_v55  ;;  %v1479_v54 = vadd.f32 %v1478_v1, %v9101_v32  ;;  %v8179_v35 = vpop.permute.xlu1 %2261  ;;  %v8184_v1 = vld [vmem:[#allocation2 + $0x1b0] sm:$0xff]  }
 0x341   : > { %v2524_v51 = vpop.f32.mrf.mxu1  ;;  %4639 = vmatmul.mubr.bf16.gmra.mxu1 %v8160_v30  ;;  %v1480_v61 = vpop.f32.mrf.mxu0 }
 0x342   : > { %v5851_v53 = vpack.c.bf16 %v2521_v25, %v2519_v56  ;;  %4648 = vmatprep.mubr.bf16.mxu1 %v9079_v42  ;;  %v5793_v60 = vpack.c.bf16 %v1479_v54, %v1477_v31  ;;  %v2525_v19 = vadd.f32 %v2524_v51, %v8133_v9  ;;  %v1481_v32 = vadd.f32 %v1480_v61, %v9103_v43  ;;  %v8187_v54 = vpop.permute.xlu0 %2266 }
 0x343   : > { %v2526_v39 = vpop.f32.mrf.mxu1  ;;  %v1482_v0 = vpop.f32.mrf.mxu0 }
 0x344   : > { %3132 = vst [vmem:[%s7887_s21 + $0x1ec] sm:$0xff] %v5851_v53  ;;  %v2527_v55 = vadd.f32 %v2526_v39, %v8133_v9  ;;  %2080 = vst [vmem:[%s7887_s21 + $0x90] sm:$0xff] %v5793_v60  ;;  %v1483_v29 = vadd.f32 %v1482_v0, %v9103_v43 }
 0x345   : > { %v2528_v56 = vpop.f32.mrf.mxu1  ;;  %v1486_v31 = vpop.f32.mrf.mxu0  ;;  %3601 = vmatmul.mubr.bf16.gmra.mxu0 %v7935_v44 }
 0x346   : > { %v5853_v25 = vpack.c.bf16 %v2527_v55, %v2525_v19  ;;  %v5795_v51 = vpack.c.bf16 %v1483_v29, %v1481_v32  ;;  %3610 = vmatprep.mubr.bf16.mxu0 %v9079_v42  ;;  %v2529_v60 = vadd.f32 %v2528_v56, %v8145_v26  ;;  %v1487_v39 = vadd.f32 %v1486_v31, %v9100_v17  ;;  %v8198_v32 = vpop.permute.xlu1 %2271 }
 0x347   : > { %v2530_v53 = vpop.f32.mrf.mxu1  ;;  %v1488_v61 = vpop.f32.mrf.mxu0  ;;  %9122 = vst [vmem:[#allocation41_spill] sm:$0xff] %v8198_v32 }
 0x348   : > { %3134 = vst [vmem:[%s7887_s21 + $0x1f8] sm:$0xff] %v5853_v25  ;;  %v2531_v43 = vadd.f32 %v2530_v53, %v8145_v26  ;;  %2082 = vst [vmem:[%s7887_s21 + $0x9c] sm:$0xff] %v5795_v51  ;;  %v1489_v19 = vadd.f32 %v1488_v61, %v9100_v17  ;;  %v8203_v53 = vpop.permute.xlu0 %2276 }
 0x349   : > { %v2534_v44 = vpop.f32.mrf.mxu1  ;;  %4649 = vmatmul.mubr.bf16.gmra.mxu1 %v8184_v1  ;;  %v1490_v55 = vpop.f32.mrf.mxu0 }
 0x34a   : > { %v5855_v0 = vpack.c.bf16 %v2531_v43, %v2529_v60  ;;  %4658 = vmatprep.mubr.bf16.mxu1 %v9079_v42  ;;  %v5797_v29 = vpack.c.bf16 %v1489_v19, %v1487_v39  ;;  %v2535_v25 = vadd.f32 %v2534_v44, %v8152_v14  ;;  %v1491_v17 = vadd.f32 %v1490_v55, %v9102_v36  ;;  %v8208_v43 = vld [vmem:[#allocation2 + $0x1b8] sm:$0xff]  }
 0x34b   : > { %v2536_v56 = vpop.f32.mrf.mxu1  ;;  %v1492_v51 = vpop.f32.mrf.mxu0 }
 0x34c   : > { %3136 = vst [vmem:[%s7887_s21 + $0x204] sm:$0xff] %v5855_v0  ;;  %v2537_v31 = vadd.f32 %v2536_v56, %v8152_v14  ;;  %2084 = vst [vmem:[%s7887_s21 + $0xa8] sm:$0xff] %v5797_v29  ;;  %v1493_v60 = vadd.f32 %v1492_v51, %v9102_v36  ;;  %v8215_v14 = vpop.permute.xlu1 %2281 }
 0x34d   : > { %v2538_v61 = vpop.f32.mrf.mxu1  ;;  %v1496_v19 = vpop.f32.mrf.mxu0  ;;  %3611 = vmatmul.mubr.bf16.gmra.mxu0 %v7941_v49  ;;  %9123 = vst [vmem:[#allocation44_spill] sm:$0xff] %v8215_v14 }
 0x34e   : > { %v5857_v39 = vpack.c.bf16 %v2537_v31, %v2535_v25  ;;  %v5799_v0 = vpack.c.bf16 %v1493_v60, %v1491_v17  ;;  %3620 = vmatprep.mubr.bf16.mxu0 %v9079_v42  ;;  %v2539_v29 = vadd.f32 %v2538_v61, %v8163_v47  ;;  %v1497_v36 = vadd.f32 %v1496_v19, %v9105_v12  ;;  %v8222_v17 = vpop.permute.xlu0 %2286 }
 0x34f   : > { %v2540_v44 = vpop.f32.mrf.mxu1  ;;  %v1498_v56 = vpop.f32.mrf.mxu0 }
 0x350   : > { %3138 = vst [vmem:[%s7887_s21 + $0x210] sm:$0xff] %v5857_v39  ;;  %v2541_v55 = vadd.f32 %v2540_v44, %v8163_v47  ;;  %2086 = vst [vmem:[%s7887_s21 + $0xb4] sm:$0xff] %v5799_v0  ;;  %v1499_v25 = vadd.f32 %v1498_v56, %v9105_v12  ;;  %v8230_v56 = vld [vmem:[#allocation2 + $0x1c0] sm:$0xff]  }
 0x351   : > { %v2544_v49 = vpop.f32.mrf.mxu1  ;;  %4659 = vmatmul.mubr.bf16.gmra.mxu1 %v8208_v43  ;;  %v1500_v31 = vpop.f32.mrf.mxu0 }
 0x352   : > { %v5859_v51 = vpack.c.bf16 %v2541_v55, %v2539_v29  ;;  %4668 = vmatprep.mubr.bf16.mxu1 %v9079_v42  ;;  %v5801_v60 = vpack.c.bf16 %v1499_v25, %v1497_v36  ;;  %v2545_v39 = vadd.f32 %v2544_v49, %v8169_v11  ;;  %v1501_v12 = vadd.f32 %v1500_v31, %v9107_v33  ;;  %v8233_v36 = vpop.permute.xlu1 %2291 }
 0x353   : > { %v2546_v61 = vpop.f32.mrf.mxu1  ;;  %v1502_v0 = vpop.f32.mrf.mxu0  ;;  %9124 = vst [vmem:[#allocation42_spill] sm:$0xff] %v8233_v36 }
 0x354   : > { %3140 = vst [vmem:[%s7887_s21 + $0x21c] sm:$0xff] %v5859_v51  ;;  %v2547_v19 = vadd.f32 %v2546_v61, %v8169_v11  ;;  %2088 = vst [vmem:[%s7887_s21 + $0xc0] sm:$0xff] %v5801_v60  ;;  %v1503_v44 = vadd.f32 %v1502_v0, %v9107_v33  ;;  %v8239_v60 = vpop.permute.xlu0 %2296 }
 0x355   : > { %v2548_v29 = vpop.f32.mrf.mxu1  ;;  %v1506_v47 = vpop.f32.mrf.mxu0  ;;  %3621 = vmatmul.mubr.bf16.gmra.mxu0 %v7955_v16 }
 0x356   : > { %v5861_v55 = vpack.c.bf16 %v2547_v19, %v2545_v39  ;;  %v5803_v25 = vpack.c.bf16 %v1503_v44, %v1501_v12  ;;  %3630 = vmatprep.mubr.bf16.mxu0 %v9079_v42  ;;  %v2549_v51 = vadd.f32 %v2548_v29, %v8179_v35  ;;  %v1507_v61 = vadd.f32 %v1506_v47, %v9104_v23 }
 0x357   : > { %v2550_v49 = vpop.f32.mrf.mxu1  ;;  %v1508_v31 = vpop.f32.mrf.mxu0 }
 0x358   : > { %3142 = vst [vmem:[%s7887_s21 + $0x228] sm:$0xff] %v5861_v55  ;;  %v2551_v33 = vadd.f32 %v2550_v49, %v8179_v35  ;;  %2090 = vst [vmem:[%s7887_s21 + $0xcc] sm:$0xff] %v5803_v25  ;;  %v1509_v16 = vadd.f32 %v1508_v31, %v9104_v23  ;;  %v8249_v49 = vpop.permute.xlu1 %2301  ;;  %v8254_v31 = vld [vmem:[#allocation2 + $0x1c8] sm:$0xff]  }
 0x359   : > { %v2554_v39 = vpop.f32.mrf.mxu1  ;;  %4669 = vmatmul.mubr.bf16.gmra.mxu1 %v8230_v56  ;;  %v1510_v19 = vpop.f32.mrf.mxu0 }
 0x35a   : > { %v5863_v0 = vpack.c.bf16 %v2551_v33, %v2549_v51  ;;  %4678 = vmatprep.mubr.bf16.mxu1 %v9079_v42  ;;  %v5805_v12 = vpack.c.bf16 %v1509_v16, %v1507_v61  ;;  %v2555_v29 = vadd.f32 %v2554_v39, %v8187_v54  ;;  %v1511_v23 = vadd.f32 %v1510_v19, %v9106_v40  ;;  %v8257_v16 = vpop.permute.xlu0 %2306 }
 0x35b   : > { %v2556_v44 = vpop.f32.mrf.mxu1  ;;  %v1512_v55 = vpop.f32.mrf.mxu0  ;;  %9125 = vst [vmem:[#allocation45_spill] sm:$0xff] %v8257_v16 }
 0x35c   : > { %3144 = vst [vmem:[%s7887_s21 + $0x234] sm:$0xff] %v5863_v0  ;;  %v2557_v25 = vadd.f32 %v2556_v44, %v8187_v54  ;;  %2092 = vst [vmem:[%s7887_s21 + $0xd8] sm:$0xff] %v5805_v12  ;;  %v1513_v47 = vadd.f32 %v1512_v55, %v9106_v40 }
 0x35d   : > { %v2558_v51 = vpop.f32.mrf.mxu1  ;;  %v1516_v61 = vpop.f32.mrf.mxu0  ;;  %3631 = vmatmul.mubr.bf16.gmra.mxu0 %v7961_v13 }
 0x35e   : > { %v5865_v33 = vpack.c.bf16 %v2557_v25, %v2555_v29  ;;  %v5807_v39 = vpack.c.bf16 %v1513_v47, %v1511_v23  ;;  %3640 = vmatprep.mubr.bf16.mxu0 %v9079_v42  ;;  %v2559_v12 = vadd.f32 %v2558_v51, %v8198_v32  ;;  %v1517_v44 = vadd.f32 %v1516_v61, %v9109_v48  ;;  %v8268_v23 = vpop.permute.xlu1 %2311 }
 0x35f   : > { %v2560_v0 = vpop.f32.mrf.mxu1  ;;  %v1518_v19 = vpop.f32.mrf.mxu0  ;;  %9126 = vst [vmem:[#allocation11_spill] sm:$0xff] %v8268_v23 }
 0x360   : > { %3146 = vst [vmem:[%s7887_s21 + $0x240] sm:$0xff] %v5865_v33  ;;  %v2561_v40 = vadd.f32 %v2560_v0, %v8198_v32  ;;  %2094 = vst [vmem:[%s7887_s21 + $0xe4] sm:$0xff] %v5807_v39  ;;  %v1519_v29 = vadd.f32 %v1518_v19, %v9109_v48  ;;  %v8273_v0 = vpop.permute.xlu0 %2316 }
 0x361   : > { %v2564_v13 = vpop.f32.mrf.mxu1  ;;  %4679 = vmatmul.mubr.bf16.gmra.mxu1 %v8254_v31  ;;  %v1520_v25 = vpop.f32.mrf.mxu0 }
 0x362   : > { %v5867_v55 = vpack.c.bf16 %v2561_v40, %v2559_v12  ;;  %4688 = vmatprep.mubr.bf16.mxu1 %v9079_v42  ;;  %v5809_v47 = vpack.c.bf16 %v1519_v29, %v1517_v44  ;;  %v2565_v33 = vadd.f32 %v2564_v13, %v8203_v53  ;;  %v1521_v48 = vadd.f32 %v1520_v25, %v9112_v24  ;;  %v8278_v40 = vld [vmem:[#allocation2 + $0x1d0] sm:$0xff]   ;;  %v8285_v32 = vpop.permute.xlu1 %2321 }
 0x363   : > { %v2566_v51 = vpop.f32.mrf.mxu1  ;;  %v1522_v39 = vpop.f32.mrf.mxu0 }
 0x364   : > { %3148 = vst [vmem:[%s7887_s21 + $0x24c] sm:$0xff] %v5867_v55  ;;  %v2567_v61 = vadd.f32 %v2566_v51, %v8203_v53  ;;  %2096 = vst [vmem:[%s7887_s21 + $0xf0] sm:$0xff] %v5809_v47  ;;  %v1523_v12 = vadd.f32 %v1522_v39, %v9112_v24 }
 0x365   : > { %v2568_v19 = vpop.f32.mrf.mxu1  ;;  %v1526_v29 = vpop.f32.mrf.mxu0  ;;  %3641 = vmatmul.mubr.bf16.gmra.mxu0 %v7972_v22 }
 0x366   : > { %v5869_v44 = vpack.c.bf16 %v2567_v61, %v2565_v33  ;;  %v5811_v55 = vpack.c.bf16 %v1523_v12, %v1521_v48  ;;  %3650 = vmatprep.mubr.bf16.mxu0 %v9079_v42  ;;  %v2569_v47 = vadd.f32 %v2568_v19, %v8215_v14  ;;  %v1527_v24 = vadd.f32 %v1526_v29, %v9108_v21  ;;  %v8292_v48 = vpop.permute.xlu0 %2326 }
 0x367   : > { %v2570_v13 = vpop.f32.mrf.mxu1  ;;  %v1528_v51 = vpop.f32.mrf.mxu0 }
 0x368   : > { %3150 = vst [vmem:[%s7887_s21 + $0x258] sm:$0xff] %v5869_v44  ;;  %v2571_v25 = vadd.f32 %v2570_v13, %v8215_v14  ;;  %2098 = vst [vmem:[%s7887_s21 + $0xfc] sm:$0xff] %v5811_v55  ;;  %v1529_v33 = vadd.f32 %v1528_v51, %v9108_v21  ;;  %v8300_v51 = vld [vmem:[#allocation2 + $0x1d8] sm:$0xff]  }
 0x369   : > { %v2574_v22 = vpop.f32.mrf.mxu1  ;;  %4689 = vmatmul.mubr.bf16.gmra.mxu1 %v8278_v40  ;;  %v1530_v61 = vpop.f32.mrf.mxu0 }
 0x36a   : > { %v5871_v39 = vpack.c.bf16 %v2571_v25, %v2569_v47  ;;  %4698 = vmatprep.mubr.bf16.mxu1 %v9079_v42  ;;  %v5813_v12 = vpack.c.bf16 %v1529_v33, %v1527_v24  ;;  %v2575_v44 = vadd.f32 %v2574_v22, %v8222_v17  ;;  %v1531_v21 = vadd.f32 %v1530_v61, %v9110_v62  ;;  %v8303_v24 = vpop.permute.xlu1 %2331 }
 0x36b   : > { %v2576_v19 = vpop.f32.mrf.mxu1  ;;  %v1532_v55 = vpop.f32.mrf.mxu0 }
 0x36c   : > { %3152 = vst [vmem:[%s7887_s21 + $0x264] sm:$0xff] %v5871_v39  ;;  %v2577_v29 = vadd.f32 %v2576_v19, %v8222_v17  ;;  %2100 = vst [vmem:[%s7887_s21 + $0x108] sm:$0xff] %v5813_v12  ;;  %v1533_v13 = vadd.f32 %v1532_v55, %v9110_v62  ;;  %v8309_v12 = vpop.permute.xlu0 %2336 }
 0x36d   : > { %v2578_v47 = vpop.f32.mrf.mxu1  ;;  %v1536_v14 = vpop.f32.mrf.mxu0  ;;  %3651 = vmatmul.mubr.bf16.gmra.mxu0 %v7977_v28 }
 0x36e   : > { %v5873_v25 = vpack.c.bf16 %v2577_v29, %v2575_v44  ;;  %v5815_v33 = vpack.c.bf16 %v1533_v13, %v1531_v21  ;;  %3660 = vmatprep.mubr.bf16.mxu0 %v9079_v42  ;;  %v2579_v39 = vadd.f32 %v2578_v47, %v8233_v36  ;;  %v1537_v19 = vadd.f32 %v1536_v14, %v9114_v37 }
 0x36f   : > { %v2580_v22 = vpop.f32.mrf.mxu1  ;;  %v1538_v61 = vpop.f32.mrf.mxu0 }
 0x370   : > { %3154 = vst [vmem:[%s7887_s21 + $0x270] sm:$0xff] %v5873_v25  ;;  %v2581_v62 = vadd.f32 %v2580_v22, %v8233_v36  ;;  %2102 = vst [vmem:[%s7887_s21 + $0x114] sm:$0xff] %v5815_v33  ;;  %v1539_v28 = vadd.f32 %v1538_v61, %v9114_v37  ;;  %v8319_v22 = vpop.permute.xlu1 %2341  ;;  %v8324_v61 = vld [vmem:[#allocation2 + $0x1e0] sm:$0xff]  }
 0x371   : > { %v2584_v44 = vpop.f32.mrf.mxu1  ;;  %4699 = vmatmul.mubr.bf16.gmra.mxu1 %v8300_v51  ;;  %v1540_v29 = vpop.f32.mrf.mxu0 }
 0x372   : > { %v5875_v55 = vpack.c.bf16 %v2581_v62, %v2579_v39  ;;  %4708 = vmatprep.mubr.bf16.mxu1 %v9079_v42  ;;  %v5817_v21 = vpack.c.bf16 %v1539_v28, %v1537_v19  ;;  %v2585_v47 = vadd.f32 %v2584_v44, %v8239_v60  ;;  %v1541_v37 = vadd.f32 %v1540_v29, %v9117_v50  ;;  %v8327_v28 = vpop.permute.xlu0 %3244 }
 0x373   : > { %v2586_v13 = vpop.f32.mrf.mxu1  ;;  %v1542_v25 = vpop.f32.mrf.mxu0 }
 0x374   : > { %3156 = vst [vmem:[%s7887_s21 + $0x27c] sm:$0xff] %v5875_v55  ;;  %v2587_v33 = vadd.f32 %v2586_v13, %v8239_v60  ;;  %2104 = vst [vmem:[%s7887_s21 + $0x120] sm:$0xff] %v5817_v21  ;;  %v1543_v14 = vadd.f32 %v1542_v25, %v9117_v50 }
 0x375   : > { %v2588_v39 = vpop.f32.mrf.mxu1  ;;  %v1546_v19 = vpop.f32.mrf.mxu0  ;;  %3661 = vmatmul.mubr.bf16.gmra.mxu0 %v7988_v7 }
 0x376   : > { %v5877_v62 = vpack.c.bf16 %v2587_v33, %v2585_v47  ;;  %v5819_v44 = vpack.c.bf16 %v1543_v14, %v1541_v37  ;;  %3670 = vmatprep.mubr.bf16.mxu0 %v9079_v42  ;;  %v2589_v21 = vadd.f32 %v2588_v39, %v8249_v49  ;;  %v1547_v13 = vadd.f32 %v1546_v19, %v9113_v52  ;;  %v8338_v37 = vpop.permute.xlu1 %3249 }
 0x377   : > { %v2590_v55 = vpop.f32.mrf.mxu1  ;;  %v1548_v29 = vpop.f32.mrf.mxu0 }
 0x378   : > { %3158 = vst [vmem:[%s7887_s21 + $0x288] sm:$0xff] %v5877_v62  ;;  %v2591_v50 = vadd.f32 %v2590_v55, %v8249_v49  ;;  %2106 = vst [vmem:[%s7887_s21 + $0x12c] sm:$0xff] %v5819_v44  ;;  %v1549_v47 = vadd.f32 %v1548_v29, %v9113_v52  ;;  %v8343_v55 = vpop.permute.xlu0 %3254 }
 0x379   : > { %v2594_v7 = vpop.f32.mrf.mxu1  ;;  %4709 = vmatmul.mubr.bf16.gmra.mxu1 %v8324_v61  ;;  %v1550_v33 = vpop.f32.mrf.mxu0 }
 0x37a   : > { %v5879_v25 = vpack.c.bf16 %v2591_v50, %v2589_v21  ;;  %4718 = vmatprep.mubr.bf16.mxu1 %v9079_v42  ;;  %v5821_v14 = vpack.c.bf16 %v1549_v47, %v1547_v13  ;;  %v2595_v62 = vadd.f32 %v2594_v7, %v8257_v16  ;;  %v1551_v52 = vadd.f32 %v1550_v33, %v9116_v18  ;;  %v8348_v50 = vld [vmem:[#allocation2 + $0x1e8] sm:$0xff]  }
 0x37b   : > { %v2596_v39 = vpop.f32.mrf.mxu1  ;;  %v1552_v44 = vpop.f32.mrf.mxu0 }
 0x37c   : > { %3160 = vst [vmem:[%s7887_s21 + $0x294] sm:$0xff] %v5879_v25  ;;  %v2597_v19 = vadd.f32 %v2596_v39, %v8257_v16  ;;  %2108 = vst [vmem:[%s7887_s21 + $0x138] sm:$0xff] %v5821_v14  ;;  %v1553_v21 = vadd.f32 %v1552_v44, %v9116_v18  ;;  %v9127_v25 = vld [vmem:[#allocation38_spill] sm:$0xff]  ;;  %v8355_v16 = vpop.permute.xlu1 %3259 }
 0x37d   : > { %v2598_v29 = vpop.f32.mrf.mxu1  ;;  %v1556_v47 = vpop.f32.mrf.mxu0  ;;  %3671 = vmatmul.mubr.bf16.gmra.mxu0 %v9127_v25 }
 0x37e   : > { %v5881_v13 = vpack.c.bf16 %v2597_v19, %v2595_v62  ;;  %v5823_v36 = vpack.c.bf16 %v1553_v21, %v1551_v52  ;;  %3680 = vmatprep.mubr.bf16.mxu0 %v9079_v42  ;;  %v2599_v14 = vadd.f32 %v2598_v29, %v8268_v23  ;;  %v1557_v18 = vadd.f32 %v1556_v47, %v9118_v5  ;;  %v8362_v21 = vpop.permute.xlu0 %3264 }
 0x37f   : > { %v2600_v7 = vpop.f32.mrf.mxu1  ;;  %v1558_v39 = vpop.f32.mrf.mxu0 }
 0x380   : > { %3162 = vst [vmem:[%s7887_s21 + $0x2a0] sm:$0xff] %v5881_v13  ;;  %v2601_v33 = vadd.f32 %v2600_v7, %v8268_v23  ;;  %2110 = vst [vmem:[%s7887_s21 + $0x144] sm:$0xff] %v5823_v36  ;;  %v1559_v62 = vadd.f32 %v1558_v39, %v9118_v5  ;;  %v8370_v39 = vld [vmem:[#allocation2 + $0x1f0] sm:$0xff]  }
 0x381   : > { %v2604_v44 = vpop.f32.mrf.mxu1  ;;  %4719 = vmatmul.mubr.bf16.gmra.mxu1 %v8348_v50  ;;  %v1560_v52 = vpop.f32.mrf.mxu0 }
 0x382   : > { %v5883_v19 = vpack.c.bf16 %v2601_v33, %v2599_v14  ;;  %4728 = vmatprep.mubr.bf16.mxu1 %v9079_v42  ;;  %v5825_v29 = vpack.c.bf16 %v1559_v62, %v1557_v18  ;;  %v2605_v25 = vadd.f32 %v2604_v44, %v8273_v0  ;;  %v1561_v5 = vadd.f32 %v1560_v52, %v9119_v41  ;;  %v9128_v18 = vld [vmem:[#allocation39_spill] sm:$0xff]  ;;  %v8373_v62 = vpop.permute.xlu1 %3269 }
 0x383   : > { %v2606_v13 = vpop.f32.mrf.mxu1  ;;  %v1562_v36 = vpop.f32.mrf.mxu0 }
 0x384   : > { %3164 = vst [vmem:[%s7887_s21 + $0x2ac] sm:$0xff] %v5883_v19  ;;  %v2607_v47 = vadd.f32 %v2606_v13, %v8273_v0  ;;  %2112 = vst [vmem:[%s7887_s21 + $0x150] sm:$0xff] %v5825_v29  ;;  %v1563_v7 = vadd.f32 %v1562_v36, %v9119_v41  ;;  %v8379_v13 = vpop.permute.xlu0 %3274 }
 0x385   : > { %v2608_v14 = vpop.f32.mrf.mxu1  ;;  %v1566_v23 = vpop.f32.mrf.mxu0  ;;  %3681 = vmatmul.mubr.bf16.gmra.mxu0 %v9128_v18 }
 0x386   : > { %v5885_v33 = vpack.c.bf16 %v2607_v47, %v2605_v25  ;;  %v5827_v19 = vpack.c.bf16 %v1563_v7, %v1561_v5  ;;  %6332 = vmatprep.mubr.bf16.mxu0 %v8031_v59  ;;  %v2609_v52 = vadd.f32 %v2608_v14, %v8285_v32  ;;  %v1567_v25 = vadd.f32 %v1566_v23, %v8014_v8 }
 0x387   : > { %v2610_v44 = vpop.f32.mrf.mxu1  ;;  %v1568_v29 = vpop.f32.mrf.mxu0 }
 0x388   : > { %3166 = vst [vmem:[%s7887_s21 + $0x2b8] sm:$0xff] %v5885_v33  ;;  %v2611_v41 = vadd.f32 %v2610_v44, %v8285_v32  ;;  %2114 = vst [vmem:[%s7887_s21 + $0x15c] sm:$0xff] %v5827_v19  ;;  %v1569_v36 = vadd.f32 %v1568_v29, %v8014_v8  ;;  %v8389_v44 = vpop.permute.xlu1 %3279  ;;  %v8394_v29 = vld [vmem:[#allocation2 + $0x1f8] sm:$0xff]  }
 0x389   : > { %v2614_v47 = vpop.f32.mrf.mxu1  ;;  %4729 = vmatmul.mubr.bf16.gmra.mxu1 %v8370_v39  ;;  %v1570_v59 = vpop.f32.mrf.mxu0 }
 0x38a   : > { %v5887_v5 = vpack.c.bf16 %v2611_v41, %v2609_v52  ;;  %4738 = vmatprep.mubr.bf16.mxu1 %v9079_v42  ;;  %v5829_v7 = vpack.c.bf16 %v1569_v36, %v1567_v25  ;;  %v2615_v33 = vadd.f32 %v2614_v47, %v8292_v48  ;;  %v1571_v8 = vadd.f32 %v1570_v59, %v8026_v2  ;;  %v8397_v25 = vpop.permute.xlu0 %3284 }
 0x38b   : > { %v2616_v14 = vpop.f32.mrf.mxu1  ;;  %v1572_v18 = vpop.f32.mrf.mxu0 }
 0x38c   : > { %3168 = vst [vmem:[%s7887_s21 + $0x2c4] sm:$0xff] %v5887_v5  ;;  %v2617_v19 = vadd.f32 %v2616_v14, %v8292_v48  ;;  %2116 = vst [vmem:[%s7887_s21 + $0x168] sm:$0xff] %v5829_v7  ;;  %v1573_v23 = vadd.f32 %v1572_v18, %v8026_v2 }
 0x38d   : > { %v2618_v52 = vpop.f32.mrf.mxu1  ;;  %v6238_v41 = vpop.f32.mrf.mxu0  ;;  %6333 = vmatmul.mubr.bf16.vlgmr.msra.gmra.mxu0 %v8061_v38 }
 0x38e   : > { %v5889_v42 = vpack.c.bf16 %v2617_v19, %v2615_v33  ;;  %v5831_v36 = vpack.c.bf16 %v1573_v23, %v1571_v8  ;;  %v2676_v47 = vadd.f32 %v6238_v41, %v8056_v4  ;;  %6336 = vmatprep.mubr.bf16.mxu0 %v8087_v15  ;;  %v2619_v2 = vadd.f32 %v2618_v52, %v8303_v24  ;;  %v8407_v19 = vpop.permute.xlu1 %3289  ;;  %v8414_v41 = vpop.permute.xlu0 %3294 }
 0x38f   : > { %v2620_v5 = vpop.f32.mrf.mxu1  ;;  %v2667_v7 = vpop.f32.mrf.mxu0 }
 0x390   : > { %3170 = vst [vmem:[%s7887_s21 + $0x2d0] sm:$0xff] %v5889_v42  ;;  %v2621_v59 = vadd.f32 %v2620_v5, %v8303_v24  ;;  %2118 = vst [vmem:[%s7887_s21 + $0x174] sm:$0xff] %v5831_v36  ;;  %v5838_v14 = vpack.c.bf16 %v2676_v47, %v2676_v47  ;;  %v2668_v38 = vadd.f32 %v2667_v7, %v8036_v46 }
 0x391   : > { %v2624_v33 = vpop.f32.mrf.mxu1  ;;  %4739 = vmatmul.mubr.bf16.gmra.mxu1 %v8394_v29  ;;  %v6239_v4 = vpop.f32.mrf.mxu0 }
 0x392   : > { %v5891_v18 = vpack.c.bf16 %v2621_v59, %v2619_v2  ;;  %3119 = vst [vmem:[%s7887_s21 + $0x1a0] sm:$0xf] %v5838_v14  ;;  %v5834_v15 = vpack.c.bf16 %v2668_v38, %v2668_v38  ;;  %v2679_v8 = vadd.f32 %v6239_v4, %v8070_v6  ;;  %v2625_v52 = vadd.f32 %v2624_v33, %v8309_v12 }
 0x393   : > { %v2626_v23 = vpop.f32.mrf.mxu1  ;;  %v2670_v46 = vpop.f32.mrf.mxu0 }
 0x394   : > { %3172 = vst [vmem:[%s7887_s21 + $0x2dc] sm:$0xff] %v5891_v18  ;;  %v2627_v42 = vadd.f32 %v2626_v23, %v8309_v12  ;;  %3115 = vst [vmem:[%s7887_s21 + $0x188] sm:$0xf] %v5834_v15  ;;  %v5840_v36 = vpack.c.bf16 %v2679_v8, %v2679_v8  ;;  %v2671_v47 = vadd.f32 %v2670_v46, %v8049_v20  ;;  %v8425_v18 = vpop.permute.xlu1 %3299  ;;  %v8430_v23 = vpop.permute.xlu0 %3304 }
 0x395   : > { %v2628_v5 = vpop.f32.mrf.mxu1  ;;  %v6242_v59 = vpop.f32.mrf.mxu0  ;;  %6337 = vmatmul.mubr.bf16.gmra.mxu0 %v8114_v58 }
 0x396   : > { %v5893_v2 = vpack.c.bf16 %v2627_v42, %v2625_v52  ;;  %3121 = vst [vmem:[%s7887_s21 + $0x1ac] sm:$0xf] %v5840_v36  ;;  %v5836_v6 = vpack.c.bf16 %v2671_v47, %v2671_v47  ;;  %v2692_v7 = vadd.f32 %v6242_v59, %v8098_v45  ;;  %6340 = vmatprep.mubr.bf16.mxu0 %v8138_v57 }
 0x397   : > { %v2630_v14 = vpop.f32.mrf.mxu1  ;;  %v2629_v38 = vadd.f32 %v2628_v5, %v8319_v22  ;;  %v2683_v20 = vpop.f32.mrf.mxu0 }
 0x398   : > { %3174 = vst [vmem:[%s7887_s21 + $0x2e8] sm:$0xff] %v5893_v2  ;;  %v2631_v33 = vadd.f32 %v2630_v14, %v8319_v22  ;;  %3117 = vst [vmem:[%s7887_s21 + $0x194] sm:$0xf] %v5836_v6  ;;  %v5846_v58 = vpack.c.bf16 %v2692_v7, %v2692_v7  ;;  %v2684_v4 = vadd.f32 %v2683_v20, %v8077_v34 }
 0x399   : > { %v6286_v15 = vpop.f32.mrf.mxu1  ;;  %v6243_v8 = vpop.f32.mrf.mxu0 }
 0x39a   : > { %v5895_v45 = vpack.c.bf16 %v2631_v33, %v2629_v38  ;;  %v3734_v57 = vadd.f32 %v6286_v15, %v8343_v55  ;;  %3127 = vst [vmem:[%s7887_s21 + $0x1d0] sm:$0xf] %v5846_v58  ;;  %v5842_v52 = vpack.c.bf16 %v2684_v4, %v2684_v4  ;;  %v2695_v42 = vadd.f32 %v6243_v8, %v8109_v10  ;;  %v8441_v10 = vpop.permute.xlu1 %3309  ;;  %v8448_v15 = vpop.permute.xlu0 %3314 }
 0x39b   : > { %v3725_v46 = vpop.f32.mrf.mxu1  ;;  %v2686_v47 = vpop.f32.mrf.mxu0 }
 0x39c   : > { %3176 = vst [vmem:[%s7887_s21 + $0x2f4] sm:$0xff] %v5895_v45  ;;  %v5902_v36 = vpack.c.bf16 %v3734_v57, %v3734_v57  ;;  %v3726_v5 = vadd.f32 %v3725_v46, %v8327_v28  ;;  %3123 = vst [vmem:[%s7887_s21 + $0x1b8] sm:$0xf] %v5842_v52  ;;  %v5848_v34 = vpack.c.bf16 %v2695_v42, %v2695_v42 }
 0x39d   : > { %v2687_v2 = vadd.f32 %v2686_v47, %v8090_v3  ;;  %v6287_v59 = vpop.f32.mrf.mxu1  ;;  %v6246_v7 = vpop.f32.mrf.mxu0  ;;  %6341 = vmatmul.mubr.bf16.gmra.mxu0 %v8160_v30 }
 0x39e   : > { %4177 = vst [vmem:[%s7887_s21 + $0x320] sm:$0xf] %v5902_v36  ;;  %v5898_v6 = vpack.c.bf16 %v3726_v5, %v3726_v5  ;;  %v3737_v14 = vadd.f32 %v6287_v59, %v8355_v16  ;;  %3129 = vst [vmem:[%s7887_s21 + $0x1dc] sm:$0xf] %v5848_v34  ;;  %v2708_v33 = vadd.f32 %v6246_v7, %v8133_v9  ;;  %6344 = vmatprep.mubr.bf16.mxu0 %v8184_v1  ;;  %v8458_v34 = vpop.permute.xlu1 %3319 }
 0x39f   : > { %v5844_v38 = vpack.c.bf16 %v2687_v2, %v2687_v2  ;;  %v3728_v20 = vpop.f32.mrf.mxu1  ;;  %v2699_v58 = vpop.f32.mrf.mxu0 }
 0x3a0   : > { %4173 = vst [vmem:[%s7887_s21 + $0x308] sm:$0xf] %v5898_v6  ;;  %v5904_v3 = vpack.c.bf16 %v3737_v14, %v3737_v14  ;;  %v3729_v4 = vadd.f32 %v3728_v20, %v8338_v37  ;;  %v5854_v30 = vpack.c.bf16 %v2708_v33, %v2708_v33  ;;  %v2700_v45 = vadd.f32 %v2699_v58, %v8117_v63  ;;  %v8465_v14 = vpop.permute.xlu0 %3324 }
 0x3a1   : > { %3125 = vst [vmem:[%s7887_s21 + $0x1c4] sm:$0xf] %v5844_v38  ;;  %v6290_v8 = vpop.f32.mrf.mxu1  ;;  %v6247_v57 = vpop.f32.mrf.mxu0 }
 0x3a2   : > { %4179 = vst [vmem:[%s7887_s21 + $0x32c] sm:$0xf] %v5904_v3  ;;  %v5900_v9 = vpack.c.bf16 %v3729_v4, %v3729_v4  ;;  %v3750_v1 = vadd.f32 %v6290_v8, %v8379_v13  ;;  %3135 = vst [vmem:[%s7887_s21 + $0x200] sm:$0xf] %v5854_v30  ;;  %v5850_v52 = vpack.c.bf16 %v2700_v45, %v2700_v45  ;;  %v9129_v30 = vld [vmem:[#allocation43_spill] sm:$0xff] }
 0x3a3   : > { %v2711_v42 = vadd.f32 %v6247_v57, %v8145_v26  ;;  %v3741_v46 = vpop.f32.mrf.mxu1  ;;  %v2702_v47 = vpop.f32.mrf.mxu0 }
 0x3a4   : > { %4175 = vst [vmem:[%s7887_s21 + $0x314] sm:$0xf] %v5900_v9  ;;  %v5910_v36 = vpack.c.bf16 %v3750_v1, %v3750_v1  ;;  %v3742_v5 = vadd.f32 %v3741_v46, %v8362_v21  ;;  %3131 = vst [vmem:[%s7887_s21 + $0x1e8] sm:$0xf] %v5850_v52  ;;  %v2703_v2 = vadd.f32 %v2702_v47, %v8128_v27  ;;  %v8476_v57 = vpop.permute.xlu1 %3329  ;;  %v8482_v47 = vpop.permute.xlu0 %3334 }
 0x3a5   : > { %v5856_v63 = vpack.c.bf16 %v2711_v42, %v2711_v42  ;;  %v6291_v59 = vpop.f32.mrf.mxu1  ;;  %v6250_v7 = vpop.f32.mrf.mxu0  ;;  %6345 = vmatmul.mubr.bf16.gmra.mxu0 %v8208_v43 }
 0x3a6   : > { %4185 = vst [vmem:[%s7887_s21 + $0x350] sm:$0xf] %v5910_v36  ;;  %v5906_v6 = vpack.c.bf16 %v3742_v5, %v3742_v5  ;;  %v3753_v26 = vadd.f32 %v6291_v59, %v8389_v44  ;;  %v5852_v38 = vpack.c.bf16 %v2703_v2, %v2703_v2  ;;  %v2724_v33 = vadd.f32 %v6250_v7, %v8169_v11 }
 0x3a7   : > { %3137 = vst [vmem:[%s7887_s21 + $0x20c] sm:$0xf] %v5856_v63  ;;  %v3744_v20 = vpop.f32.mrf.mxu1  ;;  %6348 = vmatprep.mubr.bf16.mxu0 %v8230_v56  ;;  %v2715_v3 = vpop.f32.mrf.mxu0  ;;  %v9130_v63 = vld [vmem:[#allocation40_spill] sm:$0xff] }
 0x3a8   : > { %4181 = vst [vmem:[%s7887_s21 + $0x338] sm:$0xf] %v5906_v6  ;;  %v5912_v27 = vpack.c.bf16 %v3753_v26, %v3753_v26  ;;  %v3745_v58 = vadd.f32 %v3744_v20, %v8373_v62  ;;  %3133 = vst [vmem:[%s7887_s21 + $0x1f4] sm:$0xf] %v5852_v38  ;;  %v5862_v4 = vpack.c.bf16 %v2724_v33, %v2724_v33 }
 0x3a9   : > { %v2716_v43 = vadd.f32 %v2715_v3, %v9129_v30  ;;  %v6294_v45 = vpop.f32.mrf.mxu1  ;;  %v6251_v9 = vpop.f32.mrf.mxu0 }
 0x3aa   : > { %4187 = vst [vmem:[%s7887_s21 + $0x35c] sm:$0xf] %v5912_v27  ;;  %v5908_v8 = vpack.c.bf16 %v3745_v58, %v3745_v58  ;;  %v3766_v11 = vadd.f32 %v6294_v45, %v8414_v41  ;;  %3143 = vst [vmem:[%s7887_s21 + $0x230] sm:$0xf] %v5862_v4  ;;  %v2727_v1 = vadd.f32 %v6251_v9, %v8179_v35  ;;  %v8494_v58 = vpop.permute.xlu1 %3339  ;;  %v8500_v45 = vpop.permute.xlu0 %3344  ;;  %v9131_v9 = vld [vmem:[#allocation44_spill] sm:$0xff] }
 0x3ab   : > { %v5858_v56 = vpack.c.bf16 %v2716_v43, %v2716_v43  ;;  %v3757_v52 = vpop.f32.mrf.mxu1  ;;  %v2718_v46 = vpop.f32.mrf.mxu0 }
 0x3ac   : > { %4183 = vst [vmem:[%s7887_s21 + $0x344] sm:$0xf] %v5908_v8  ;;  %v5918_v42 = vpack.c.bf16 %v3766_v11, %v3766_v11  ;;  %v3758_v36 = vadd.f32 %v3757_v52, %v8397_v25  ;;  %v5864_v5 = vpack.c.bf16 %v2727_v1, %v2727_v1  ;;  %v2719_v2 = vadd.f32 %v2718_v46, %v9130_v63  ;;  %v9132_v46 = vld [vmem:[#allocation41_spill] sm:$0xff] }
 0x3ad   : > { %3139 = vst [vmem:[%s7887_s21 + $0x218] sm:$0xf] %v5858_v56  ;;  %v6295_v59 = vpop.f32.mrf.mxu1  ;;  %v6254_v7 = vpop.f32.mrf.mxu0  ;;  %6349 = vmatmul.mubr.bf16.gmra.mxu0 %v8254_v31 }
 0x3ae   : > { %4193 = vst [vmem:[%s7887_s21 + $0x380] sm:$0xf] %v5918_v42  ;;  %v5914_v6 = vpack.c.bf16 %v3758_v36, %v3758_v36  ;;  %v3769_v35 = vadd.f32 %v6295_v59, %v8425_v18  ;;  %3145 = vst [vmem:[%s7887_s21 + $0x23c] sm:$0xf] %v5864_v5  ;;  %v5860_v26 = vpack.c.bf16 %v2719_v2, %v2719_v2  ;;  %6352 = vmatprep.mubr.bf16.mxu0 %v8278_v40 }
 0x3af   : > { %v2740_v38 = vadd.f32 %v6254_v7, %v8203_v53  ;;  %v3760_v33 = vpop.f32.mrf.mxu1  ;;  %v2731_v27 = vpop.f32.mrf.mxu0 }
 0x3b0   : > { %4189 = vst [vmem:[%s7887_s21 + $0x368] sm:$0xf] %v5914_v6  ;;  %v5920_v20 = vpack.c.bf16 %v3769_v35, %v3769_v35  ;;  %v3761_v3 = vadd.f32 %v3760_v33, %v8407_v19  ;;  %3141 = vst [vmem:[%s7887_s21 + $0x224] sm:$0xf] %v5860_v26  ;;  %v2732_v31 = vadd.f32 %v2731_v27, %v8187_v54  ;;  %v8511_v6 = vpop.permute.xlu1 %3349  ;;  %v8518_v27 = vpop.permute.xlu0 %3354 }
 0x3b1   : > { %v5870_v4 = vpack.c.bf16 %v2740_v38, %v2740_v38  ;;  %v6298_v30 = vpop.f32.mrf.mxu1  ;;  %v6255_v43 = vpop.f32.mrf.mxu0 }
 0x3b2   : > { %4195 = vst [vmem:[%s7887_s21 + $0x38c] sm:$0xf] %v5920_v20  ;;  %v5916_v53 = vpack.c.bf16 %v3761_v3, %v3761_v3  ;;  %v3782_v40 = vadd.f32 %v6298_v30, %v8448_v15  ;;  %v5866_v8 = vpack.c.bf16 %v2732_v31, %v2732_v31  ;;  %v2743_v11 = vadd.f32 %v6255_v43, %v9131_v9 }
 0x3b3   : > { %3151 = vst [vmem:[%s7887_s21 + $0x260] sm:$0xf] %v5870_v4  ;;  %v3773_v56 = vpop.f32.mrf.mxu1  ;;  %v2734_v52 = vpop.f32.mrf.mxu0 }
 0x3b4   : > { %4191 = vst [vmem:[%s7887_s21 + $0x374] sm:$0xf] %v5916_v53  ;;  %v5926_v1 = vpack.c.bf16 %v3782_v40, %v3782_v40  ;;  %v3774_v54 = vadd.f32 %v3773_v56, %v8430_v23  ;;  %3147 = vst [vmem:[%s7887_s21 + $0x248] sm:$0xf] %v5866_v8  ;;  %v5872_v42 = vpack.c.bf16 %v2743_v11, %v2743_v11  ;;  %v8528_v11 = vpop.permute.xlu1 %3359  ;;  %v9133_v56 = vld [vmem:[#allocation42_spill] sm:$0xff] }
 0x3b5   : > { %v2735_v36 = vadd.f32 %v2734_v52, %v9132_v46  ;;  %v6299_v5 = vpop.f32.mrf.mxu1  ;;  %v6258_v2 = vpop.f32.mrf.mxu0  ;;  %6353 = vmatmul.mubr.bf16.gmra.mxu0 %v8300_v51 }
 0x3b6   : > { %4201 = vst [vmem:[%s7887_s21 + $0x3b0] sm:$0xf] %v5926_v1  ;;  %v5922_v63 = vpack.c.bf16 %v3774_v54, %v3774_v54  ;;  %v3785_v59 = vadd.f32 %v6299_v5, %v8458_v34  ;;  %3153 = vst [vmem:[%s7887_s21 + $0x26c] sm:$0xf] %v5872_v42  ;;  %v2756_v35 = vadd.f32 %v6258_v2, %v8239_v60  ;;  %6356 = vmatprep.mubr.bf16.mxu0 %v8324_v61  ;;  %v8535_v46 = vpop.permute.xlu0 %3364 }
 0x3b7   : > { %v5868_v7 = vpack.c.bf16 %v2735_v36, %v2735_v36  ;;  %v3776_v26 = vpop.f32.mrf.mxu1  ;;  %v2747_v33 = vpop.f32.mrf.mxu0 }
 0x3b8   : > { %4197 = vst [vmem:[%s7887_s21 + $0x398] sm:$0xf] %v5922_v63  ;;  %v5928_v38 = vpack.c.bf16 %v3785_v59, %v3785_v59  ;;  %v3777_v20 = vadd.f32 %v3776_v26, %v8441_v10  ;;  %v5878_v51 = vpack.c.bf16 %v2756_v35, %v2756_v35  ;;  %v2748_v3 = vadd.f32 %v2747_v33, %v8222_v17  ;;  %v9134_v26 = vld [vmem:[#allocation45_spill] sm:$0xff] }
 0x3b9   : > { %3149 = vst [vmem:[%s7887_s21 + $0x254] sm:$0xf] %v5868_v7  ;;  %v6302_v4 = vpop.f32.mrf.mxu1  ;;  %v6259_v31 = vpop.f32.mrf.mxu0 }
 0x3ba   : > { %4203 = vst [vmem:[%s7887_s21 + $0x3bc] sm:$0xf] %v5928_v38  ;;  %v5924_v60 = vpack.c.bf16 %v3777_v20, %v3777_v20  ;;  %v3798_v61 = vadd.f32 %v6302_v4, %v8482_v47  ;;  %3159 = vst [vmem:[%s7887_s21 + $0x290] sm:$0xf] %v5878_v51  ;;  %v5874_v30 = vpack.c.bf16 %v2748_v3, %v2748_v3  ;;  %v8546_v51 = vpop.permute.xlu1 %3369 }
 0x3bb   : > { %v2759_v53 = vadd.f32 %v6259_v31, %v8249_v49  ;;  %v3789_v43 = vpop.f32.mrf.mxu1  ;;  %v2750_v8 = vpop.f32.mrf.mxu0 }
 0x3bc   : > { %4199 = vst [vmem:[%s7887_s21 + $0x3a4] sm:$0xf] %v5924_v60  ;;  %v5934_v40 = vpack.c.bf16 %v3798_v61, %v3798_v61  ;;  %v3790_v9 = vadd.f32 %v3789_v43, %v8465_v14  ;;  %3155 = vst [vmem:[%s7887_s21 + $0x278] sm:$0xf] %v5874_v30  ;;  %v2751_v1 = vadd.f32 %v2750_v8, %v9133_v56  ;;  %v8552_v30 = vpop.permute.xlu0 %3374  ;;  %v9135_v43 = vld [vmem:[#allocation11_spill] sm:$0xff] }
 0x3bd   : > { %v5880_v17 = vpack.c.bf16 %v2759_v53, %v2759_v53  ;;  %v6303_v52 = vpop.f32.mrf.mxu1  ;;  %v6262_v42 = vpop.f32.mrf.mxu0  ;;  %6357 = vmatmul.mubr.bf16.gmra.mxu0 %v8348_v50 }
 0x3be   : > { %4209 = vst [vmem:[%s7887_s21 + $0x3e0] sm:$0xf] %v5934_v40  ;;  %v5930_v54 = vpack.c.bf16 %v3790_v9, %v3790_v9  ;;  %v3801_v49 = vadd.f32 %v6303_v52, %v8494_v58  ;;  %v5876_v36 = vpack.c.bf16 %v2751_v1, %v2751_v1  ;;  %v2772_v5 = vadd.f32 %v6262_v42, %v8273_v0 }
 0x3bf   : > { %3161 = vst [vmem:[%s7887_s21 + $0x29c] sm:$0xf] %v5880_v17  ;;  %v3792_v63 = vpop.f32.mrf.mxu1  ;;  %6360 = vmatprep.mubr.bf16.mxu0 %v8370_v39  ;;  %v2763_v59 = vpop.f32.mrf.mxu0 }
 0x3c0   : > { %4205 = vst [vmem:[%s7887_s21 + $0x3c8] sm:$0xf] %v5930_v54  ;;  %v5936_v2 = vpack.c.bf16 %v3801_v49, %v3801_v49  ;;  %v3793_v7 = vadd.f32 %v3792_v63, %v8476_v57  ;;  %3157 = vst [vmem:[%s7887_s21 + $0x284] sm:$0xf] %v5876_v36  ;;  %v5886_v35 = vpack.c.bf16 %v2772_v5, %v2772_v5  ;;  %v8563_v36 = vpop.permute.xlu1 %3379 }
 0x3c1   : > { %v2764_v50 = vadd.f32 %v2763_v59, %v9134_v26  ;;  %v6306_v38 = vpop.f32.mrf.mxu1  ;;  %v6263_v20 = vpop.f32.mrf.mxu0 }
 0x3c2   : > { %4211 = vst [vmem:[%s7887_s21 + $0x3ec] sm:$0xf] %v5936_v2  ;;  %v5932_v33 = vpack.c.bf16 %v3793_v7, %v3793_v7  ;;  %v3814_v0 = vadd.f32 %v6306_v38, %v8518_v27  ;;  %3167 = vst [vmem:[%s7887_s21 + $0x2c0] sm:$0xf] %v5886_v35  ;;  %v2775_v3 = vadd.f32 %v6263_v20, %v8285_v32  ;;  %v8569_v7 = vpop.permute.xlu0 %3384 }
 0x3c3   : > { %v5882_v39 = vpack.c.bf16 %v2764_v50, %v2764_v50  ;;  %v3805_v4 = vpop.f32.mrf.mxu1  ;;  %v2766_v31 = vpop.f32.mrf.mxu0 }
 0x3c4   : > { %4207 = vst [vmem:[%s7887_s21 + $0x3d4] sm:$0xf] %v5932_v33  ;;  %v5942_v60 = vpack.c.bf16 %v3814_v0, %v3814_v0  ;;  %v3806_v61 = vadd.f32 %v3805_v4, %v8500_v45  ;;  %v5888_v53 = vpack.c.bf16 %v2775_v3, %v2775_v3  ;;  %v2767_v40 = vadd.f32 %v2766_v31, %v9135_v43 }
 0x3c5   : > { %3163 = vst [vmem:[%s7887_s21 + $0x2a8] sm:$0xf] %v5882_v39  ;;  %v6307_v8 = vpop.f32.mrf.mxu1  ;;  %v6266_v17 = vpop.f32.mrf.mxu0  ;;  %6361 = vmatmul.mubr.bf16.gmra.mxu0 %v8394_v29 }
 0x3c6   : > { %4217 = vst [vmem:[%s7887_s21 + $0x410] sm:$0xf] %v5942_v60  ;;  %v5938_v9 = vpack.c.bf16 %v3806_v61, %v3806_v61  ;;  %v3817_v32 = vadd.f32 %v6307_v8, %v8528_v11  ;;  %3169 = vst [vmem:[%s7887_s21 + $0x2cc] sm:$0xf] %v5888_v53  ;;  %v5884_v56 = vpack.c.bf16 %v2767_v40, %v2767_v40  ;;  %v8584_v8 = vpop.permute.xlu0 %3394 }
 0x3c7   : > { %v2788_v1 = vadd.f32 %v6266_v17, %v8309_v12  ;;  %v3808_v52 = vpop.f32.mrf.mxu1  ;;  %v2779_v42 = vpop.f32.mrf.mxu0 }
 0x3c8   : > { %4213 = vst [vmem:[%s7887_s21 + $0x3f8] sm:$0xf] %v5938_v9  ;;  %v5944_v54 = vpack.c.bf16 %v3817_v32, %v3817_v32  ;;  %v3809_v49 = vadd.f32 %v3808_v52, %v8511_v6  ;;  %3165 = vst [vmem:[%s7887_s21 + $0x2b4] sm:$0xf] %v5884_v56  ;;  %v2780_v63 = vadd.f32 %v2779_v42, %v8292_v48 }
 0x3c9   : > { %v5894_v5 = vpack.c.bf16 %v2788_v1, %v2788_v1  ;;  %v6310_v29 = vpop.f32.mrf.mxu1  ;;  %v6267_v12 = vpop.f32.mrf.mxu0 }
 0x3ca   : > { %4219 = vst [vmem:[%s7887_s21 + $0x41c] sm:$0xf] %v5944_v54  ;;  %v5940_v2 = vpack.c.bf16 %v3809_v49, %v3809_v49  ;;  %v3830_v59 = vadd.f32 %v6310_v29, %v8552_v30  ;;  %v5890_v35 = vpack.c.bf16 %v2780_v63, %v2780_v63  ;;  %v2791_v26 = vadd.f32 %v6267_v12, %v8319_v22  ;;  %v8579_v22 = vpop.permute.xlu1 %3389 }
 0x3cb   : > { %3175 = vst [vmem:[%s7887_s21 + $0x2f0] sm:$0xf] %v5894_v5  ;;  %v3821_v50 = vpop.f32.mrf.mxu1  ;;  %v2782_v33 = vpop.f32.mrf.mxu0 }
 0x3cc   : > { %4215 = vst [vmem:[%s7887_s21 + $0x404] sm:$0xf] %v5940_v2  ;;  %v5950_v38 = vpack.c.bf16 %v3830_v59, %v3830_v59  ;;  %v3822_v48 = vadd.f32 %v3821_v50, %v8535_v46  ;;  %3171 = vst [vmem:[%s7887_s21 + $0x2d8] sm:$0xf] %v5890_v35  ;;  %v5896_v20 = vpack.c.bf16 %v2791_v26, %v2791_v26 }
 0x3cd   : > { %v2783_v0 = vadd.f32 %v2782_v33, %v8303_v24  ;;  %v6311_v39 = vpop.f32.mrf.mxu1  ;;  %v3532_v4 = vpop.f32.mrf.mxu0 }
 0x3ce   : > { %4225 = vst [vmem:[%s7887_s21 + $0x440] sm:$0xf] %v5950_v38  ;;  %v5946_v3 = vpack.c.bf16 %v3822_v48, %v3822_v48  ;;  %v3833_v60 = vadd.f32 %v6311_v39, %v8563_v36  ;;  %3177 = vst [vmem:[%s7887_s21 + $0x2fc] sm:$0xf] %v5896_v20  ;;  %v3533_v24 = vadd.f32 %v3532_v4, %v8327_v28  ;;  %v8593_v63 = vpop.permute.xlu1 %3399  ;;  %v8606_v4 = vpop.permute.xlu0 %4302 }
 0x3cf   : > { %v5892_v31 = vpack.c.bf16 %v2783_v0, %v2783_v0  ;;  %v3824_v61 = vpop.f32.mrf.mxu1  ;;  %v3534_v43 = vpop.f32.mrf.mxu0 }
 0x3d0   : > { %4221 = vst [vmem:[%s7887_s21 + $0x428] sm:$0xf] %v5946_v3  ;;  %v5952_v53 = vpack.c.bf16 %v3833_v60, %v3833_v60  ;;  %v3825_v40 = vadd.f32 %v3824_v61, %v8546_v51  ;;  %v3535_v9 = vadd.f32 %v3534_v43, %v8327_v28 }
 0x3d1   : > { %3173 = vst [vmem:[%s7887_s21 + $0x2e4] sm:$0xf] %v5892_v31  ;;  %v6314_v17 = vpop.f32.mrf.mxu1  ;;  %v3536_v56 = vpop.f32.mrf.mxu0 }
 0x3d2   : > { %4227 = vst [vmem:[%s7887_s21 + $0x44c] sm:$0xf] %v5952_v53  ;;  %v5948_v32 = vpack.c.bf16 %v3825_v40, %v3825_v40  ;;  %v3846_v1 = vadd.f32 %v6314_v17, %v8584_v8  ;;  %v5897_v52 = vpack.c.bf16 %v3535_v9, %v3533_v24  ;;  %v3537_v28 = vadd.f32 %v3536_v56, %v8338_v37 }
 0x3d3   : > { %v3837_v54 = vpop.f32.mrf.mxu1  ;;  %v3538_v49 = vpop.f32.mrf.mxu0 }
 0x3d4   : > { %4223 = vst [vmem:[%s7887_s21 + $0x434] sm:$0xf] %v5948_v32  ;;  %v5958_v42 = vpack.c.bf16 %v3846_v1, %v3846_v1  ;;  %v3838_v5 = vadd.f32 %v3837_v54, %v8569_v7  ;;  %4172 = vst [vmem:[%s7887_s21 + $0x300] sm:$0xff] %v5897_v52  ;;  %v3539_v29 = vadd.f32 %v3538_v49, %v8338_v37  ;;  %v8614_v32 = vpop.permute.xlu1 %4307 }
 0x3d5   : > { %v6315_v2 = vpop.f32.mrf.mxu1  ;;  %v3542_v59 = vpop.f32.mrf.mxu0 }
 0x3d6   : > { %4233 = vst [vmem:[%s7887_s21 + $0x470] sm:$0xf] %v5958_v42  ;;  %v5954_v12 = vpack.c.bf16 %v3838_v5, %v3838_v5  ;;  %v3849_v35 = vadd.f32 %v6315_v2, %v8593_v63  ;;  %v5899_v26 = vpack.c.bf16 %v3539_v29, %v3537_v28  ;;  %v3543_v20 = vadd.f32 %v3542_v59, %v8343_v55  ;;  %v8622_v2 = vpop.permute.xlu0 %4312 }
 0x3d7   : > { %v3840_v50 = vpop.f32.mrf.mxu1  ;;  %v3544_v33 = vpop.f32.mrf.mxu0 }
 0x3d8   : > { %4229 = vst [vmem:[%s7887_s21 + $0x458] sm:$0xf] %v5954_v12  ;;  %v5960_v38 = vpack.c.bf16 %v3849_v35, %v3849_v35  ;;  %v3841_v48 = vadd.f32 %v3840_v50, %v8579_v22  ;;  %4174 = vst [vmem:[%s7887_s21 + $0x30c] sm:$0xff] %v5899_v26  ;;  %v3545_v37 = vadd.f32 %v3544_v33, %v8343_v55 }
 0x3d9   : > { %v4590_v0 = vpop.f32.mrf.mxu1  ;;  %v3546_v3 = vpop.f32.mrf.mxu0 }
 0x3da   : > { %4235 = vst [vmem:[%s7887_s21 + $0x47c] sm:$0xf] %v5960_v38  ;;  %v5956_v39 = vpack.c.bf16 %v3841_v48, %v3841_v48  ;;  %v5901_v60 = vpack.c.bf16 %v3545_v37, %v3543_v20  ;;  %v4591_v61 = vadd.f32 %v4590_v0, %v8606_v4  ;;  %v3547_v40 = vadd.f32 %v3546_v3, %v8355_v16  ;;  %v8630_v37 = vpop.permute.xlu1 %4317 }
 0x3db   : > { %v4592_v31 = vpop.f32.mrf.mxu1  ;;  %v3548_v53 = vpop.f32.mrf.mxu0 }
 0x3dc   : > { %4231 = vst [vmem:[%s7887_s21 + $0x464] sm:$0xf] %v5956_v39  ;;  %v4593_v43 = vadd.f32 %v4592_v31, %v8606_v4  ;;  %4176 = vst [vmem:[%s7887_s21 + $0x318] sm:$0xff] %v5901_v60  ;;  %v3549_v55 = vadd.f32 %v3548_v53, %v8355_v16 }
 0x3dd   : > { %v4594_v24 = vpop.f32.mrf.mxu1  ;;  %v3552_v17 = vpop.f32.mrf.mxu0 }
 0x3de   : > { %v5961_v9 = vpack.c.bf16 %v4593_v43, %v4591_v61  ;;  %v5903_v56 = vpack.c.bf16 %v3549_v55, %v3547_v40  ;;  %v4595_v52 = vadd.f32 %v4594_v24, %v8614_v32  ;;  %v3553_v49 = vadd.f32 %v3552_v17, %v8362_v21  ;;  %v8638_v55 = vpop.permute.xlu0 %4322 }
 0x3df   : > { %v4596_v1 = vpop.f32.mrf.mxu1  ;;  %v3554_v54 = vpop.f32.mrf.mxu0 }
 0x3e0   : > { %5230 = vst [vmem:[%s7887_s21 + $0x480] sm:$0xff] %v5961_v9  ;;  %v4597_v42 = vadd.f32 %v4596_v1, %v8614_v32  ;;  %4178 = vst [vmem:[%s7887_s21 + $0x324] sm:$0xff] %v5903_v56  ;;  %v3555_v16 = vadd.f32 %v3554_v54, %v8362_v21 }
 0x3e1   : > { %v4600_v5 = vpop.f32.mrf.mxu1  ;;  %v3556_v29 = vpop.f32.mrf.mxu0 }
 0x3e2   : > { %v5963_v28 = vpack.c.bf16 %v4597_v42, %v4595_v52  ;;  %v5905_v12 = vpack.c.bf16 %v3555_v16, %v3553_v49  ;;  %v4601_v35 = vadd.f32 %v4600_v5, %v8622_v2  ;;  %v3557_v38 = vadd.f32 %v3556_v29, %v8373_v62  ;;  %v8646_v16 = vpop.permute.xlu1 %4327 }
 0x3e3   : > { %v4602_v59 = vpop.f32.mrf.mxu1  ;;  %v3558_v26 = vpop.f32.mrf.mxu0 }
 0x3e4   : > { %5232 = vst [vmem:[%s7887_s21 + $0x48c] sm:$0xff] %v5963_v28  ;;  %v4603_v50 = vadd.f32 %v4602_v59, %v8622_v2  ;;  %4180 = vst [vmem:[%s7887_s21 + $0x330] sm:$0xff] %v5905_v12  ;;  %v3559_v21 = vadd.f32 %v3558_v26, %v8373_v62 }
 0x3e5   : > { %v4604_v33 = vpop.f32.mrf.mxu1  ;;  %v3562_v20 = vpop.f32.mrf.mxu0 }
 0x3e6   : > { %v5965_v48 = vpack.c.bf16 %v4603_v50, %v4601_v35  ;;  %v5907_v0 = vpack.c.bf16 %v3559_v21, %v3557_v38  ;;  %v4605_v3 = vadd.f32 %v4604_v33, %v8630_v37  ;;  %v3563_v61 = vadd.f32 %v3562_v20, %v8379_v13  ;;  %v8654_v21 = vpop.permute.xlu0 %4332 }
 0x3e7   : > { %v4606_v39 = vpop.f32.mrf.mxu1  ;;  %v3564_v60 = vpop.f32.mrf.mxu0 }
 0x3e8   : > { %5234 = vst [vmem:[%s7887_s21 + $0x498] sm:$0xff] %v5965_v48  ;;  %v4607_v31 = vadd.f32 %v4606_v39, %v8630_v37  ;;  %4182 = vst [vmem:[%s7887_s21 + $0x33c] sm:$0xff] %v5907_v0  ;;  %v3565_v62 = vadd.f32 %v3564_v60, %v8379_v13 }
 0x3e9   : > { %v4610_v53 = vpop.f32.mrf.mxu1  ;;  %v3566_v40 = vpop.f32.mrf.mxu0 }
 0x3ea   : > { %v5967_v43 = vpack.c.bf16 %v4607_v31, %v4605_v3  ;;  %v5909_v24 = vpack.c.bf16 %v3565_v62, %v3563_v61  ;;  %v4611_v17 = vadd.f32 %v4610_v53, %v8638_v55  ;;  %v3567_v52 = vadd.f32 %v3566_v40, %v8389_v44  ;;  %v8662_v62 = vpop.permute.xlu1 %4337 }
 0x3eb   : > { %v4612_v9 = vpop.f32.mrf.mxu1  ;;  %v3568_v56 = vpop.f32.mrf.mxu0 }
 0x3ec   : > { %5236 = vst [vmem:[%s7887_s21 + $0x4a4] sm:$0xff] %v5967_v43  ;;  %v4613_v1 = vadd.f32 %v4612_v9, %v8638_v55  ;;  %4184 = vst [vmem:[%s7887_s21 + $0x348] sm:$0xff] %v5909_v24  ;;  %v3569_v13 = vadd.f32 %v3568_v56, %v8389_v44 }
 0x3ed   : > { %v4614_v54 = vpop.f32.mrf.mxu1  ;;  %v3572_v49 = vpop.f32.mrf.mxu0 }
 0x3ee   : > { %v5969_v42 = vpack.c.bf16 %v4613_v1, %v4611_v17  ;;  %v5911_v5 = vpack.c.bf16 %v3569_v13, %v3567_v52  ;;  %v4615_v29 = vadd.f32 %v4614_v54, %v8646_v16  ;;  %v3573_v35 = vadd.f32 %v3572_v49, %v8397_v25  ;;  %v8670_v13 = vpop.permute.xlu0 %4342 }
 0x3ef   : > { %v4616_v28 = vpop.f32.mrf.mxu1  ;;  %v3574_v12 = vpop.f32.mrf.mxu0 }
 0x3f0   : > { %5238 = vst [vmem:[%s7887_s21 + $0x4b0] sm:$0xff] %v5969_v42  ;;  %v4617_v59 = vadd.f32 %v4616_v28, %v8646_v16  ;;  %4186 = vst [vmem:[%s7887_s21 + $0x354] sm:$0xff] %v5911_v5  ;;  %v3575_v44 = vadd.f32 %v3574_v12, %v8397_v25 }
 0x3f1   : > { %v4620_v26 = vpop.f32.mrf.mxu1  ;;  %v3576_v38 = vpop.f32.mrf.mxu0 }
 0x3f2   : > { %v5971_v50 = vpack.c.bf16 %v4617_v59, %v4615_v29  ;;  %v5913_v33 = vpack.c.bf16 %v3575_v44, %v3573_v35  ;;  %v4621_v20 = vadd.f32 %v4620_v26, %v8654_v21  ;;  %v3577_v3 = vadd.f32 %v3576_v38, %v8407_v19  ;;  %v8678_v44 = vpop.permute.xlu1 %4347 }
 0x3f3   : > { %v4622_v48 = vpop.f32.mrf.mxu1  ;;  %v3578_v0 = vpop.f32.mrf.mxu0 }
 0x3f4   : > { %5240 = vst [vmem:[%s7887_s21 + $0x4bc] sm:$0xff] %v5971_v50  ;;  %v4623_v39 = vadd.f32 %v4622_v48, %v8654_v21  ;;  %4188 = vst [vmem:[%s7887_s21 + $0x360] sm:$0xff] %v5913_v33  ;;  %v3579_v25 = vadd.f32 %v3578_v0, %v8407_v19 }
 0x3f5   : > { %v4624_v60 = vpop.f32.mrf.mxu1  ;;  %v3582_v61 = vpop.f32.mrf.mxu0 }
 0x3f6   : > { %v5973_v31 = vpack.c.bf16 %v4623_v39, %v4621_v20  ;;  %v5915_v53 = vpack.c.bf16 %v3579_v25, %v3577_v3  ;;  %v4625_v40 = vadd.f32 %v4624_v60, %v8662_v62  ;;  %v3583_v17 = vadd.f32 %v3582_v61, %v8414_v41  ;;  %v8686_v25 = vpop.permute.xlu0 %4352 }
 0x3f7   : > { %v4626_v43 = vpop.f32.mrf.mxu1  ;;  %v3584_v24 = vpop.f32.mrf.mxu0 }
 0x3f8   : > { %5242 = vst [vmem:[%s7887_s21 + $0x4c8] sm:$0xff] %v5973_v31  ;;  %v4627_v9 = vadd.f32 %v4626_v43, %v8662_v62  ;;  %4190 = vst [vmem:[%s7887_s21 + $0x36c] sm:$0xff] %v5915_v53  ;;  %v3585_v19 = vadd.f32 %v3584_v24, %v8414_v41 }
 0x3f9   : > { %v4630_v56 = vpop.f32.mrf.mxu1  ;;  %v3586_v52 = vpop.f32.mrf.mxu0 }
 0x3fa   : > { %v5975_v1 = vpack.c.bf16 %v4627_v9, %v4625_v40  ;;  %v5917_v54 = vpack.c.bf16 %v3585_v19, %v3583_v17  ;;  %v4631_v49 = vadd.f32 %v4630_v56, %v8670_v13  ;;  %v3587_v29 = vadd.f32 %v3586_v52, %v8425_v18  ;;  %v8694_v19 = vpop.permute.xlu1 %4357 }
 0x3fb   : > { %v4632_v42 = vpop.f32.mrf.mxu1  ;;  %v3588_v5 = vpop.f32.mrf.mxu0 }
 0x3fc   : > { %5244 = vst [vmem:[%s7887_s21 + $0x4d4] sm:$0xff] %v5975_v1  ;;  %v4633_v28 = vadd.f32 %v4632_v42, %v8670_v13  ;;  %4192 = vst [vmem:[%s7887_s21 + $0x378] sm:$0xff] %v5917_v54  ;;  %v3589_v41 = vadd.f32 %v3588_v5, %v8425_v18 }
 0x3fd   : > { %v4634_v12 = vpop.f32.mrf.mxu1  ;;  %v3592_v35 = vpop.f32.mrf.mxu0 }
 0x3fe   : > { %v5977_v59 = vpack.c.bf16 %v4633_v28, %v4631_v49  ;;  %v5919_v26 = vpack.c.bf16 %v3589_v41, %v3587_v29  ;;  %v4635_v38 = vadd.f32 %v4634_v12, %v8678_v44  ;;  %v3593_v20 = vadd.f32 %v3592_v35, %v8430_v23  ;;  %v8702_v41 = vpop.permute.xlu0 %4362 }
 0x3ff   : > { %v4636_v50 = vpop.f32.mrf.mxu1  ;;  %v3594_v33 = vpop.f32.mrf.mxu0 }
 0x400   : > { %5246 = vst [vmem:[%s7887_s21 + $0x4e0] sm:$0xff] %v5977_v59  ;;  %v4637_v48 = vadd.f32 %v4636_v50, %v8678_v44  ;;  %4194 = vst [vmem:[%s7887_s21 + $0x384] sm:$0xff] %v5919_v26  ;;  %v3595_v18 = vadd.f32 %v3594_v33, %v8430_v23 }
 0x401   : > { %v4640_v0 = vpop.f32.mrf.mxu1  ;;  %v3596_v3 = vpop.f32.mrf.mxu0 }
 0x402   : > { %v5979_v39 = vpack.c.bf16 %v4637_v48, %v4635_v38  ;;  %v5921_v60 = vpack.c.bf16 %v3595_v18, %v3593_v20  ;;  %v4641_v61 = vadd.f32 %v4640_v0, %v8686_v25  ;;  %v3597_v40 = vadd.f32 %v3596_v3, %v8441_v10  ;;  %v8710_v18 = vpop.permute.xlu1 %4367 }
 0x403   : > { %v4642_v31 = vpop.f32.mrf.mxu1  ;;  %v3598_v53 = vpop.f32.mrf.mxu0 }
 0x404   : > { %5248 = vst [vmem:[%s7887_s21 + $0x4ec] sm:$0xff] %v5979_v39  ;;  %v4643_v43 = vadd.f32 %v4642_v31, %v8686_v25  ;;  %4196 = vst [vmem:[%s7887_s21 + $0x390] sm:$0xff] %v5921_v60  ;;  %v3599_v23 = vadd.f32 %v3598_v53, %v8441_v10 }
 0x405   : > { %v4644_v24 = vpop.f32.mrf.mxu1  ;;  %v3602_v17 = vpop.f32.mrf.mxu0 }
 0x406   : > { %v5981_v9 = vpack.c.bf16 %v4643_v43, %v4641_v61  ;;  %v5923_v56 = vpack.c.bf16 %v3599_v23, %v3597_v40  ;;  %v4645_v52 = vadd.f32 %v4644_v24, %v8694_v19  ;;  %v3603_v49 = vadd.f32 %v3602_v17, %v8448_v15  ;;  %v8718_v23 = vpop.permute.xlu0 %4372 }
 0x407   : > { %v4646_v1 = vpop.f32.mrf.mxu1  ;;  %v3604_v54 = vpop.f32.mrf.mxu0 }
 0x408   : > { %5250 = vst [vmem:[%s7887_s21 + $0x4f8] sm:$0xff] %v5981_v9  ;;  %v4647_v42 = vadd.f32 %v4646_v1, %v8694_v19  ;;  %4198 = vst [vmem:[%s7887_s21 + $0x39c] sm:$0xff] %v5923_v56  ;;  %v3605_v10 = vadd.f32 %v3604_v54, %v8448_v15 }
 0x409   : > { %v4650_v5 = vpop.f32.mrf.mxu1  ;;  %v3606_v29 = vpop.f32.mrf.mxu0 }
 0x40a   : > { %v5983_v28 = vpack.c.bf16 %v4647_v42, %v4645_v52  ;;  %v5925_v12 = vpack.c.bf16 %v3605_v10, %v3603_v49  ;;  %v4651_v35 = vadd.f32 %v4650_v5, %v8702_v41  ;;  %v3607_v38 = vadd.f32 %v3606_v29, %v8458_v34  ;;  %v8726_v10 = vpop.permute.xlu1 %4377 }
 0x40b   : > { %v4652_v59 = vpop.f32.mrf.mxu1  ;;  %v3608_v26 = vpop.f32.mrf.mxu0 }
 0x40c   : > { %5252 = vst [vmem:[%s7887_s21 + $0x504] sm:$0xff] %v5983_v28  ;;  %v4653_v50 = vadd.f32 %v4652_v59, %v8702_v41  ;;  %4200 = vst [vmem:[%s7887_s21 + $0x3a8] sm:$0xff] %v5925_v12  ;;  %v3609_v15 = vadd.f32 %v3608_v26, %v8458_v34 }
 0x40d   : > { %v4654_v33 = vpop.f32.mrf.mxu1  ;;  %v3612_v20 = vpop.f32.mrf.mxu0 }
 0x40e   : > { %v5985_v48 = vpack.c.bf16 %v4653_v50, %v4651_v35  ;;  %v5927_v0 = vpack.c.bf16 %v3609_v15, %v3607_v38  ;;  %v4655_v3 = vadd.f32 %v4654_v33, %v8710_v18  ;;  %v3613_v61 = vadd.f32 %v3612_v20, %v8465_v14  ;;  %v8734_v15 = vpop.permute.xlu0 %4382 }
 0x40f   : > { %v4656_v39 = vpop.f32.mrf.mxu1  ;;  %v3614_v60 = vpop.f32.mrf.mxu0 }
 0x410   : > { %5254 = vst [vmem:[%s7887_s21 + $0x510] sm:$0xff] %v5985_v48  ;;  %v4657_v31 = vadd.f32 %v4656_v39, %v8710_v18  ;;  %4202 = vst [vmem:[%s7887_s21 + $0x3b4] sm:$0xff] %v5927_v0  ;;  %v3615_v34 = vadd.f32 %v3614_v60, %v8465_v14 }
 0x411   : > { %v4660_v53 = vpop.f32.mrf.mxu1  ;;  %v3616_v40 = vpop.f32.mrf.mxu0 }
 0x412   : > { %v5987_v43 = vpack.c.bf16 %v4657_v31, %v4655_v3  ;;  %v5929_v24 = vpack.c.bf16 %v3615_v34, %v3613_v61  ;;  %v4661_v17 = vadd.f32 %v4660_v53, %v8718_v23  ;;  %v3617_v52 = vadd.f32 %v3616_v40, %v8476_v57  ;;  %v8742_v34 = vpop.permute.xlu1 %4387 }
 0x413   : > { %v4662_v9 = vpop.f32.mrf.mxu1  ;;  %v3618_v56 = vpop.f32.mrf.mxu0 }
 0x414   : > { %5256 = vst [vmem:[%s7887_s21 + $0x51c] sm:$0xff] %v5987_v43  ;;  %v4663_v1 = vadd.f32 %v4662_v9, %v8718_v23  ;;  %4204 = vst [vmem:[%s7887_s21 + $0x3c0] sm:$0xff] %v5929_v24  ;;  %v3619_v14 = vadd.f32 %v3618_v56, %v8476_v57 }
 0x415   : > { %v4664_v54 = vpop.f32.mrf.mxu1  ;;  %v3622_v49 = vpop.f32.mrf.mxu0 }
 0x416   : > { %v5989_v42 = vpack.c.bf16 %v4663_v1, %v4661_v17  ;;  %v5931_v5 = vpack.c.bf16 %v3619_v14, %v3617_v52  ;;  %v4665_v29 = vadd.f32 %v4664_v54, %v8726_v10  ;;  %v3623_v35 = vadd.f32 %v3622_v49, %v8482_v47  ;;  %v8750_v14 = vpop.permute.xlu0 %4392 }
 0x417   : > { %v4666_v28 = vpop.f32.mrf.mxu1  ;;  %v3624_v12 = vpop.f32.mrf.mxu0 }
 0x418   : > { %5258 = vst [vmem:[%s7887_s21 + $0x528] sm:$0xff] %v5989_v42  ;;  %v4667_v59 = vadd.f32 %v4666_v28, %v8726_v10  ;;  %4206 = vst [vmem:[%s7887_s21 + $0x3cc] sm:$0xff] %v5931_v5  ;;  %v3625_v57 = vadd.f32 %v3624_v12, %v8482_v47 }
 0x419   : > { %v4670_v26 = vpop.f32.mrf.mxu1  ;;  %v3626_v38 = vpop.f32.mrf.mxu0 }
 0x41a   : > { %v5991_v50 = vpack.c.bf16 %v4667_v59, %v4665_v29  ;;  %v5933_v33 = vpack.c.bf16 %v3625_v57, %v3623_v35  ;;  %v4671_v20 = vadd.f32 %v4670_v26, %v8734_v15  ;;  %v3627_v3 = vadd.f32 %v3626_v38, %v8494_v58  ;;  %v8758_v57 = vpop.permute.xlu1 %4397 }
 0x41b   : > { %v4672_v48 = vpop.f32.mrf.mxu1  ;;  %v3628_v0 = vpop.f32.mrf.mxu0 }
 0x41c   : > { %5260 = vst [vmem:[%s7887_s21 + $0x534] sm:$0xff] %v5991_v50  ;;  %v4673_v39 = vadd.f32 %v4672_v48, %v8734_v15  ;;  %4208 = vst [vmem:[%s7887_s21 + $0x3d8] sm:$0xff] %v5933_v33  ;;  %v3629_v47 = vadd.f32 %v3628_v0, %v8494_v58 }
 0x41d   : > { %v4674_v60 = vpop.f32.mrf.mxu1  ;;  %v3632_v61 = vpop.f32.mrf.mxu0 }
 0x41e   : > { %v5993_v31 = vpack.c.bf16 %v4673_v39, %v4671_v20  ;;  %v5935_v53 = vpack.c.bf16 %v3629_v47, %v3627_v3  ;;  %v4675_v40 = vadd.f32 %v4674_v60, %v8742_v34  ;;  %v3633_v17 = vadd.f32 %v3632_v61, %v8500_v45  ;;  %v8766_v47 = vpop.permute.xlu0 %4402 }
 0x41f   : > { %v4676_v43 = vpop.f32.mrf.mxu1  ;;  %v3634_v24 = vpop.f32.mrf.mxu0 }
 0x420   : > { %5262 = vst [vmem:[%s7887_s21 + $0x540] sm:$0xff] %v5993_v31  ;;  %v4677_v9 = vadd.f32 %v4676_v43, %v8742_v34  ;;  %4210 = vst [vmem:[%s7887_s21 + $0x3e4] sm:$0xff] %v5935_v53  ;;  %v3635_v58 = vadd.f32 %v3634_v24, %v8500_v45 }
 0x421   : > { %v4680_v56 = vpop.f32.mrf.mxu1  ;;  %v3636_v52 = vpop.f32.mrf.mxu0 }
 0x422   : > { %v5995_v1 = vpack.c.bf16 %v4677_v9, %v4675_v40  ;;  %v5937_v54 = vpack.c.bf16 %v3635_v58, %v3633_v17  ;;  %v4681_v49 = vadd.f32 %v4680_v56, %v8750_v14  ;;  %v3637_v29 = vadd.f32 %v3636_v52, %v8511_v6  ;;  %v8774_v58 = vpop.permute.xlu1 %4407 }
 0x423   : > { %v4682_v42 = vpop.f32.mrf.mxu1  ;;  %v3638_v5 = vpop.f32.mrf.mxu0 }
 0x424   : > { %5264 = vst [vmem:[%s7887_s21 + $0x54c] sm:$0xff] %v5995_v1  ;;  %v4683_v28 = vadd.f32 %v4682_v42, %v8750_v14  ;;  %4212 = vst [vmem:[%s7887_s21 + $0x3f0] sm:$0xff] %v5937_v54  ;;  %v3639_v45 = vadd.f32 %v3638_v5, %v8511_v6 }
 0x425   : > { %v4684_v12 = vpop.f32.mrf.mxu1  ;;  %v3642_v35 = vpop.f32.mrf.mxu0 }
 0x426   : > { %v5997_v59 = vpack.c.bf16 %v4683_v28, %v4681_v49  ;;  %v5939_v26 = vpack.c.bf16 %v3639_v45, %v3637_v29  ;;  %v4685_v38 = vadd.f32 %v4684_v12, %v8758_v57  ;;  %v3643_v20 = vadd.f32 %v3642_v35, %v8518_v27  ;;  %v8782_v45 = vpop.permute.xlu0 %4412 }
 0x427   : > { %v4686_v50 = vpop.f32.mrf.mxu1  ;;  %v3644_v33 = vpop.f32.mrf.mxu0 }
 0x428   : > { %5266 = vst [vmem:[%s7887_s21 + $0x558] sm:$0xff] %v5997_v59  ;;  %v4687_v48 = vadd.f32 %v4686_v50, %v8758_v57  ;;  %4214 = vst [vmem:[%s7887_s21 + $0x3fc] sm:$0xff] %v5939_v26  ;;  %v3645_v6 = vadd.f32 %v3644_v33, %v8518_v27 }
 0x429   : > { %v4690_v0 = vpop.f32.mrf.mxu1  ;;  %v3646_v3 = vpop.f32.mrf.mxu0 }
 0x42a   : > { %v5999_v39 = vpack.c.bf16 %v4687_v48, %v4685_v38  ;;  %v5941_v60 = vpack.c.bf16 %v3645_v6, %v3643_v20  ;;  %v4691_v61 = vadd.f32 %v4690_v0, %v8766_v47  ;;  %v3647_v40 = vadd.f32 %v3646_v3, %v8528_v11  ;;  %v8790_v6 = vpop.permute.xlu1 %4417 }
 0x42b   : > { %v4692_v31 = vpop.f32.mrf.mxu1  ;;  %v3648_v53 = vpop.f32.mrf.mxu0 }
 0x42c   : > { %5268 = vst [vmem:[%s7887_s21 + $0x564] sm:$0xff] %v5999_v39  ;;  %v4693_v43 = vadd.f32 %v4692_v31, %v8766_v47  ;;  %4216 = vst [vmem:[%s7887_s21 + $0x408] sm:$0xff] %v5941_v60  ;;  %v3649_v27 = vadd.f32 %v3648_v53, %v8528_v11 }
 0x42d   : > { %v4694_v24 = vpop.f32.mrf.mxu1  ;;  %v3652_v17 = vpop.f32.mrf.mxu0 }
 0x42e   : > { %v6001_v9 = vpack.c.bf16 %v4693_v43, %v4691_v61  ;;  %v5943_v56 = vpack.c.bf16 %v3649_v27, %v3647_v40  ;;  %v4695_v52 = vadd.f32 %v4694_v24, %v8774_v58  ;;  %v3653_v49 = vadd.f32 %v3652_v17, %v8535_v46  ;;  %v8798_v27 = vpop.permute.xlu0 %4422 }
 0x42f   : > { %v4696_v1 = vpop.f32.mrf.mxu1  ;;  %v3654_v54 = vpop.f32.mrf.mxu0 }
 0x430   : > { %5270 = vst [vmem:[%s7887_s21 + $0x570] sm:$0xff] %v6001_v9  ;;  %v4697_v42 = vadd.f32 %v4696_v1, %v8774_v58  ;;  %4218 = vst [vmem:[%s7887_s21 + $0x414] sm:$0xff] %v5943_v56  ;;  %v3655_v11 = vadd.f32 %v3654_v54, %v8535_v46 }
 0x431   : > { %v4700_v5 = vpop.f32.mrf.mxu1  ;;  %v3656_v29 = vpop.f32.mrf.mxu0 }
 0x432   : > { %v6003_v28 = vpack.c.bf16 %v4697_v42, %v4695_v52  ;;  %v5945_v12 = vpack.c.bf16 %v3655_v11, %v3653_v49  ;;  %v4701_v35 = vadd.f32 %v4700_v5, %v8782_v45  ;;  %v3657_v38 = vadd.f32 %v3656_v29, %v8546_v51  ;;  %v8806_v11 = vpop.permute.xlu1 %4427 }
 0x433   : > { %v4702_v59 = vpop.f32.mrf.mxu1  ;;  %v3658_v26 = vpop.f32.mrf.mxu0 }
 0x434   : > { %5272 = vst [vmem:[%s7887_s21 + $0x57c] sm:$0xff] %v6003_v28  ;;  %v4703_v50 = vadd.f32 %v4702_v59, %v8782_v45  ;;  %4220 = vst [vmem:[%s7887_s21 + $0x420] sm:$0xff] %v5945_v12  ;;  %v3659_v46 = vadd.f32 %v3658_v26, %v8546_v51 }
 0x435   : > { %v4704_v33 = vpop.f32.mrf.mxu1  ;;  %v3662_v20 = vpop.f32.mrf.mxu0 }
 0x436   : > { %v6005_v48 = vpack.c.bf16 %v4703_v50, %v4701_v35  ;;  %v5947_v0 = vpack.c.bf16 %v3659_v46, %v3657_v38  ;;  %v4705_v3 = vadd.f32 %v4704_v33, %v8790_v6  ;;  %v3663_v61 = vadd.f32 %v3662_v20, %v8552_v30  ;;  %v8814_v46 = vpop.permute.xlu0 %4432 }
 0x437   : > { %v4706_v39 = vpop.f32.mrf.mxu1  ;;  %v3664_v60 = vpop.f32.mrf.mxu0 }
 0x438   : > { %5274 = vst [vmem:[%s7887_s21 + $0x588] sm:$0xff] %v6005_v48  ;;  %v4707_v31 = vadd.f32 %v4706_v39, %v8790_v6  ;;  %4222 = vst [vmem:[%s7887_s21 + $0x42c] sm:$0xff] %v5947_v0  ;;  %v3665_v51 = vadd.f32 %v3664_v60, %v8552_v30 }
 0x439   : > { %v4710_v53 = vpop.f32.mrf.mxu1  ;;  %v3666_v40 = vpop.f32.mrf.mxu0 }
 0x43a   : > { %v6007_v43 = vpack.c.bf16 %v4707_v31, %v4705_v3  ;;  %v5949_v24 = vpack.c.bf16 %v3665_v51, %v3663_v61  ;;  %v4711_v17 = vadd.f32 %v4710_v53, %v8798_v27  ;;  %v3667_v52 = vadd.f32 %v3666_v40, %v8563_v36  ;;  %v8822_v51 = vpop.permute.xlu1 %4437 }
 0x43b   : > { %v4712_v9 = vpop.f32.mrf.mxu1  ;;  %v3668_v56 = vpop.f32.mrf.mxu0 }
 0x43c   : > { %5276 = vst [vmem:[%s7887_s21 + $0x594] sm:$0xff] %v6007_v43  ;;  %v4713_v1 = vadd.f32 %v4712_v9, %v8798_v27  ;;  %4224 = vst [vmem:[%s7887_s21 + $0x438] sm:$0xff] %v5949_v24  ;;  %v3669_v30 = vadd.f32 %v3668_v56, %v8563_v36 }
 0x43d   : > { %v4714_v54 = vpop.f32.mrf.mxu1  ;;  %v3672_v49 = vpop.f32.mrf.mxu0 }
 0x43e   : > { %v6009_v42 = vpack.c.bf16 %v4713_v1, %v4711_v17  ;;  %v5951_v5 = vpack.c.bf16 %v3669_v30, %v3667_v52  ;;  %v4715_v29 = vadd.f32 %v4714_v54, %v8806_v11  ;;  %v3673_v35 = vadd.f32 %v3672_v49, %v8569_v7  ;;  %v8830_v30 = vpop.permute.xlu0 %4442 }
 0x43f   : > { %v4716_v28 = vpop.f32.mrf.mxu1  ;;  %v3674_v12 = vpop.f32.mrf.mxu0 }
 0x440   : > { %5278 = vst [vmem:[%s7887_s21 + $0x5a0] sm:$0xff] %v6009_v42  ;;  %v4717_v59 = vadd.f32 %v4716_v28, %v8806_v11  ;;  %4226 = vst [vmem:[%s7887_s21 + $0x444] sm:$0xff] %v5951_v5  ;;  %v3675_v36 = vadd.f32 %v3674_v12, %v8569_v7 }
 0x441   : > { %v4720_v26 = vpop.f32.mrf.mxu1  ;;  %v3676_v38 = vpop.f32.mrf.mxu0 }
 0x442   : > { %v6011_v50 = vpack.c.bf16 %v4717_v59, %v4715_v29  ;;  %v5953_v33 = vpack.c.bf16 %v3675_v36, %v3673_v35  ;;  %v4721_v20 = vadd.f32 %v4720_v26, %v8814_v46  ;;  %v3677_v3 = vadd.f32 %v3676_v38, %v8579_v22  ;;  %v8838_v36 = vpop.permute.xlu1 %4447 }
 0x443   : > { %v4722_v48 = vpop.f32.mrf.mxu1  ;;  %v3678_v0 = vpop.f32.mrf.mxu0 }
 0x444   : > { %5280 = vst [vmem:[%s7887_s21 + $0x5ac] sm:$0xff] %v6011_v50  ;;  %v4723_v39 = vadd.f32 %v4722_v48, %v8814_v46  ;;  %4228 = vst [vmem:[%s7887_s21 + $0x450] sm:$0xff] %v5953_v33  ;;  %v3679_v7 = vadd.f32 %v3678_v0, %v8579_v22 }
 0x445   : > { %v4724_v60 = vpop.f32.mrf.mxu1  ;;  %v3682_v61 = vpop.f32.mrf.mxu0 }
 0x446   : > { %v6013_v31 = vpack.c.bf16 %v4723_v39, %v4721_v20  ;;  %v5955_v53 = vpack.c.bf16 %v3679_v7, %v3677_v3  ;;  %v4725_v40 = vadd.f32 %v4724_v60, %v8822_v51  ;;  %v3683_v17 = vadd.f32 %v3682_v61, %v8584_v8  ;;  %v8846_v60 = vpop.permute.xlu0 %4452 }
 0x447   : > { %v4726_v43 = vpop.f32.mrf.mxu1  ;;  %v3684_v24 = vpop.f32.mrf.mxu0 }
 0x448   : > { %5282 = vst [vmem:[%s7887_s21 + $0x5b8] sm:$0xff] %v6013_v31  ;;  %v4727_v9 = vadd.f32 %v4726_v43, %v8822_v51  ;;  %4230 = vst [vmem:[%s7887_s21 + $0x45c] sm:$0xff] %v5955_v53  ;;  %v3685_v22 = vadd.f32 %v3684_v24, %v8584_v8 }
 0x449   : > { %v4730_v56 = vpop.f32.mrf.mxu1  ;;  %v3686_v52 = vpop.f32.mrf.mxu0 }
 0x44a   : > { %v6015_v1 = vpack.c.bf16 %v4727_v9, %v4725_v40  ;;  %v5957_v54 = vpack.c.bf16 %v3685_v22, %v3683_v17  ;;  %v4731_v49 = vadd.f32 %v4730_v56, %v8830_v30  ;;  %v3687_v29 = vadd.f32 %v3686_v52, %v8593_v63  ;;  %v8855_v56 = vpop.permute.xlu1 %4457 }
 0x44b   : > { %v4732_v42 = vpop.f32.mrf.mxu1  ;;  %v3688_v5 = vpop.f32.mrf.mxu0 }
 0x44c   : > { %5284 = vst [vmem:[%s7887_s21 + $0x5c4] sm:$0xff] %v6015_v1  ;;  %v4733_v28 = vadd.f32 %v4732_v42, %v8830_v30  ;;  %4232 = vst [vmem:[%s7887_s21 + $0x468] sm:$0xff] %v5957_v54  ;;  %v3689_v8 = vadd.f32 %v3688_v5, %v8593_v63 }
 0x44d   : > { %v4734_v12 = vpop.f32.mrf.mxu1  ;;  %v6334_v35 = vpop.f32.mrf.mxu0 }
 0x44e   : > { %v6017_v59 = vpack.c.bf16 %v4733_v28, %v4731_v49  ;;  %v5959_v26 = vpack.c.bf16 %v3689_v8, %v3687_v29  ;;  %v4792_v50 = vadd.f32 %v6334_v35, %v8622_v2  ;;  %v4735_v33 = vadd.f32 %v4734_v12, %v8838_v36 }
 0x44f   : > { %v4736_v38 = vpop.f32.mrf.mxu1  ;;  %v4783_v20 = vpop.f32.mrf.mxu0 }
 0x450   : > { %5286 = vst [vmem:[%s7887_s21 + $0x5d0] sm:$0xff] %v6017_v59  ;;  %v4737_v48 = vadd.f32 %v4736_v38, %v8838_v36  ;;  %4234 = vst [vmem:[%s7887_s21 + $0x474] sm:$0xff] %v5959_v26  ;;  %v5966_v63 = vpack.c.bf16 %v4792_v50, %v4792_v50  ;;  %v4784_v0 = vadd.f32 %v4783_v20, %v8606_v4 }
 0x451   : > { %v4740_v39 = vpop.f32.mrf.mxu1  ;;  %v6335_v7 = vpop.f32.mrf.mxu0 }
 0x452   : > { %v6019_v3 = vpack.c.bf16 %v4737_v48, %v4735_v33  ;;  %5235 = vst [vmem:[%s7887_s21 + $0x4a0] sm:$0xf] %v5966_v63  ;;  %v5962_v2 = vpack.c.bf16 %v4784_v0, %v4784_v0  ;;  %v4795_v31 = vadd.f32 %v6335_v7, %v8630_v37  ;;  %v4741_v53 = vadd.f32 %v4740_v39, %v8846_v60 }
 0x453   : > { %v4742_v61 = vpop.f32.mrf.mxu1  ;;  %v4786_v40 = vpop.f32.mrf.mxu0 }
 0x454   : > { %5288 = vst [vmem:[%s7887_s21 + $0x5dc] sm:$0xff] %v6019_v3  ;;  %v4743_v43 = vadd.f32 %v4742_v61, %v8846_v60  ;;  %5231 = vst [vmem:[%s7887_s21 + $0x488] sm:$0xf] %v5962_v2  ;;  %v5968_v4 = vpack.c.bf16 %v4795_v31, %v4795_v31  ;;  %v4787_v24 = vadd.f32 %v4786_v40, %v8614_v32 }
 0x455   : > { %v4744_v9 = vpop.f32.mrf.mxu1  ;;  %v6338_v22 = vpop.f32.mrf.mxu0 }
 0x456   : > { %v6021_v17 = vpack.c.bf16 %v4743_v43, %v4741_v53  ;;  %5237 = vst [vmem:[%s7887_s21 + $0x4ac] sm:$0xf] %v5968_v4  ;;  %v5964_v37 = vpack.c.bf16 %v4787_v24, %v4787_v24  ;;  %v4808_v1 = vadd.f32 %v6338_v22, %v8654_v21  ;;  %v4745_v54 = vadd.f32 %v4744_v9, %v8855_v56 }
 0x457   : > { %v4746_v52 = vpop.f32.mrf.mxu1  ;;  %v4799_v32 = vpop.f32.mrf.mxu0 }
 0x458   : > { %5290 = vst [vmem:[%s7887_s21 + $0x5e8] sm:$0xff] %v6021_v17  ;;  %v4747_v42 = vadd.f32 %v4746_v52, %v8855_v56  ;;  %5233 = vst [vmem:[%s7887_s21 + $0x494] sm:$0xf] %v5964_v37  ;;  %v5974_v49 = vpack.c.bf16 %v4808_v1, %v4808_v1  ;;  %v4800_v5 = vadd.f32 %v4799_v32, %v8638_v55 }
 0x459   : > { %v6339_v29 = vpop.f32.mrf.mxu0 }
 0x45a   : > { %v6023_v28 = vpack.c.bf16 %v4747_v42, %v4745_v54  ;;  %5243 = vst [vmem:[%s7887_s21 + $0x4d0] sm:$0xf] %v5974_v49  ;;  %v5970_v8 = vpack.c.bf16 %v4800_v5, %v4800_v5  ;;  %v4811_v21 = vadd.f32 %v6339_v29, %v8662_v62 }
 0x45b   : > { %v4802_v12 = vpop.f32.mrf.mxu0 }
 0x45c   : > { %5292 = vst [vmem:[%s7887_s21 + $0x5f4] sm:$0xff] %v6023_v28  ;;  %5239 = vst [vmem:[%s7887_s21 + $0x4b8] sm:$0xf] %v5970_v8  ;;  %v5976_v59 = vpack.c.bf16 %v4811_v21, %v4811_v21  ;;  %v4803_v35 = vadd.f32 %v4802_v12, %v8646_v16 }
 0x45d   : > { %v6342_v26 = vpop.f32.mrf.mxu0 }
 0x45e   : > { %5245 = vst [vmem:[%s7887_s21 + $0x4dc] sm:$0xf] %v5976_v59  ;;  %v5972_v50 = vpack.c.bf16 %v4803_v35, %v4803_v35  ;;  %v4824_v55 = vadd.f32 %v6342_v26, %v8686_v25 }
 0x45f   : > { %v4815_v38 = vpop.f32.mrf.mxu0 }
 0x460   : > { %5241 = vst [vmem:[%s7887_s21 + $0x4c4] sm:$0xf] %v5972_v50  ;;  %v5982_v33 = vpack.c.bf16 %v4824_v55, %v4824_v55  ;;  %v4816_v48 = vadd.f32 %v4815_v38, %v8670_v13 }
 0x461   : > { %v6343_v62 = vpop.f32.mrf.mxu0 }
 0x462   : > { %5251 = vst [vmem:[%s7887_s21 + $0x500] sm:$0xf] %v5982_v33  ;;  %v5978_v20 = vpack.c.bf16 %v4816_v48, %v4816_v48  ;;  %v4827_v63 = vadd.f32 %v6343_v62, %v8694_v19 }
 0x463   : > { %v4818_v0 = vpop.f32.mrf.mxu0 }
 0x464   : > { %5247 = vst [vmem:[%s7887_s21 + $0x4e8] sm:$0xf] %v5978_v20  ;;  %v5984_v16 = vpack.c.bf16 %v4827_v63, %v4827_v63  ;;  %v4819_v39 = vadd.f32 %v4818_v0, %v8678_v44 }
 0x465   : > { %v6346_v3 = vpop.f32.mrf.mxu0 }
 0x466   : > { %5253 = vst [vmem:[%s7887_s21 + $0x50c] sm:$0xf] %v5984_v16  ;;  %v5980_v25 = vpack.c.bf16 %v4819_v39, %v4819_v39  ;;  %v4840_v7 = vadd.f32 %v6346_v3, %v8718_v23 }
 0x467   : > { %v4831_v2 = vpop.f32.mrf.mxu0 }
 0x468   : > { %5249 = vst [vmem:[%s7887_s21 + $0x4f4] sm:$0xf] %v5980_v25  ;;  %v5990_v13 = vpack.c.bf16 %v4840_v7, %v4840_v7  ;;  %v4832_v31 = vadd.f32 %v4831_v2, %v8702_v41 }
 0x469   : > { %v6347_v61 = vpop.f32.mrf.mxu0 }
 0x46a   : > { %5259 = vst [vmem:[%s7887_s21 + $0x530] sm:$0xf] %v5990_v13  ;;  %v5986_v19 = vpack.c.bf16 %v4832_v31, %v4832_v31  ;;  %v4843_v53 = vadd.f32 %v6347_v61, %v8726_v10 }
 0x46b   : > { %v4834_v43 = vpop.f32.mrf.mxu0 }
 0x46c   : > { %5255 = vst [vmem:[%s7887_s21 + $0x518] sm:$0xf] %v5986_v19  ;;  %v5992_v44 = vpack.c.bf16 %v4843_v53, %v4843_v53  ;;  %v4835_v40 = vadd.f32 %v4834_v43, %v8710_v18 }
 0x46d   : > { %v6350_v4 = vpop.f32.mrf.mxu0 }
 0x46e   : > { %5261 = vst [vmem:[%s7887_s21 + $0x53c] sm:$0xf] %v5992_v44  ;;  %v5988_v23 = vpack.c.bf16 %v4835_v40, %v4835_v40  ;;  %v4856_v24 = vadd.f32 %v6350_v4, %v8750_v14 }
 0x46f   : > { %v4847_v9 = vpop.f32.mrf.mxu0 }
 0x470   : > { %5257 = vst [vmem:[%s7887_s21 + $0x524] sm:$0xf] %v5988_v23  ;;  %v5998_v41 = vpack.c.bf16 %v4856_v24, %v4856_v24  ;;  %v4848_v17 = vadd.f32 %v4847_v9, %v8734_v15 }
 0x471   : > { %v6351_v22 = vpop.f32.mrf.mxu0 }
 0x472   : > { %5267 = vst [vmem:[%s7887_s21 + $0x560] sm:$0xf] %v5998_v41  ;;  %v5994_v10 = vpack.c.bf16 %v4848_v17, %v4848_v17  ;;  %v4859_v37 = vadd.f32 %v6351_v22, %v8758_v57 }
 0x473   : > { %v4850_v1 = vpop.f32.mrf.mxu0 }
 0x474   : > { %5263 = vst [vmem:[%s7887_s21 + $0x548] sm:$0xf] %v5994_v10  ;;  %v6000_v18 = vpack.c.bf16 %v4859_v37, %v4859_v37  ;;  %v4851_v52 = vadd.f32 %v4850_v1, %v8742_v34 }
 0x475   : > { %v6354_v54 = vpop.f32.mrf.mxu0 }
 0x476   : > { %5269 = vst [vmem:[%s7887_s21 + $0x56c] sm:$0xf] %v6000_v18  ;;  %v5996_v14 = vpack.c.bf16 %v4851_v52, %v4851_v52  ;;  %v4872_v42 = vadd.f32 %v6354_v54, %v8782_v45 }
 0x477   : > { %v4863_v32 = vpop.f32.mrf.mxu0 }
 0x478   : > { %5265 = vst [vmem:[%s7887_s21 + $0x554] sm:$0xf] %v5996_v14  ;;  %v6006_v15 = vpack.c.bf16 %v4872_v42, %v4872_v42  ;;  %v4864_v49 = vadd.f32 %v4863_v32, %v8766_v47 }
 0x479   : > { %v6355_v5 = vpop.f32.mrf.mxu0 }
 0x47a   : > { %5275 = vst [vmem:[%s7887_s21 + $0x590] sm:$0xf] %v6006_v15  ;;  %v6002_v57 = vpack.c.bf16 %v4864_v49, %v4864_v49  ;;  %v4875_v28 = vadd.f32 %v6355_v5, %v8790_v6 }
 0x47b   : > { %v4866_v29 = vpop.f32.mrf.mxu0 }
 0x47c   : > { %5271 = vst [vmem:[%s7887_s21 + $0x578] sm:$0xf] %v6002_v57  ;;  %v6008_v34 = vpack.c.bf16 %v4875_v28, %v4875_v28  ;;  %v4867_v8 = vadd.f32 %v4866_v29, %v8774_v58 }
 0x47d   : > { %v6358_v21 = vpop.f32.mrf.mxu0 }
 0x47e   : > { %5277 = vst [vmem:[%s7887_s21 + $0x59c] sm:$0xf] %v6008_v34  ;;  %v6004_v45 = vpack.c.bf16 %v4867_v8, %v4867_v8  ;;  %v4888_v12 = vadd.f32 %v6358_v21, %v8814_v46 }
 0x47f   : > { %v4879_v59 = vpop.f32.mrf.mxu0 }
 0x480   : > { %5273 = vst [vmem:[%s7887_s21 + $0x584] sm:$0xf] %v6004_v45  ;;  %v6014_v47 = vpack.c.bf16 %v4888_v12, %v4888_v12  ;;  %v4880_v35 = vadd.f32 %v4879_v59, %v8798_v27 }
 0x481   : > { %v6359_v26 = vpop.f32.mrf.mxu0 }
 0x482   : > { %5283 = vst [vmem:[%s7887_s21 + $0x5c0] sm:$0xf] %v6014_v47  ;;  %v6010_v6 = vpack.c.bf16 %v4880_v35, %v4880_v35  ;;  %v4891_v50 = vadd.f32 %v6359_v26, %v8822_v51 }
 0x483   : > { %v4882_v58 = vpop.f32.mrf.mxu0 }
 0x484   : > { %5279 = vst [vmem:[%s7887_s21 + $0x5a8] sm:$0xf] %v6010_v6  ;;  %v6016_v55 = vpack.c.bf16 %v4891_v50, %v4891_v50  ;;  %v4883_v38 = vadd.f32 %v4882_v58, %v8806_v11 }
 0x485   : > { %v6362_v46 = vpop.f32.mrf.mxu0 }
 0x486   : > { %5285 = vst [vmem:[%s7887_s21 + $0x5cc] sm:$0xf] %v6016_v55  ;;  %v6012_v33 = vpack.c.bf16 %v4883_v38, %v4883_v38  ;;  %v4904_v48 = vadd.f32 %v6362_v46, %v8846_v60 }
 0x487   : > { %v4895_v27 = vpop.f32.mrf.mxu0 }
 0x488   : > { %5281 = vst [vmem:[%s7887_s21 + $0x5b4] sm:$0xf] %v6012_v33  ;;  %v6022_v62 = vpack.c.bf16 %v4904_v48, %v4904_v48  ;;  %v4896_v20 = vadd.f32 %v4895_v27, %v8830_v30 }
 0x489   : > { %v6363_v51 = vpop.f32.mrf.mxu0 }
 0x48a   : > { %5291 = vst [vmem:[%s7887_s21 + $0x5f0] sm:$0xf] %v6022_v62  ;;  %v6018_v63 = vpack.c.bf16 %v4896_v20, %v4896_v20  ;;  %v4907_v11 = vadd.f32 %v6363_v51, %v8855_v56 }
 0x48b   : > { %v4898_v0 = vpop.f32.mrf.mxu0 }
 0x48c   : > { %5287 = vst [vmem:[%s7887_s21 + $0x5d8] sm:$0xf] %v6018_v63  ;;  %v6024_v16 = vpack.c.bf16 %v4907_v11, %v4907_v11  ;;  %v4899_v60 = vadd.f32 %v4898_v0, %v8838_v36 }
 0x48e   : > { %5293 = vst [vmem:[%s7887_s21 + $0x5fc] sm:$0xf] %v6024_v16  ;;  %v6020_v30 = vpack.c.bf16 %v4899_v60, %v4899_v60 }
 0x490   : > { %5289 = vst [vmem:[%s7887_s21 + $0x5e4] sm:$0xf] %v6020_v30 }
 0x491   : > { %6556 = shalt.err (!%p6553_p3)
}
 0x492   : > { %s6557_s16 = scalar_lea.hbm %s8922_s10, 24576  ;;  %s6561_s21 = scalar_lea.hbm %s8982_s7, 49152 }
 0x493   : > { %p6558_p5 = scmp.ne.s32.totalorder %s8922_s10, %s6557_s16  ;;  %p6562_p9 = scmp.lt.s32.totalorder %s8922_s10, %s8982_s7 }
 0x494   : > { %p6563_p12 = scmp.lt.s32.totalorder %s6561_s21, %s6557_s16 }
 0x495   : > { %p6559_p6 = pnand %p6558_p5, %p6712_p4 }
 0x496   : > { %p6564_p10 = por %p6563_p12, %p6562_p9 }
 0x497   : > { %p6560_p7 = pneg %p6559_p6 }
 0x499   : > { %p6565_p11 = pnand %p6564_p10, %p6560_p7 }
 0x49b   : > { %6568 = shalt.err (!%p6565_p11)
}
 0x49c   : > { %s6630_s8 = smov 192   ;;  %s6631_s12 = smov 12  }
 0x49d   : > { %6372 = dma.vmem_to_hbm [thread:$0]  (%p6712_p4), %s8924_s23, 24576, %s8922_s10, %s8930_s27, %s6630_s8, %s6630_s8, %s6631_s12  }
 0x49e PF: > { %p6384_p13 = scmp.ge.s32.totalorder %s6623_s29, 2  ;;  %s5325_s15 = sand.u32 1, %s6603_s24  }
 0x49f   : > { %s5326_s17 = scalar_lea.sflag [#allocation4], %s5325_s15 }
 0x4a0   : > { %p6379_p0 = pnand %p6384_p13, %p6719_p8 }
 0x4a2   : > { %p6380_p1 = pneg %p6379_p0 }
 0x4a4   : > { %6598 = dma.done.wait (%p6380_p1), %s5326_s17, 24576  }
 0x4a5   : > { %6600 = vsyncadd (%p6380_p1), %s5326_s17, 4294942720  ;;  %s21_s29 = sadd.s32 1, %s6623_s29   ;;  %s9136_s24 = smov %s6607_s25 }
 0x4a6   : > { %p18_p2 = scmp.ge.s32.totalorder %s21_s29, 4   ;;  %s9137_s25 = smov %s6611_s26 }
 0x4a7   : > { %s9138_s26 = smov %s6725_s14  ;;  %s9139_s27 = smov %s6619_s28 }
 0x4a8   : > { %s9140_s28 = smov %s9142_s9  ;;  %20 = sbr.rel (!%p18_p2) target bundleno = 5 (0x5), region = 88 }
 0x4ad   :  { %5331 = vsyncpa [#allocation3], 1 }
 0x4ae   :  { %5333 = vsyncpa [#allocation3 + $0x1], 1 }
 0x4af   :  { %5334 = vsyncpa [#allocation4], 1 }
 0x4b0   :  { %5336 = vsyncpa [#allocation4 + $0x1], 1 }

</bundles_post_ra>
